<compile_context>
chip_gen: v7x
topology: tpu7x:2x2x1
jax: 0.10.0
libtpu: 0.0.40
codegen_flags: <defaults>
</compile_context>

<pallas_src>
import functools

import jax
import jax.numpy as jnp
from jax.experimental import pallas as pl
from jax.experimental.pallas import tpu as pltpu

EPS = 1e-5
LANE = 128
# Rows of the flattened N*H*W axis per grid step.  (TM, 128) f32 output tiles plus
# the haloed input slab stay far under scoped VMEM on all generations (16 MiB v5e,
# 32 MiB v6e/v7x default).  For large images raise toward 512-1024 on v5e/v6e and
# keep <= 512 on v7x (64 MiB physical VMEM).
TILE_M = 256


def _round_up(x, m):
    return (x + m - 1) // m * m


def _conv_tile(x_ref, w_ref, base, *, tm, width, cin_p):
    """3x3 valid conv for `tm` consecutive flattened output rows starting at `base`.

    x_ref : (M_pad + halo_pad, cin_p) f32 resident VMEM block (flattened NHWC input)
    w_ref : (9 * cin_p, cout_p) bf16 resident VMEM block
    Returns the un-normalised conv output tile, (tm, cout_p) f32.
    """
    halo_pad = _round_up(2 * width + 2, 8)
    cout_p = w_ref.shape[1]
    # One 8-aligned dynamic slice covering the tile plus its 3x3 halo; the nine
    # shifted taps are then static slices of this VMEM-resident block (pure
    # sublane shifts, no unaligned dynamic addressing).
    blk = x_ref[pl.ds(pl.multiple_of(base, 8), tm + halo_pad), :]
    acc = jnp.zeros((tm, cout_p), jnp.float32)
    for t in range(9):
        dy, dx = divmod(t, 3)
        off = dy * width + dx
        lhs = blk[off:off + tm, :].astype(jnp.bfloat16)       # (tm, cin_p) bf16
        rhs = w_ref[t * cin_p:(t + 1) * cin_p, :]             # (cin_p, cout_p) bf16
        acc = acc + jnp.dot(lhs, rhs, preferred_element_type=jnp.float32)
    return acc


def _stats_kernel(x_ref, w_ref, mask_ref, sum_ref, sq_ref, *, tm, width, cin_p):
    """Pass 1: accumulate per-channel sum / sum-of-squares of the conv output over
    valid rows into grid-resident (1, C) accumulators."""
    i = pl.program_id(0)

    @pl.when(i == 0)
    def _init():
        sum_ref[...] = jnp.zeros_like(sum_ref)
        sq_ref[...] = jnp.zeros_like(sq_ref)

    z = _conv_tile(x_ref, w_ref, i * tm, tm=tm, width=width, cin_p=cin_p)
    valid = mask_ref[...] != 0.0                  # (tm, 1) -> broadcast over lanes
    zm = jnp.where(valid, z, 0.0)                 # garbage rows contribute nothing
    sum_ref[...] += jnp.sum(zm, axis=0, keepdims=True)
    sq_ref[...] += jnp.sum(zm * zm, axis=0, keepdims=True)


def _norm_kernel(x_ref, w_ref, scale_ref, shift_ref, out_ref, *, tm, width, cin_p):
    """Pass 2: recompute the conv tile and apply the folded BN affine + ReLU."""
    i = pl.program_id(0)
    z = _conv_tile(x_ref, w_ref, i * tm, tm=tm, width=width, cin_p=cin_p)
    y = z * scale_ref[...] + shift_ref[...]
    out_ref[...] = jnp.maximum(y, 0.0).astype(out_ref.dtype)


def _conv_bn_relu_stage(x_flat, w2d, gamma_p, beta_p, mask, *, n_valid, width,
                        cin_p, cout_p, tm, num_tiles):
    """One fused Conv3x3(valid) + BatchNorm(train) + ReLU stage on the flat M grid."""
    m_in = x_flat.shape[0]
    m_pad = num_tiles * tm

    def full(shape):
        return pl.BlockSpec(shape, lambda i: (0,) * len(shape))

    cparams_acc = pltpu.CompilerParams(
        dimension_semantics=("arbitrary",), vmem_limit_bytes=32 * 1024 * 1024)
    cparams_par = pltpu.CompilerParams(
        dimension_semantics=("parallel",), vmem_limit_bytes=32 * 1024 * 1024)

    # ---- Pass 1: BN statistics (grid reduction into resident accumulators). ----
    s, sq = pl.pallas_call(
        functools.partial(_stats_kernel, tm=tm, width=width, cin_p=cin_p),
        out_shape=(jax.ShapeDtypeStruct((1, cout_p), jnp.float32),
                   jax.ShapeDtypeStruct((1, cout_p), jnp.float32)),
        grid=(num_tiles,),
        in_specs=[
            full((m_in, cin_p)),                      # resident flattened input
            full((9 * cin_p, cout_p)),                # resident bf16 weights
            pl.BlockSpec((tm, 1), lambda i: (i, 0)),  # validity mask tile
        ],
        out_specs=(full((1, cout_p)), full((1, cout_p))),
        compiler_params=cparams_acc,
    )(x_flat, w2d, mask)

    # Fold BN stats + affine params into per-channel scale/shift (tiny XLA ops).
    mean = s / n_valid
    var = jnp.maximum(sq / n_valid - mean * mean, 0.0)   # biased var (PyTorch train)
    inv = jax.lax.rsqrt(var + EPS)
    scale = gamma_p * inv
    shift = beta_p - mean * scale

    # ---- Pass 2: normalize + ReLU, lane-dense (tm, cout_p) output tiles. ----
    y = pl.pallas_call(
        functools.partial(_norm_kernel, tm=tm, width=width, cin_p=cin_p),
        out_shape=jax.ShapeDtypeStruct((m_pad, cout_p), jnp.float32),
        grid=(num_tiles,),
        in_specs=[
            full((m_in, cin_p)),
            full((9 * cin_p, cout_p)),
            full((1, cout_p)),
            full((1, cout_p)),
        ],
        out_specs=pl.BlockSpec((tm, cout_p), lambda i: (i, 0)),
        compiler_params=cparams_par,
    )(x_flat, w2d, scale, shift)
    return y


def init_double_conv_params(key, in_channels, out_channels, mid_channels=None):
    """Deterministic parameter init.  Conv weights are stored as (3,3,Cin,Cout),
    equivalent to PyTorch's (Cout,Cin,3,3) after transpose."""
    if not mid_channels:
        mid_channels = out_channels
    ks = jax.random.split(key, 8)

    def conv_w(k, cin, cout):
        fan_in = 9 * cin
        return jax.random.normal(k, (3, 3, cin, cout), jnp.float32) / jnp.sqrt(fan_in)

    params = {
        "w1": conv_w(ks[0], in_channels, mid_channels),
        # Conv biases are kept for parameter parity with nn.Conv2d but are NOT used
        # in the kernels: training-mode BatchNorm subtracts the batch mean right
        # after the conv, so a per-channel bias cancels exactly in the output.
        "b1": 0.1 * jax.random.normal(ks[1], (1, mid_channels), jnp.float32),
        "gamma1": 1.0 + 0.1 * jax.random.normal(ks[2], (1, mid_channels), jnp.float32),
        "beta1": 0.1 * jax.random.normal(ks[3], (1, mid_channels), jnp.float32),
        "w2": conv_w(ks[4], mid_channels, out_channels),
        "b2": 0.1 * jax.random.normal(ks[5], (1, out_channels), jnp.float32),
        "gamma2": 1.0 + 0.1 * jax.random.normal(ks[6], (1, out_channels), jnp.float32),
        "beta2": 0.1 * jax.random.normal(ks[7], (1, out_channels), jnp.float32),
    }
    return params, mid_channels


@jax.jit
def double_conv_forward(x_nchw, params):
    """Forward of DoubleConv.  x: (N, Cin, H, W) f32 -> (N, Cout, H-4, W-4) f32."""
    N, Cin, H, W = x_nchw.shape
    w1, w2 = params["w1"], params["w2"]
    Cmid, Cout = w1.shape[-1], w2.shape[-1]

    cin_p = _round_up(Cin, LANE)
    cmid_p = _round_up(Cmid, LANE)
    cout_p = _round_up(Cout, LANE)

    m_total = N * H * W
    tm = min(TILE_M, _round_up(m_total, 8))
    num_tiles = -(-m_total // tm)
    m_pad = num_tiles * tm
    halo_pad = _round_up(2 * W + 2, 8)
    m_in = m_pad + halo_pad

    # NCHW -> NHWC -> flat (N*H*W, Cin); zero-pad channels to 128 lanes and append
    # zero rows so every tile's 3x3 halo slice stays in-bounds.
    x = jnp.transpose(x_nchw, (0, 2, 3, 1)).reshape(m_total, Cin)
    x = jnp.pad(x, ((0, m_in - m_total), (0, cin_p - Cin)))

    # Weights: (3,3,Cin,C) -> zero-pad channels -> (9*cin_p, c_p) bf16 for the MXU.
    w1p = jnp.pad(w1, ((0, 0), (0, 0), (0, cin_p - Cin), (0, cmid_p - Cmid)))
    w1p = w1p.reshape(9 * cin_p, cmid_p).astype(jnp.bfloat16)
    w2p = jnp.pad(w2, ((0, 0), (0, 0), (0, cmid_p - Cmid), (0, cout_p - Cout)))
    w2p = w2p.reshape(9 * cmid_p, cout_p).astype(jnp.bfloat16)

    g1 = jnp.pad(params["gamma1"], ((0, 0), (0, cmid_p - Cmid)))
    b1 = jnp.pad(params["beta1"], ((0, 0), (0, cmid_p - Cmid)))
    g2 = jnp.pad(params["gamma2"], ((0, 0), (0, cout_p - Cout)))
    b2 = jnp.pad(params["beta2"], ((0, 0), (0, cout_p - Cout)))

    # Validity masks on the flattened grid: row m=(n,h,w) is a real conv output only
    # if its full window stays inside the image; other rows are computed as garbage,
    # masked out of the BN stats, and sliced away below.
    idx = jnp.arange(m_pad)
    hh = (idx % (H * W)) // W
    ww = idx % W
    in_range = idx < m_total

    def make_mask(h_lim, w_lim):
        valid = in_range & (hh < h_lim) & (ww < w_lim)
        return valid.astype(jnp.float32).reshape(m_pad, 1)

    # Stage 1: conv1 + BN1 + ReLU1 on the full (N, H, W) flattened grid.
    y1 = _conv_bn_relu_stage(
        x, w1p, g1, b1, make_mask(H - 2, W - 2),
        n_valid=N * (H - 2) * (W - 2), width=W,
        cin_p=cin_p, cout_p=cmid_p, tm=tm, num_tiles=num_tiles)

    # Stage 2 consumes y1 on the same flattened grid (its BN stats mask the garbage
    # rows), so the intermediate needs no transpose / re-im2col -- only zero rows
    # appended for halo coverage.
    # TODO(synk): fuse the two stages so the y1 tiles never round-trip through HBM.
    y1 = jnp.pad(y1, ((0, m_in - m_pad), (0, 0)))
    y2 = _conv_bn_relu_stage(
        y1, w2p, g2, b2, make_mask(H - 4, W - 4),
        n_valid=N * (H - 4) * (W - 4), width=W,
        cin_p=cmid_p, cout_p=cout_p, tm=tm, num_tiles=num_tiles)

    # Keep only real output positions / channels and return NCHW.
    out = y2[:m_total].reshape(N, H, W, cout_p)[:, :H - 4, :W - 4, :Cout]
    return jnp.transpose(out, (0, 3, 1, 2))


if __name__ == "__main__":
    key = jax.random.PRNGKey(0)
    k_x, k_p = jax.random.split(key)

    N, Cin, H, W = 2, 4, 16, 16
    Cout = 8
    x = jax.random.normal(k_x, (N, Cin, H, W), jnp.float32)

    params, _ = init_double_conv_params(k_p, Cin, Cout)
    out = jax.block_until_ready(double_conv_forward(x, params))

    assert out.shape == (N, Cout, H - 4, W - 4), out.shape
    assert out.dtype == jnp.float32
    assert bool(jnp.all(out >= 0.0))          # ReLU output is non-negative
    assert bool(jnp.all(jnp.isfinite(out)))
    print("KERNEL_OK")
</pallas_src>

<mosaic_0001>
module attributes {stable_mosaic.version = 11 : i64} {
  func.func @_stats_kernel(%arg0: i32, %arg1: memref<552x128xf32, #tpu.memory_space<vmem>>, %arg2: memref<1152x128xbf16, #tpu.memory_space<vmem>>, %arg3: memref<256x1xf32, #tpu.memory_space<vmem>>, %arg4: memref<1x128xf32, #tpu.memory_space<vmem>>, %arg5: memref<1x128xf32, #tpu.memory_space<vmem>>) attributes {dimension_semantics = [#tpu.dimension_semantics<arbitrary>], iteration_bounds = array<i64: 2>, scalar_prefetch = 0 : i64, scratch_operands = 0 : i64, tpu.core_type = #tpu.core_type<tc>, window_params = [{pipeline_mode = #tpu.pipeline_mode<synchronous>, transform_indices = @transform_0, window_bounds = array<i64: 552, 128>}, {pipeline_mode = #tpu.pipeline_mode<synchronous>, transform_indices = @transform_1, window_bounds = array<i64: 1152, 128>}, {transform_indices = @transform_2, window_bounds = array<i64: 256, 1>}, {pipeline_mode = #tpu.pipeline_mode<synchronous>, transform_indices = @transform_3, window_bounds = array<i64: 1, 128>}, {pipeline_mode = #tpu.pipeline_mode<synchronous>, transform_indices = @transform_4, window_bounds = array<i64: 1, 128>}]} {
    %c0_i32 = arith.constant 0 : i32
    %0 = arith.cmpi eq, %arg0, %c0_i32 : i32
    %1 = arith.extui %0 : i1 to i32
    %c0_i32_0 = arith.constant 0 : i32
    %2 = arith.cmpi ne, %1, %c0_i32_0 : i32
    scf.if %2 {
      %cst_34 = arith.constant 0.000000e+00 : f32
      %71 = vector.broadcast %cst_34 : f32 to vector<1x128xf32>
      %c0_35 = arith.constant 0 : index
      %c0_36 = arith.constant 0 : index
      %72 = vector.load %arg4[%c0_35, %c0_36] : memref<1x128xf32, #tpu.memory_space<vmem>>, vector<1x128xf32>
      tpu.vector_store %arg4[%c0_35, %c0_36], %71 {strides = array<i32>} : memref<1x128xf32, #tpu.memory_space<vmem>>, vector<1x128xf32>,
      %cst_37 = arith.constant 0.000000e+00 : f32
      %73 = vector.broadcast %cst_37 : f32 to vector<1x128xf32>
      %c0_38 = arith.constant 0 : index
      %c0_39 = arith.constant 0 : index
      %74 = vector.load %arg5[%c0_38, %c0_39] : memref<1x128xf32, #tpu.memory_space<vmem>>, vector<1x128xf32>
      tpu.vector_store %arg5[%c0_38, %c0_39], %73 {strides = array<i32>} : memref<1x128xf32, #tpu.memory_space<vmem>>, vector<1x128xf32>,
    } else {
    }
    %c256_i32 = arith.constant 256 : i32
    %3 = arith.muli %arg0, %c256_i32 : i32
    %4 = tpu.assume_multiple %3, 8 : i32
    %5 = arith.index_cast %4 : i32 to index
    %c0 = arith.constant 0 : index
    %6 = vector.load %arg1[%5, %c0] : memref<552x128xf32, #tpu.memory_space<vmem>>, vector<296x128xf32>
    %cst = arith.constant 0.000000e+00 : f32
    %7 = vector.broadcast %cst : f32 to vector<256x128xf32>
    %8 = vector.extract_strided_slice %6 {offsets = [0, 0], sizes = [256, 128], strides = [1, 1]} : vector<296x128xf32> to vector<256x128xf32>
    %9 = arith.truncf %8 : vector<256x128xf32> to vector<256x128xbf16>
    %c0_1 = arith.constant 0 : index
    %c0_2 = arith.constant 0 : index
    %10 = vector.load %arg2[%c0_1, %c0_2] : memref<1152x128xbf16, #tpu.memory_space<vmem>>, vector<128x128xbf16>
    %cst_3 = arith.constant dense<0.000000e+00> : vector<256x128xf32>
    %11 = tpu.matmul %9, %10, %cst_3 {dimension_numbers = #tpu.dot_dimension_numbers<[1], [0], [0], [1], [0, 0, 1, 1], [], []>} : vector<256x128xbf16>, vector<128x128xbf16>, vector<256x128xf32> -> vector<256x128xf32>
    %12 = arith.addf %7, %11 : vector<256x128xf32>
    %13 = vector.extract_strided_slice %6 {offsets = [1, 0], sizes = [256, 128], strides = [1, 1]} : vector<296x128xf32> to vector<256x128xf32>
    %14 = arith.truncf %13 : vector<256x128xf32> to vector<256x128xbf16>
    %c128 = arith.constant 128 : index
    %c0_4 = arith.constant 0 : index
    %15 = vector.load %arg2[%c128, %c0_4] : memref<1152x128xbf16, #tpu.memory_space<vmem>>, vector<128x128xbf16>
    %cst_5 = arith.constant dense<0.000000e+00> : vector<256x128xf32>
    %16 = tpu.matmul %14, %15, %cst_5 {dimension_numbers = #tpu.dot_dimension_numbers<[1], [0], [0], [1], [0, 0, 1, 1], [], []>} : vector<256x128xbf16>, vector<128x128xbf16>, vector<256x128xf32> -> vector<256x128xf32>
    %17 = arith.addf %12, %16 : vector<256x128xf32>
    %18 = vector.extract_strided_slice %6 {offsets = [2, 0], sizes = [256, 128], strides = [1, 1]} : vector<296x128xf32> to vector<256x128xf32>
    %19 = arith.truncf %18 : vector<256x128xf32> to vector<256x128xbf16>
    %c256 = arith.constant 256 : index
    %c0_6 = arith.constant 0 : index
    %20 = vector.load %arg2[%c256, %c0_6] : memref<1152x128xbf16, #tpu.memory_space<vmem>>, vector<128x128xbf16>
    %cst_7 = arith.constant dense<0.000000e+00> : vector<256x128xf32>
    %21 = tpu.matmul %19, %20, %cst_7 {dimension_numbers = #tpu.dot_dimension_numbers<[1], [0], [0], [1], [0, 0, 1, 1], [], []>} : vector<256x128xbf16>, vector<128x128xbf16>, vector<256x128xf32> -> vector<256x128xf32>
    %22 = arith.addf %17, %21 : vector<256x128xf32>
    %23 = vector.extract_strided_slice %6 {offsets = [16, 0], sizes = [256, 128], strides = [1, 1]} : vector<296x128xf32> to vector<256x128xf32>
    %24 = arith.truncf %23 : vector<256x128xf32> to vector<256x128xbf16>
    %c384 = arith.constant 384 : index
    %c0_8 = arith.constant 0 : index
    %25 = vector.load %arg2[%c384, %c0_8] : memref<1152x128xbf16, #tpu.memory_space<vmem>>, vector<128x128xbf16>
    %cst_9 = arith.constant dense<0.000000e+00> : vector<256x128xf32>
    %26 = tpu.matmul %24, %25, %cst_9 {dimension_numbers = #tpu.dot_dimension_numbers<[1], [0], [0], [1], [0, 0, 1, 1], [], []>} : vector<256x128xbf16>, vector<128x128xbf16>, vector<256x128xf32> -> vector<256x128xf32>
    %27 = arith.addf %22, %26 : vector<256x128xf32>
    %28 = vector.extract_strided_slice %6 {offsets = [17, 0], sizes = [256, 128], strides = [1, 1]} : vector<296x128xf32> to vector<256x128xf32>
    %29 = arith.truncf %28 : vector<256x128xf32> to vector<256x128xbf16>
    %c512 = arith.constant 512 : index
    %c0_10 = arith.constant 0 : index
    %30 = vector.load %arg2[%c512, %c0_10] : memref<1152x128xbf16, #tpu.memory_space<vmem>>, vector<128x128xbf16>
    %cst_11 = arith.constant dense<0.000000e+00> : vector<256x128xf32>
    %31 = tpu.matmul %29, %30, %cst_11 {dimension_numbers = #tpu.dot_dimension_numbers<[1], [0], [0], [1], [0, 0, 1, 1], [], []>} : vector<256x128xbf16>, vector<128x128xbf16>, vector<256x128xf32> -> vector<256x128xf32>
    %32 = arith.addf %27, %31 : vector<256x128xf32>
    %33 = vector.extract_strided_slice %6 {offsets = [18, 0], sizes = [256, 128], strides = [1, 1]} : vector<296x128xf32> to vector<256x128xf32>
    %34 = arith.truncf %33 : vector<256x128xf32> to vector<256x128xbf16>
    %c640 = arith.constant 640 : index
    %c0_12 = arith.constant 0 : index
    %35 = vector.load %arg2[%c640, %c0_12] : memref<1152x128xbf16, #tpu.memory_space<vmem>>, vector<128x128xbf16>
    %cst_13 = arith.constant dense<0.000000e+00> : vector<256x128xf32>
    %36 = tpu.matmul %34, %35, %cst_13 {dimension_numbers = #tpu.dot_dimension_numbers<[1], [0], [0], [1], [0, 0, 1, 1], [], []>} : vector<256x128xbf16>, vector<128x128xbf16>, vector<256x128xf32> -> vector<256x128xf32>
    %37 = arith.addf %32, %36 : vector<256x128xf32>
    %38 = vector.extract_strided_slice %6 {offsets = [32, 0], sizes = [256, 128], strides = [1, 1]} : vector<296x128xf32> to vector<256x128xf32>
    %39 = arith.truncf %38 : vector<256x128xf32> to vector<256x128xbf16>
    %c768 = arith.constant 768 : index
    %c0_14 = arith.constant 0 : index
    %40 = vector.load %arg2[%c768, %c0_14] : memref<1152x128xbf16, #tpu.memory_space<vmem>>, vector<128x128xbf16>
    %cst_15 = arith.constant dense<0.000000e+00> : vector<256x128xf32>
    %41 = tpu.matmul %39, %40, %cst_15 {dimension_numbers = #tpu.dot_dimension_numbers<[1], [0], [0], [1], [0, 0, 1, 1], [], []>} : vector<256x128xbf16>, vector<128x128xbf16>, vector<256x128xf32> -> vector<256x128xf32>
    %42 = arith.addf %37, %41 : vector<256x128xf32>
    %43 = vector.extract_strided_slice %6 {offsets = [33, 0], sizes = [256, 128], strides = [1, 1]} : vector<296x128xf32> to vector<256x128xf32>
    %44 = arith.truncf %43 : vector<256x128xf32> to vector<256x128xbf16>
    %c896 = arith.constant 896 : index
    %c0_16 = arith.constant 0 : index
    %45 = vector.load %arg2[%c896, %c0_16] : memref<1152x128xbf16, #tpu.memory_space<vmem>>, vector<128x128xbf16>
    %cst_17 = arith.constant dense<0.000000e+00> : vector<256x128xf32>
    %46 = tpu.matmul %44, %45, %cst_17 {dimension_numbers = #tpu.dot_dimension_numbers<[1], [0], [0], [1], [0, 0, 1, 1], [], []>} : vector<256x128xbf16>, vector<128x128xbf16>, vector<256x128xf32> -> vector<256x128xf32>
    %47 = arith.addf %42, %46 : vector<256x128xf32>
    %48 = vector.extract_strided_slice %6 {offsets = [34, 0], sizes = [256, 128], strides = [1, 1]} : vector<296x128xf32> to vector<256x128xf32>
    %49 = arith.truncf %48 : vector<256x128xf32> to vector<256x128xbf16>
    %c1024 = arith.constant 1024 : index
    %c0_18 = arith.constant 0 : index
    %50 = vector.load %arg2[%c1024, %c0_18] : memref<1152x128xbf16, #tpu.memory_space<vmem>>, vector<128x128xbf16>
    %cst_19 = arith.constant dense<0.000000e+00> : vector<256x128xf32>
    %51 = tpu.matmul %49, %50, %cst_19 {dimension_numbers = #tpu.dot_dimension_numbers<[1], [0], [0], [1], [0, 0, 1, 1], [], []>} : vector<256x128xbf16>, vector<128x128xbf16>, vector<256x128xf32> -> vector<256x128xf32>
    %52 = arith.addf %47, %51 : vector<256x128xf32>
    %c0_20 = arith.constant 0 : index
    %c0_21 = arith.constant 0 : index
    %53 = vector.load %arg3[%c0_20, %c0_21] : memref<256x1xf32, #tpu.memory_space<vmem>>, vector<256x1xf32>
    %cst_22 = arith.constant 0.000000e+00 : f32
    %54 = vector.broadcast %cst_22 : f32 to vector<256x1xf32>
    %55 = arith.cmpf one, %53, %54 : vector<256x1xf32>
    %cst_23 = arith.constant 0.000000e+00 : f32
    %56 = vector.shape_cast %55 : vector<256x1xi1> to vector<256x1xi1>
    %57 = vector.broadcast %56 : vector<256x1xi1> to vector<256x128xi1>
    %58 = vector.broadcast %cst_23 : f32 to vector<256x128xf32>
    %59 = arith.select %57, %52, %58 : vector<256x128xi1>, vector<256x128xf32>
    %c0_24 = arith.constant 0 : index
    %c0_25 = arith.constant 0 : index
    %60 = vector.load %arg4[%c0_24, %c0_25] : memref<1x128xf32, #tpu.memory_space<vmem>>, vector<1x128xf32>
    %cst_26 = arith.constant dense<0.000000e+00> : vector<128xf32>
    %61 = vector.multi_reduction <add>, %59, %cst_26 [0] : vector<256x128xf32> to vector<128xf32>
    %62 = vector.shape_cast %61 : vector<128xf32> to vector<1x128xf32>
    %63 = arith.addf %60, %62 : vector<1x128xf32>
    %c0_27 = arith.constant 0 : index
    %c0_28 = arith.constant 0 : index
    %64 = vector.load %arg4[%c0_27, %c0_28] : memref<1x128xf32, #tpu.memory_space<vmem>>, vector<1x128xf32>
    tpu.vector_store %arg4[%c0_27, %c0_28], %63 {strides = array<i32>} : memref<1x128xf32, #tpu.memory_space<vmem>>, vector<1x128xf32>,
    %c0_29 = arith.constant 0 : index
    %c0_30 = arith.constant 0 : index
    %65 = vector.load %arg5[%c0_29, %c0_30] : memref<1x128xf32, #tpu.memory_space<vmem>>, vector<1x128xf32>
    %66 = arith.mulf %59, %59 : vector<256x128xf32>
    %cst_31 = arith.constant dense<0.000000e+00> : vector<128xf32>
    %67 = vector.multi_reduction <add>, %66, %cst_31 [0] : vector<256x128xf32> to vector<128xf32>
    %68 = vector.shape_cast %67 : vector<128xf32> to vector<1x128xf32>
    %69 = arith.addf %65, %68 : vector<1x128xf32>
    %c0_32 = arith.constant 0 : index
    %c0_33 = arith.constant 0 : index
    %70 = vector.load %arg5[%c0_32, %c0_33] : memref<1x128xf32, #tpu.memory_space<vmem>>, vector<1x128xf32>
    tpu.vector_store %arg5[%c0_32, %c0_33], %69 {strides = array<i32>} : memref<1x128xf32, #tpu.memory_space<vmem>>, vector<1x128xf32>,
    return
  }
  func.func @transform_0(%arg0: i32) -> (i32, i32) {
    %c0_i32 = arith.constant 0 : i32
    %c0_i32_0 = arith.constant 0 : i32
    %c0_i32_1 = arith.constant 0 : i32
    return %c0_i32, %c0_i32_0 : i32, i32
  }
  func.func @transform_1(%arg0: i32) -> (i32, i32) {
    %c0_i32 = arith.constant 0 : i32
    %c0_i32_0 = arith.constant 0 : i32
    %c0_i32_1 = arith.constant 0 : i32
    return %c0_i32, %c0_i32_0 : i32, i32
  }
  func.func @transform_2(%arg0: i32) -> (i32, i32) {
    %c0_i32 = arith.constant 0 : i32
    %c0_i32_0 = arith.constant 0 : i32
    return %arg0, %c0_i32 : i32, i32
  }
  func.func @transform_3(%arg0: i32) -> (i32, i32) {
    %c0_i32 = arith.constant 0 : i32
    %c0_i32_0 = arith.constant 0 : i32
    %c0_i32_1 = arith.constant 0 : i32
    return %c0_i32, %c0_i32_0 : i32, i32
  }
  func.func @transform_4(%arg0: i32) -> (i32, i32) {
    %c0_i32 = arith.constant 0 : i32
    %c0_i32_0 = arith.constant 0 : i32
    %c0_i32_1 = arith.constant 0 : i32
    return %c0_i32, %c0_i32_0 : i32, i32
  }
}

module attributes {stable_mosaic.version = 11 : i64} {
  func.func @_norm_kernel(%arg0: i32, %arg1: memref<552x128xf32, #tpu.memory_space<vmem>>, %arg2: memref<1152x128xbf16, #tpu.memory_space<vmem>>, %arg3: memref<1x128xf32, #tpu.memory_space<vmem>>, %arg4: memref<1x128xf32, #tpu.memory_space<vmem>>, %arg5: memref<256x128xf32, #tpu.memory_space<vmem>>) attributes {dimension_semantics = [#tpu.dimension_semantics<parallel>], iteration_bounds = array<i64: 2>, scalar_prefetch = 0 : i64, scratch_operands = 0 : i64, tpu.core_type = #tpu.core_type<tc>, window_params = [{pipeline_mode = #tpu.pipeline_mode<synchronous>, transform_indices = @transform_0, window_bounds = array<i64: 552, 128>}, {pipeline_mode = #tpu.pipeline_mode<synchronous>, transform_indices = @transform_1, window_bounds = array<i64: 1152, 128>}, {pipeline_mode = #tpu.pipeline_mode<synchronous>, transform_indices = @transform_2, window_bounds = array<i64: 1, 128>}, {pipeline_mode = #tpu.pipeline_mode<synchronous>, transform_indices = @transform_3, window_bounds = array<i64: 1, 128>}, {transform_indices = @transform_4, window_bounds = array<i64: 256, 128>}]} {
    %c256_i32 = arith.constant 256 : i32
    %0 = arith.muli %arg0, %c256_i32 : i32
    %1 = tpu.assume_multiple %0, 8 : i32
    %2 = arith.index_cast %1 : i32 to index
    %c0 = arith.constant 0 : index
    %3 = vector.load %arg1[%2, %c0] : memref<552x128xf32, #tpu.memory_space<vmem>>, vector<296x128xf32>
    %cst = arith.constant 0.000000e+00 : f32
    %4 = vector.broadcast %cst : f32 to vector<256x128xf32>
    %5 = vector.extract_strided_slice %3 {offsets = [0, 0], sizes = [256, 128], strides = [1, 1]} : vector<296x128xf32> to vector<256x128xf32>
    %6 = arith.truncf %5 : vector<256x128xf32> to vector<256x128xbf16>
    %c0_0 = arith.constant 0 : index
    %c0_1 = arith.constant 0 : index
    %7 = vector.load %arg2[%c0_0, %c0_1] : memref<1152x128xbf16, #tpu.memory_space<vmem>>, vector<128x128xbf16>
    %cst_2 = arith.constant dense<0.000000e+00> : vector<256x128xf32>
    %8 = tpu.matmul %6, %7, %cst_2 {dimension_numbers = #tpu.dot_dimension_numbers<[1], [0], [0], [1], [0, 0, 1, 1], [], []>} : vector<256x128xbf16>, vector<128x128xbf16>, vector<256x128xf32> -> vector<256x128xf32>
    %9 = arith.addf %4, %8 : vector<256x128xf32>
    %10 = vector.extract_strided_slice %3 {offsets = [1, 0], sizes = [256, 128], strides = [1, 1]} : vector<296x128xf32> to vector<256x128xf32>
    %11 = arith.truncf %10 : vector<256x128xf32> to vector<256x128xbf16>
    %c128 = arith.constant 128 : index
    %c0_3 = arith.constant 0 : index
    %12 = vector.load %arg2[%c128, %c0_3] : memref<1152x128xbf16, #tpu.memory_space<vmem>>, vector<128x128xbf16>
    %cst_4 = arith.constant dense<0.000000e+00> : vector<256x128xf32>
    %13 = tpu.matmul %11, %12, %cst_4 {dimension_numbers = #tpu.dot_dimension_numbers<[1], [0], [0], [1], [0, 0, 1, 1], [], []>} : vector<256x128xbf16>, vector<128x128xbf16>, vector<256x128xf32> -> vector<256x128xf32>
    %14 = arith.addf %9, %13 : vector<256x128xf32>
    %15 = vector.extract_strided_slice %3 {offsets = [2, 0], sizes = [256, 128], strides = [1, 1]} : vector<296x128xf32> to vector<256x128xf32>
    %16 = arith.truncf %15 : vector<256x128xf32> to vector<256x128xbf16>
    %c256 = arith.constant 256 : index
    %c0_5 = arith.constant 0 : index
    %17 = vector.load %arg2[%c256, %c0_5] : memref<1152x128xbf16, #tpu.memory_space<vmem>>, vector<128x128xbf16>
    %cst_6 = arith.constant dense<0.000000e+00> : vector<256x128xf32>
    %18 = tpu.matmul %16, %17, %cst_6 {dimension_numbers = #tpu.dot_dimension_numbers<[1], [0], [0], [1], [0, 0, 1, 1], [], []>} : vector<256x128xbf16>, vector<128x128xbf16>, vector<256x128xf32> -> vector<256x128xf32>
    %19 = arith.addf %14, %18 : vector<256x128xf32>
    %20 = vector.extract_strided_slice %3 {offsets = [16, 0], sizes = [256, 128], strides = [1, 1]} : vector<296x128xf32> to vector<256x128xf32>
    %21 = arith.truncf %20 : vector<256x128xf32> to vector<256x128xbf16>
    %c384 = arith.constant 384 : index
    %c0_7 = arith.constant 0 : index
    %22 = vector.load %arg2[%c384, %c0_7] : memref<1152x128xbf16, #tpu.memory_space<vmem>>, vector<128x128xbf16>
    %cst_8 = arith.constant dense<0.000000e+00> : vector<256x128xf32>
    %23 = tpu.matmul %21, %22, %cst_8 {dimension_numbers = #tpu.dot_dimension_numbers<[1], [0], [0], [1], [0, 0, 1, 1], [], []>} : vector<256x128xbf16>, vector<128x128xbf16>, vector<256x128xf32> -> vector<256x128xf32>
    %24 = arith.addf %19, %23 : vector<256x128xf32>
    %25 = vector.extract_strided_slice %3 {offsets = [17, 0], sizes = [256, 128], strides = [1, 1]} : vector<296x128xf32> to vector<256x128xf32>
    %26 = arith.truncf %25 : vector<256x128xf32> to vector<256x128xbf16>
    %c512 = arith.constant 512 : index
    %c0_9 = arith.constant 0 : index
    %27 = vector.load %arg2[%c512, %c0_9] : memref<1152x128xbf16, #tpu.memory_space<vmem>>, vector<128x128xbf16>
    %cst_10 = arith.constant dense<0.000000e+00> : vector<256x128xf32>
    %28 = tpu.matmul %26, %27, %cst_10 {dimension_numbers = #tpu.dot_dimension_numbers<[1], [0], [0], [1], [0, 0, 1, 1], [], []>} : vector<256x128xbf16>, vector<128x128xbf16>, vector<256x128xf32> -> vector<256x128xf32>
    %29 = arith.addf %24, %28 : vector<256x128xf32>
    %30 = vector.extract_strided_slice %3 {offsets = [18, 0], sizes = [256, 128], strides = [1, 1]} : vector<296x128xf32> to vector<256x128xf32>
    %31 = arith.truncf %30 : vector<256x128xf32> to vector<256x128xbf16>
    %c640 = arith.constant 640 : index
    %c0_11 = arith.constant 0 : index
    %32 = vector.load %arg2[%c640, %c0_11] : memref<1152x128xbf16, #tpu.memory_space<vmem>>, vector<128x128xbf16>
    %cst_12 = arith.constant dense<0.000000e+00> : vector<256x128xf32>
    %33 = tpu.matmul %31, %32, %cst_12 {dimension_numbers = #tpu.dot_dimension_numbers<[1], [0], [0], [1], [0, 0, 1, 1], [], []>} : vector<256x128xbf16>, vector<128x128xbf16>, vector<256x128xf32> -> vector<256x128xf32>
    %34 = arith.addf %29, %33 : vector<256x128xf32>
    %35 = vector.extract_strided_slice %3 {offsets = [32, 0], sizes = [256, 128], strides = [1, 1]} : vector<296x128xf32> to vector<256x128xf32>
    %36 = arith.truncf %35 : vector<256x128xf32> to vector<256x128xbf16>
    %c768 = arith.constant 768 : index
    %c0_13 = arith.constant 0 : index
    %37 = vector.load %arg2[%c768, %c0_13] : memref<1152x128xbf16, #tpu.memory_space<vmem>>, vector<128x128xbf16>
    %cst_14 = arith.constant dense<0.000000e+00> : vector<256x128xf32>
    %38 = tpu.matmul %36, %37, %cst_14 {dimension_numbers = #tpu.dot_dimension_numbers<[1], [0], [0], [1], [0, 0, 1, 1], [], []>} : vector<256x128xbf16>, vector<128x128xbf16>, vector<256x128xf32> -> vector<256x128xf32>
    %39 = arith.addf %34, %38 : vector<256x128xf32>
    %40 = vector.extract_strided_slice %3 {offsets = [33, 0], sizes = [256, 128], strides = [1, 1]} : vector<296x128xf32> to vector<256x128xf32>
    %41 = arith.truncf %40 : vector<256x128xf32> to vector<256x128xbf16>
    %c896 = arith.constant 896 : index
    %c0_15 = arith.constant 0 : index
    %42 = vector.load %arg2[%c896, %c0_15] : memref<1152x128xbf16, #tpu.memory_space<vmem>>, vector<128x128xbf16>
    %cst_16 = arith.constant dense<0.000000e+00> : vector<256x128xf32>
    %43 = tpu.matmul %41, %42, %cst_16 {dimension_numbers = #tpu.dot_dimension_numbers<[1], [0], [0], [1], [0, 0, 1, 1], [], []>} : vector<256x128xbf16>, vector<128x128xbf16>, vector<256x128xf32> -> vector<256x128xf32>
    %44 = arith.addf %39, %43 : vector<256x128xf32>
    %45 = vector.extract_strided_slice %3 {offsets = [34, 0], sizes = [256, 128], strides = [1, 1]} : vector<296x128xf32> to vector<256x128xf32>
    %46 = arith.truncf %45 : vector<256x128xf32> to vector<256x128xbf16>
    %c1024 = arith.constant 1024 : index
    %c0_17 = arith.constant 0 : index
    %47 = vector.load %arg2[%c1024, %c0_17] : memref<1152x128xbf16, #tpu.memory_space<vmem>>, vector<128x128xbf16>
    %cst_18 = arith.constant dense<0.000000e+00> : vector<256x128xf32>
    %48 = tpu.matmul %46, %47, %cst_18 {dimension_numbers = #tpu.dot_dimension_numbers<[1], [0], [0], [1], [0, 0, 1, 1], [], []>} : vector<256x128xbf16>, vector<128x128xbf16>, vector<256x128xf32> -> vector<256x128xf32>
    %49 = arith.addf %44, %48 : vector<256x128xf32>
    %c0_19 = arith.constant 0 : index
    %c0_20 = arith.constant 0 : index
    %50 = vector.load %arg3[%c0_19, %c0_20] : memref<1x128xf32, #tpu.memory_space<vmem>>, vector<1x128xf32>
    %51 = vector.broadcast %50 : vector<1x128xf32> to vector<256x128xf32>
    %52 = arith.mulf %49, %51 : vector<256x128xf32>
    %c0_21 = arith.constant 0 : index
    %c0_22 = arith.constant 0 : index
    %53 = vector.load %arg4[%c0_21, %c0_22] : memref<1x128xf32, #tpu.memory_space<vmem>>, vector<1x128xf32>
    %54 = vector.broadcast %53 : vector<1x128xf32> to vector<256x128xf32>
    %55 = arith.addf %52, %54 : vector<256x128xf32>
    %cst_23 = arith.constant 0.000000e+00 : f32
    %56 = vector.broadcast %cst_23 : f32 to vector<256x128xf32>
    %57 = arith.maximumf %55, %56 : vector<256x128xf32>
    %c0_24 = arith.constant 0 : index
    %c0_25 = arith.constant 0 : index
    %58 = vector.load %arg5[%c0_24, %c0_25] : memref<256x128xf32, #tpu.memory_space<vmem>>, vector<256x128xf32>
    tpu.vector_store %arg5[%c0_24, %c0_25], %57 {strides = array<i32>} : memref<256x128xf32, #tpu.memory_space<vmem>>, vector<256x128xf32>,
    return
  }
  func.func @transform_0(%arg0: i32) -> (i32, i32) {
    %c0_i32 = arith.constant 0 : i32
    %c0_i32_0 = arith.constant 0 : i32
    %c0_i32_1 = arith.constant 0 : i32
    return %c0_i32, %c0_i32_0 : i32, i32
  }
  func.func @transform_1(%arg0: i32) -> (i32, i32) {
    %c0_i32 = arith.constant 0 : i32
    %c0_i32_0 = arith.constant 0 : i32
    %c0_i32_1 = arith.constant 0 : i32
    return %c0_i32, %c0_i32_0 : i32, i32
  }
  func.func @transform_2(%arg0: i32) -> (i32, i32) {
    %c0_i32 = arith.constant 0 : i32
    %c0_i32_0 = arith.constant 0 : i32
    %c0_i32_1 = arith.constant 0 : i32
    return %c0_i32, %c0_i32_0 : i32, i32
  }
  func.func @transform_3(%arg0: i32) -> (i32, i32) {
    %c0_i32 = arith.constant 0 : i32
    %c0_i32_0 = arith.constant 0 : i32
    %c0_i32_1 = arith.constant 0 : i32
    return %c0_i32, %c0_i32_0 : i32, i32
  }
  func.func @transform_4(%arg0: i32) -> (i32, i32) {
    %c0_i32 = arith.constant 0 : i32
    %c0_i32_0 = arith.constant 0 : i32
    return %arg0, %c0_i32 : i32, i32
  }
}

</mosaic_0001>

<bundles_post_ra>
// kernel: double_conv_forward.5
= control target key start
LH: loop header
LB: loop body
LE: loop exit
PB: predicated region body
PF: predicated region fallthrough
CT: control target
= control target key end

     0   :  { %s4063_s15 = smov 0   ;;  %s4850_s0 = inlined_call_operand.vmem [shape: f32[552,128], index: 0, kind: input, shape index: {}]   ;;  %s4851_s1 = inlined_call_operand.vmem [shape: bf16[1152,128], index: 1, kind: input, shape index: {}]   ;;  %s4852_s2 = inlined_call_operand.vmem [shape: f32[1,128], index: 2, kind: input, shape index: {}]   ;;  %s4853_s3 = inlined_call_operand.vmem [shape: f32[1,128], index: 3, kind: input, shape index: {}]   ;;  %s4854_s4 = inlined_call_operand.vmem [shape: f32[512,128], index: 4, kind: output, shape index: {}]  }
   0x1 LB: > { %s2939_s16 = sadd.s32 4294967295, %s4036_s15   ;;  %p2942_p0 = scmp.ge.s32.totalorder %s4036_s15, 1  ;;  %s4036_s15 = sphi %s4063_s15, %s14_s15  }
   0x2   : > { %p152_p1 = scmp.lt.s32.totalorder %s4036_s15, 3 }
   0x4   : > { %p153_p2 = pnand %p2942_p0, %p152_p1 }
   0x5   : > { %v3950_v0 = vld [vmem:[%s4851_s1 + $0x40] sm:$0xff] (!%p153_p2)   ;;  %v3952_v2 = vld [vmem:[%s4851_s1 + $0x48] sm:$0xff] (!%p153_p2)   ;;  %v3954_v4 = vld [vmem:[%s4851_s1 + $0x50] sm:$0xff] (!%p153_p2)   ;;  %s2945_s7 = sshll.u32 (!%p153_p2), %s2939_s16, 8  ;;  %vm268_vm0 = vsmask.f32 (!%p153_p2), 7424 }
   0x6   : > { %156 = sbr.rel (%p153_p2) target bundleno = 543 (0x21f), region = 36  ;;  %v3951_v1 = vld [vmem:[%s4851_s1 + $0x100] sm:$0xff] (!%p153_p2)   ;;  %3238 = vmatprep.subr.bf16.mxu1 (!%p153_p2), %v3950_v0  ;;  %v3953_v3 = vld [vmem:[%s4851_s1 + $0x108] sm:$0xff] (!%p153_p2)   ;;  %v3955_v5 = vld [vmem:[%s4851_s1 + $0x110] sm:$0xff] (!%p153_p2)   ;;  %s4106_s14 = scalar_lea.vmem (!%p153_p2), %s4850_s0, %s2945_s7  ;;  %vm868_vm1 = vcmask (!%p153_p2), 1046528  }
   0x7   : > { %3430 = vmatprep.subr.bf16.mxu0 (!%p153_p2), %v3951_v1  ;;  %3239 = vmatpush3.bf16.msra.mxu1 (!%p153_p2), %v3950_v0  ;;  %v3956_v6 = vld [vmem:[%s4851_s1 + $0x58] sm:$0xff] (!%p153_p2)   ;;  %v3958_v8 = vld [vmem:[%s4851_s1 + $0x60] sm:$0xff] (!%p153_p2)   ;;  %v3960_v10 = vld [vmem:[%s4851_s1 + $0x68] sm:$0xff] (!%p153_p2)   ;;  %s2943_s18 = sshll.u32 (!%p153_p2), %s2939_s16, 5 }
   0x8   : > { %3431 = vmatpush3.bf16.msra.mxu0 (!%p153_p2), %v3951_v1  ;;  %3240 = vmatprep.subr.bf16.mxu1 (!%p153_p2), %v3952_v2  ;;  %v3957_v7 = vld [vmem:[%s4851_s1 + $0x118] sm:$0xff] (!%p153_p2)   ;;  %v3959_v9 = vld [vmem:[%s4851_s1 + $0x120] sm:$0xff] (!%p153_p2)   ;;  %v3961_v11 = vld [vmem:[%s4851_s1 + $0x128] sm:$0xff] (!%p153_p2)   ;;  %p174_p3 = scmp.lt.s32.totalorder (!%p153_p2), %s2943_s18, 63 }
   0x9   : > { %3432 = vmatprep.subr.bf16.mxu0 (!%p153_p2), %v3953_v3  ;;  %v182_v12 = vld [vmem:[%s4106_s14] sm:$0xff] (!%p153_p2)  ;;  %v183_v13 = vld [vmem:[%s4106_s14 + $0x8] sm:$0xff] (!%p153_p2)  ;;  %v184_v14 = vld [vmem:[%s4106_s14 + $0x10] sm:$0xff] (!%p153_p2) }
   0xa   : > { %v185_v15 = vld [vmem:[%s4106_s14 + $0x18] sm:$0xff] (!%p153_p2)  ;;  %v4118_v16 = vpack.c.bf16 (!%p153_p2), %v183_v13, %v182_v12  ;;  %v186_v17 = vld [vmem:[%s4106_s14 + $0x20] sm:$0xff] (!%p153_p2)  ;;  %v187_v18 = vld [vmem:[%s4106_s14 + $0x28] sm:$0xff] (!%p153_p2) }
   0xb   : > { %3241 = vmatpush3.bf16.msra.mxu1 (!%p153_p2), %v3952_v2  ;;  %v4122_v19 = vpack.c.bf16 (!%p153_p2), %v185_v15, %v184_v14  ;;  %v4124_v20 = vpack.c.bf16 (!%p153_p2), %v187_v18, %v186_v17  ;;  %v188_v23 = vld [vmem:[%s4106_s14 + $0x30] sm:$0xff] (!%p153_p2)  ;;  %v189_v24 = vld [vmem:[%s4106_s14 + $0x38] sm:$0xff] (!%p153_p2)  ;;  %v190_v34 = vld [vmem:[%s4106_s14 + $0x40] sm:$0xff] (!%p153_p2) }
   0xc   : > { %3433 = vmatpush3.bf16.msra.mxu0 (!%p153_p2), %v3953_v3  ;;  %3242 = vmatprep.subr.bf16.mxu1 (!%p153_p2), %v3954_v4  ;;  %v270_v21 = vshrl.u32 (!%p153_p2), %v4118_v16, 16  ;;  %v272_v22 = vshll.u32 (!%p153_p2), %v4118_v16, 16  ;;  %v3962_v25 = vld [vmem:[%s4851_s1 + $0x70] sm:$0xff] (!%p153_p2)   ;;  %v4136_v29 = vpack.c.bf16 (!%p153_p2), %v189_v24, %v188_v23  ;;  %v191_v35 = vld [vmem:[%s4106_s14 + $0x48] sm:$0xff] (!%p153_p2)  ;;  %v3964_v36 = vld [vmem:[%s4851_s1 + $0x78] sm:$0xff] (!%p153_p2)  }
   0xd   : > { %3434 = vmatprep.subr.bf16.mxu0 %v3955_v5  ;;  %v277_v26 = vshll.u32 %v4122_v19, 16  ;;  %v281_v27 = vshrl.u32 %v4122_v19, 16  ;;  %v285_v28 = vshll.u32 %v4124_v20, 16  ;;  %v3963_v30 = vld [vmem:[%s4851_s1 + $0x130] sm:$0xff]   ;;  %v4146_v38 = vpack.c.bf16 %v191_v35, %v190_v34  ;;  %v193_v43 = vld [vmem:[%s4106_s14 + $0x58] sm:$0xff]  ;;  %v194_v49 = vld [vmem:[%s4106_s14 + $0x60] sm:$0xff] }
   0xe   : > { %v274_v31 = vrot.slane %v272_v22, 1  ;;  %v289_v40 = vshrl.u32 %v4124_v20, 16  ;;  %v293_v41 = vshll.u32 %v4136_v29, 16  ;;  %v192_v42 = vld [vmem:[%s4106_s14 + $0x50] sm:$0xff]  ;;  %v3965_v44 = vld [vmem:[%s4851_s1 + $0x138] sm:$0xff]   ;;  %v297_v46 = vshrl.u32 %v4136_v29, 16 }
   0xf   : > { %3243 = vmatpush3.bf16.msra.mxu1 %v3954_v4  ;;  %v279_v32 = vrot.slane %v277_v26, 1  ;;  %v287_v33 = vrot.slane %v285_v28, 1  ;;  %v301_v48 = vshll.u32 %v4146_v38, 16  ;;  %v4160_v50 = vpack.c.bf16 %v193_v43, %v192_v42  ;;  %v195_v51 = vld [vmem:[%s4106_s14 + $0x68] sm:$0xff]  ;;  %v3966_v52 = vld [vmem:[%s4851_s1] sm:$0xff]   ;;  %v196_v63 = vld [vmem:[%s4106_s14 + $0x70] sm:$0xff] }
  0x10   : > { %3435 = vmatpush3.bf16.msra.mxu0 %v3955_v5  ;;  %3244 = vmatprep.subr.bf16.mxu1 %v3956_v6  ;;  %v275_v37 = vor.u32 %v274_v31, %v270_v21  ;;  %v295_v54 = vrot.slane %v293_v41, 1  ;;  %v3967_v55 = vld [vmem:[%s4851_s1 + $0x140] sm:$0xff]   ;;  %v4169_v56 = vpack.c.bf16 %v195_v51, %v194_v49  ;;  %v3968_v59 = vld [vmem:[%s4851_s1 + $0x148] sm:$0xff]   ;;  %v305_v62 = vshrl.u32 %v4146_v38, 16  ;;  %v197_v0 = vld [vmem:[%s4106_s14 + $0x78] sm:$0xff]  ;;  %s4856_s18 = smov (!%p174_p3, %s2943_s18), 63 }
  0x11   : > { %3436 = vmatprep.subr.bf16.mxu0 %v3957_v7  ;;  %v283_v39 = vor.u32 %v281_v27, %v279_v32  ;;  %v291_v53 = vor.u32 %v289_v40, %v287_v33  ;;  %v303_v58 = vrot.slane %v301_v48, 1  ;;  %v309_v60 = vshll.u32 %v4160_v50, 16  ;;  %v3969_v1 = vld [vmem:[%s4851_s1 + $0x8] sm:$0xff]   ;;  %v198_v4 = vld [vmem:[%s4106_s14 + $0x80] sm:$0xff]  ;;  %v3971_v18 = vld [vmem:[%s4851_s1 + $0x158] sm:$0xff]   ;;  %s2944_s16 = sshll.u32 %s4856_s18, 3 }
  0x12   : > { %v280_v45 = vsel %vm268_vm0, %v275_v37, %v279_v32  ;;  %v299_v57 = vor.u32 %v297_v46, %v295_v54  ;;  %v313_v2 = vshrl.u32 %v4160_v50, 16  ;;  %v317_v3 = vshll.u32 %v4169_v56, 16  ;;  %v200_v23 = vld [vmem:[%s4106_s14 + $0x90] sm:$0xff]  ;;  %v201_v26 = vld [vmem:[%s4106_s14 + $0x98] sm:$0xff]  ;;  %v3973_v32 = vld [vmem:[%s4851_s1 + $0x160] sm:$0xff]   ;;  %s4746_s25 = scalar_lea.vmem %s4854_s4, %s2944_s16 }
  0x13   : > { %3245 = vmatpush3.bf16.msra.mxu1 %v3956_v6  ;;  %3254 = vmatprep.mubr.bf16.mxu1 %v280_v45  ;;  %v288_v47 = vsel %vm268_vm0, %v283_v39, %v287_v33  ;;  %v4176_v61 = vsel %vm268_vm0, %v291_v53, %v295_v54  ;;  %v199_v6 = vld [vmem:[%s4106_s14 + $0x88] sm:$0xff]  ;;  %v321_v21 = vshrl.u32 %v4169_v56, 16  ;;  %v3975_v27 = vld [vmem:[%s4851_s1 + $0x18] sm:$0xff]   ;;  %v4226_v31 = vpack.c.bf16 %v201_v26, %v200_v23  ;;  %v3978_v35 = vld [vmem:[%s4851_s1 + $0x20] sm:$0xff]  }
  0x14   : > { %3437 = vmatpush3.bf16.msra.mxu0 %v3957_v7  ;;  %3246 = vmatprep.subr.bf16.mxu1 %v3958_v8  ;;  %v4188_v5 = vsel %vm268_vm0, %v299_v57, %v303_v58  ;;  %v311_v7 = vrot.slane %v309_v60, 1  ;;  %v319_v13 = vrot.slane %v317_v3, 1  ;;  %v4202_v14 = vpack.c.bf16 %v199_v6, %v198_v4  ;;  %v202_v37 = vld [vmem:[%s4106_s14 + $0xa0] sm:$0xff]  ;;  %v203_v39 = vld [vmem:[%s4106_s14 + $0xa8] sm:$0xff]  ;;  %v205_v45 = vld [vmem:[%s4106_s14 + $0xb8] sm:$0xff] }
  0x15   : > { %3438 = vmatprep.subr.bf16.mxu0 %v3959_v9  ;;  %3446 = vmatprep.mubr.bf16.mxu0 %v288_v47  ;;  %v341_v42 = vshll.u32 %v4226_v31, 16  ;;  %v4250_v46 = vpack.c.bf16 %v203_v39, %v202_v37  ;;  %v870_v48 = vrot.slane %v4122_v19, 1  ;;  %v872_v54 = vrot.slane %v4124_v20, 1  ;;  %v208_v3 = vld [vmem:[%s4106_s14 + $0xd0] sm:$0xff]  ;;  %v209_v4 = vld [vmem:[%s4106_s14 + $0xd8] sm:$0xff]  ;;  %v210_v23 = vld [vmem:[%s4106_s14 + $0xe0] sm:$0xff] }
  0x16   : > { %v315_v12 = vor.u32 %v313_v2, %v311_v7  ;;  %v337_v41 = vshrl.u32 %v4202_v14, 16  ;;  %v345_v60 = vshrl.u32 %v4226_v31, 16  ;;  %v4309_v26 = vld [vmem:[%s4851_s1 + $0x80] sm:$0xff]   ;;  %v213_v39 = vld [vmem:[%s4106_s14 + $0xf8] sm:$0xff] }
  0x17   : > { %3247 = vmatpush3.bf16.msra.mxu1 %v3958_v8  ;;  %v4192_v8 = vpack.c.bf16 %v197_v0, %v196_v63  ;;  %v343_v51 = vrot.slane %v341_v42, 1  ;;  %v349_v57 = vshll.u32 %v4250_v46, 16  ;;  %v353_v0 = vshrl.u32 %v4250_v46, 16 }
  0x18   : > { %3439 = vmatpush3.bf16.msra.mxu0 %v3959_v9  ;;  %3248 = vmatprep.subr.bf16.mxu1 %v3960_v10  ;;  %v307_v9 = vor.u32 %v305_v62, %v303_v58  ;;  %v4215_v24 = vsel %vm268_vm0, %v315_v12, %v319_v13  ;;  %v3982_v58 = vld [vmem:[%s4851_s1 + $0x30] sm:$0xff]   ;;  %v207_v62 = vld [vmem:[%s4106_s14 + $0xc8] sm:$0xff]  ;;  %v4283_v2 = vsel %vm868_vm1, %v870_v48, %v872_v54  ;;  %v876_v12 = vrot.slane %v4146_v38, 1 }
  0x19   : > { %3440 = vmatprep.subr.bf16.mxu0 %v3961_v11  ;;  %v325_v15 = vshll.u32 %v4192_v8, 16  ;;  %v329_v22 = vshrl.u32 %v4192_v8, 16  ;;  %v351_v6 = vrot.slane %v349_v57, 1 }
  0x1a   : > { %v4206_v17 = vsel %vm268_vm0, %v307_v9, %v311_v7  ;;  %v3984_v9 = vld [vmem:[%s4851_s1 + $0x38] sm:$0xff]  }
  0x1b   : > { %3249 = vmatpush3.bf16.msra.mxu1 %v3960_v10  ;;  %v3972_v10 = vld [vmem:[%s4851_s1 + $0x10] sm:$0xff]   ;;  %v327_v28 = vrot.slane %v325_v15, 1  ;;  %v355_v15 = vor.u32 %v353_v0, %v351_v6 }
  0x1c   : > { %3441 = vmatpush3.bf16.msra.mxu0 %v3961_v11  ;;  %3250 = vmatprep.subr.bf16.mxu1 %v3962_v25  ;;  %v3970_v11 = vld [vmem:[%s4851_s1 + $0x150] sm:$0xff]  }
  0x1d   : > { %3442 = vmatprep.subr.bf16.mxu0 %v3963_v30  ;;  %v331_v33 = vor.u32 %v329_v22, %v327_v28 }
  0x1f   : > { %3251 = vmatpush3.bf16.msra.mxu1 %v3962_v25  ;;  %v333_v25 = vshll.u32 %v4202_v14, 16 }
  0x20   : > { %3443 = vmatpush3.bf16.msra.mxu0 %v3963_v30  ;;  %3252 = vmatprep.subr.bf16.mxu1 %v3964_v36  ;;  %v323_v30 = vor.u32 %v321_v21, %v319_v13  ;;  %v3979_v13 = vld [vmem:[%s4851_s1 + $0x180] sm:$0xff]   ;;  %v4301_v21 = vpack.c.bf16 %v209_v4, %v208_v3  ;;  %v3985_v4 = vld [vmem:[%s4851_s1 + $0x198] sm:$0xff]  }
  0x21   : > { %3444 = vmatprep.subr.bf16.mxu0 %v3965_v44  ;;  %v335_v34 = vrot.slane %v333_v25, 1 }
  0x22   : > { %v4240_v40 = vsel %vm268_vm0, %v323_v30, %v327_v28  ;;  %v3981_v28 = vld [vmem:[%s4851_s1 + $0x188] sm:$0xff]  }
  0x23   : > { %3253 = vmatpush3.bf16.msra.mxu1 %v3964_v36  ;;  %v3974_v36 = vld [vmem:[%s4851_s1 + $0x168] sm:$0xff]   ;;  %v4245_v43 = vsel %vm268_vm0, %v331_v33, %v335_v34  ;;  %v339_v49 = vor.u32 %v337_v41, %v335_v34 }
  0x24   : > { %3445 = vmatpush3.bf16.msra.mxu0 %v3965_v44  ;;  %3286 = vmatprep.subr.bf16.mxu1 %v3966_v52  ;;  %v204_v44 = vld [vmem:[%s4106_s14 + $0xb0] sm:$0xff] }
  0x25   : > { %3478 = vmatprep.subr.bf16.mxu0 %v3967_v55  ;;  %v4262_v53 = vpack.c.bf16 %v205_v45, %v204_v44  ;;  %v4276_v63 = vsel %vm268_vm0, %v339_v49, %v343_v51  ;;  %v878_v45 = vrot.slane %v4160_v50, 1 }
  0x26   : > { %3255 = vmatmul.mubr.bf16.vlgmr.msra.gmra.mrb[0].mxu1 %v288_v47  ;;  %v3980_v47 = vld [vmem:[%s4851_s1 + $0x28] sm:$0xff]  }
  0x27   : > { %3447 = vmatmul.mubr.bf16.vlgmr.msra.gmra.mrb[0].mxu0 %v4176_v61  ;;  %3287 = vmatpush3.bf16.msra.mxu1 %v3966_v52  ;;  %v3976_v52 = vld [vmem:[%s4851_s1 + $0x170] sm:$0xff]   ;;  %v361_v22 = vshrl.u32 %v4262_v53, 16 }
  0x28   : > { %3479 = vmatpush3.bf16.msra.mxu0 %v3967_v55  ;;  %3258 = vmatprep.mubr.bf16.mxu1 %v4176_v61  ;;  %v206_v55 = vld [vmem:[%s4106_s14 + $0xc0] sm:$0xff] }
  0x29   : > { %3480 = vmatprep.subr.bf16.mxu0 %v3968_v59  ;;  %3450 = vmatprep.mubr.bf16.mxu0 %v4188_v5  ;;  %v4288_v7 = vpack.c.bf16 %v207_v62, %v206_v55 }
  0x2a   : > { %3288 = vmatprep.subr.bf16.mxu1 %v3969_v1 }
  0x2b   : > { %3289 = vmatpush3.bf16.msra.mxu1 %v3969_v1  ;;  %v357_v1 = vshll.u32 %v4262_v53, 16  ;;  %v365_v25 = vshll.u32 %v4288_v7, 16  ;;  %v369_v30 = vshrl.u32 %v4288_v7, 16 }
  0x2c   : > { %3481 = vmatpush3.bf16.msra.mxu0 %v3968_v59  ;;  %3290 = vmatprep.subr.bf16.mxu1 %v3972_v10  ;;  %v3977_v59 = vld [vmem:[%s4851_s1 + $0x178] sm:$0xff]  }
  0x2d   : > { %3482 = vmatprep.subr.bf16.mxu0 %v3970_v11  ;;  %v367_v41 = vrot.slane %v365_v25, 1 }
  0x2e   : > { %3259 = vmatmul.mubr.bf16.gmra.mrb[4].mxu1 %v4188_v5 }
  0x2f   : > { %3451 = vmatmul.mubr.bf16.gmra.mrb[4].mxu0 %v4206_v17  ;;  %3262 = vmatprep.mubr.bf16.mxu1 %v4206_v17 }
  0x30   : > { %3483 = vmatpush3.bf16.msra.mxu0 %v3970_v11  ;;  %3454 = vmatprep.mubr.bf16.mxu0 %v4215_v24  ;;  %v874_v11 = vrot.slane %v4136_v29, 1 }
  0x31   : > { %3484 = vmatprep.subr.bf16.mxu0 %v3971_v18  ;;  %3291 = vmatpush3.bf16.msra.mxu1 %v3972_v10  ;;  %v347_v10 = vor.u32 %v345_v60, %v343_v51  ;;  %v4354_v60 = vsel %vm868_vm1, %v876_v12, %v878_v45 }
  0x32   : > { %3292 = vmatprep.subr.bf16.mxu1 %v3975_v27  ;;  %v4320_v33 = vsel %vm868_vm1, %v872_v54, %v874_v11  ;;  %v4328_v37 = vsel %vm868_vm1, %v874_v11, %v876_v12  ;;  %v3983_v54 = vld [vmem:[%s4851_s1 + $0x190] sm:$0xff]   ;;  %v882_v11 = vrot.slane %v4192_v8, 1 }
  0x34   : > { %3485 = vmatpush3.bf16.msra.mxu0 %v3971_v18  ;;  %v359_v18 = vrot.slane %v357_v1, 1 }
  0x35   : > { %3486 = vmatprep.subr.bf16.mxu0 %v3973_v32  ;;  %3293 = vmatpush3.bf16.msra.mxu1 %v3975_v27  ;;  %v4312_v27 = vsel %vm268_vm0, %v347_v10, %v351_v6 }
  0x36   : > { %3263 = vmatmul.mubr.bf16.gmra.mrb[8].mxu1 %v4215_v24  ;;  %3294 = vmatprep.subr.bf16.mxu1 %v3978_v35  ;;  %v4323_v34 = vsel %vm268_vm0, %v355_v15, %v359_v18  ;;  %v363_v44 = vor.u32 %v361_v22, %v359_v18  ;;  %v884_v15 = vrot.slane %v4202_v14, 1  ;;  %v3987_v18 = vld [vmem:[%s4851_s1 + $0x1a0] sm:$0xff]  }
  0x37   : > { %3455 = vmatmul.mubr.bf16.gmra.mrb[8].mxu0 %v4240_v40  ;;  %3266 = vmatprep.mubr.bf16.mxu1 %v4240_v40 }
  0x38   : > { %3487 = vmatpush3.bf16.msra.mxu0 %v3973_v32  ;;  %3458 = vmatprep.mubr.bf16.mxu0 %v4245_v43  ;;  %v211_v32 = vld [vmem:[%s4106_s14 + $0xe8] sm:$0xff]  ;;  %v4347_v57 = vsel %vm268_vm0, %v363_v44, %v367_v41 }
  0x39   : > { %3488 = vmatprep.subr.bf16.mxu0 %v3974_v36  ;;  %3295 = vmatpush3.bf16.msra.mxu1 %v3978_v35  ;;  %v373_v35 = vshll.u32 %v4301_v21, 16  ;;  %v4332_v42 = vpack.c.bf16 %v211_v32, %v210_v23 }
  0x3a   : > { %3296 = vmatprep.subr.bf16.mxu1 %v3980_v47 }
  0x3b   : > { %v375_v49 = vrot.slane %v373_v35, 1  ;;  %v381_v55 = vshll.u32 %v4332_v42, 16  ;;  %v385_v0 = vshrl.u32 %v4332_v42, 16  ;;  %v4392_v35 = vsel %vm868_vm1, %v882_v11, %v884_v15 }
  0x3c   : > { %3489 = vmatpush3.bf16.msra.mxu0 %v3974_v36  ;;  %v212_v36 = vld [vmem:[%s4106_s14 + $0xf0] sm:$0xff] }
  0x3d   : > { %3490 = vmatprep.subr.bf16.mxu0 %v3976_v52  ;;  %3297 = vmatpush3.bf16.msra.mxu1 %v3980_v47  ;;  %v371_v47 = vor.u32 %v369_v30, %v367_v41  ;;  %v4339_v51 = vpack.c.bf16 %v213_v39, %v212_v36  ;;  %v383_v6 = vrot.slane %v381_v55, 1  ;;  %v886_v41 = vrot.slane %v4226_v31, 1 }
  0x3e   : > { %3267 = vmatmul.mubr.bf16.gmra.mrb[12].mxu1 %v4245_v43  ;;  %3298 = vmatprep.subr.bf16.mxu1 %v3982_v58 }
  0x3f   : > { %3459 = vmatmul.mubr.bf16.gmra.mrb[12].mxu0 %v4276_v63  ;;  %3270 = vmatprep.mubr.bf16.mxu1 %v4276_v63  ;;  %v4357_v62 = vsel %vm268_vm0, %v371_v47, %v375_v49  ;;  %v389_v1 = vshll.u32 %v4339_v51, 16  ;;  %v387_v12 = vor.u32 %v385_v0, %v383_v6  ;;  %v393_v22 = vshrl.u32 %v4339_v51, 16  ;;  %v3993_v0 = vld [vmem:[%s4851_s1 + $0x1b8] sm:$0xff]  }
  0x40   : > { %3491 = vmatpush3.bf16.msra.mxu0 %v3976_v52  ;;  %3494 = vmatprep.mubr.bf16.mxu0 %v4283_v2  ;;  %v880_v52 = vrot.slane %v4169_v56, 1  ;;  %v898_v44 = vrot.slane %v4339_v51, 1  ;;  %v888_v47 = vrot.slane %v4250_v46, 1  ;;  %v4412_v55 = vsel %vm868_vm1, %v884_v15, %v886_v41 }
  0x41   : > { %3492 = vmatprep.subr.bf16.mxu0 %v3977_v59  ;;  %3299 = vmatpush3.bf16.msra.mxu1 %v3982_v58  ;;  %v377_v58 = vshrl.u32 %v4301_v21, 16  ;;  %v896_v15 = vrot.slane %v4332_v42, 1 }
  0x42   : > { %3300 = vmatprep.subr.bf16.mxu1 %v3984_v9  ;;  %v4362_v3 = vsel %vm868_vm1, %v878_v45, %v880_v52  ;;  %v4386_v30 = vsel %vm868_vm1, %v880_v52, %v882_v11  ;;  %v3988_v11 = vld [vmem:[%s4851_s1 + $0x88] sm:$0xff]  }
  0x43   : > { %v379_v10 = vor.u32 %v377_v58, %v375_v49  ;;  %v3991_v49 = vld [vmem:[%s4851_s1 + $0x1b0] sm:$0xff]   ;;  %v4415_v58 = vsel %vm868_vm1, %v886_v41, %v888_v47  ;;  %v3994_v41 = vld [vmem:[%s4851_s1 + $0xa0] sm:$0xff]  }
  0x44   : > { %3493 = vmatpush3.bf16.msra.mxu0 %v3977_v59  ;;  %v4351_v59 = vld [vmem:[%s4106_s14 + $0x100] sm:$0xff] }
  0x45   : > { %3526 = vmatprep.subr.bf16.mxu0 %v3979_v13  ;;  %3301 = vmatpush3.bf16.msra.mxu1 %v3984_v9  ;;  %v251_v9 = vpack.c.bf16 %v4351_v59, %v4351_v59  ;;  %v4380_v25 = vsel %vm268_vm0, %v379_v10, %v383_v6  ;;  %v3995_v6 = vld [vmem:[%s4851_s1 + $0x1c0] sm:$0xff]  }
  0x46   : > { %3271 = vmatmul.mubr.bf16.gmra.mrb[16].mxu1 %v4312_v27  ;;  %3334 = vmatprep.subr.bf16.mxu1 %v4309_v26 }
  0x47   : > { %3495 = vmatmul.mubr.bf16.vlgmr.msra.gmra.mrb[0].mxu0 %v4320_v33  ;;  %3274 = vmatprep.mubr.bf16.mxu1 %v4323_v34  ;;  %v397_v23 = vshll.u32 %v251_v9, 16  ;;  %v900_v45 = vrot.slane %v251_v9, 1 }
  0x48   : > { %3527 = vmatpush3.bf16.msra.mxu0 %v3979_v13  ;;  %3498 = vmatprep.mubr.bf16.mxu0 %v4328_v37  ;;  %v391_v13 = vrot.slane %v389_v1, 1  ;;  %v890_v1 = vrot.slane %v4262_v53, 1 }
  0x49   : > { %3528 = vmatprep.subr.bf16.mxu0 %v3981_v28  ;;  %v399_v39 = vrot.slane %v397_v23, 1  ;;  %v4407_v52 = vsel %vm868_vm1, %v898_v44, %v900_v45  ;;  %v4474_v45 = vsel %vm868_vm1, %v896_v15, %v898_v44 }
  0x4a   : > { %v4389_v32 = vsel %vm268_vm0, %v387_v12, %v391_v13  ;;  %v4397_v36 = vor.u32 %v393_v22, %v391_v13  ;;  %v4429_v9 = vsel %vm868_vm1, %v888_v47, %v890_v1  ;;  %v894_v12 = vrot.slane %v4301_v21, 1  ;;  %v3990_v13 = vld [vmem:[%s4851_s1 + $0x90] sm:$0xff]  }
  0x4c   : > { %3529 = vmatpush3.bf16.msra.mxu0 %v3981_v28  ;;  %v3989_v28 = vld [vmem:[%s4851_s1 + $0x1a8] sm:$0xff]   ;;  %v4455_v23 = vsel %vm868_vm1, %v894_v12, %v896_v15  ;;  %v4001_v15 = vld [vmem:[%s4851_s1 + $0x1d8] sm:$0xff]  }
  0x4d   : > { %3530 = vmatprep.subr.bf16.mxu0 %v3983_v54 }
  0x4e   : > { %3275 = vmatmul.mubr.bf16.gmra.mrb[20].mxu1 %v4347_v57 }
  0x4f   : > { %3499 = vmatmul.mubr.bf16.gmra.mrb[4].mxu0 %v4354_v60  ;;  %3278 = vmatprep.mubr.bf16.mxu1 %v4357_v62 }
  0x50   : > { %3502 = vmatprep.mubr.bf16.mxu0 %v4362_v3  ;;  %3531 = vmatpush3.bf16.msra.mxu0 %v3983_v54  ;;  %v400_v54 = vsel %vm268_vm0, %v4397_v36, %v399_v39 }
  0x51   : > { %3532 = vmatprep.subr.bf16.mxu0 %v3985_v4 }
  0x54   : > { %3533 = vmatpush3.bf16.msra.mxu0 %v3985_v4  ;;  %v892_v4 = vrot.slane %v4288_v7, 1 }
  0x55   : > { %3534 = vmatprep.subr.bf16.mxu0 %v3987_v18 }
  0x56   : > { %3279 = vmatmul.mubr.bf16.gmra.mrb[24].mxu1 %v4380_v25  ;;  %v4432_v10 = vsel %vm868_vm1, %v890_v1, %v892_v4  ;;  %v4449_v22 = vsel %vm868_vm1, %v892_v4, %v894_v12  ;;  %v4000_v4 = vld [vmem:[%s4851_s1 + $0xb8] sm:$0xff]   ;;  %v3997_v12 = vld [vmem:[%s4851_s1 + $0x1c8] sm:$0xff]  }
  0x57   : > { %3503 = vmatmul.mubr.bf16.gmra.mrb[8].mxu0 %v4386_v30  ;;  %3282 = vmatprep.mubr.bf16.mxu1 %v4389_v32 }
  0x58   : > { %3506 = vmatprep.mubr.bf16.mxu0 %v4392_v35  ;;  %3535 = vmatpush3.bf16.msra.mxu0 %v3987_v18  ;;  %v215_v18 = vld [vmem:[%s4106_s14 + $0x108] sm:$0xff] }
  0x59   : > { %3536 = vmatprep.subr.bf16.mxu0 %v3989_v28 }
  0x5c   : > { %3537 = vmatpush3.bf16.msra.mxu0 %v3989_v28  ;;  %v3992_v28 = vld [vmem:[%s4851_s1 + $0x98] sm:$0xff]  }
  0x5d   : > { %3538 = vmatprep.subr.bf16.mxu0 %v3991_v49 }
  0x5e   : > { %3283 = vmatmul.mubr.bf16.gmra.mrb[28].mxu1 %v400_v54  ;;  %v3996_v54 = vld [vmem:[%s4851_s1 + $0xa8] sm:$0xff]  }
  0x5f   : > { %3507 = vmatmul.mubr.bf16.gmra.mrb[12].mxu0 %v4412_v55  ;;  %3302 = vmatprep.mubr.bf16.mxu1 %v4118_v16 }
  0x60   : > { %3510 = vmatprep.mubr.bf16.mxu0 %v4415_v58  ;;  %3539 = vmatpush3.bf16.msra.mxu0 %v3991_v49 }
  0x61   : > { %3540 = vmatprep.subr.bf16.mxu0 %v3993_v0 }
  0x64   : > { %3541 = vmatpush3.bf16.msra.mxu0 %v3993_v0 }
  0x65   : > { %3574 = vmatprep.subr.bf16.mxu0 %v3995_v6 }
  0x66   : > { %3303 = vmatmul.mubr.bf16.vlgmr.msra.gmra.mrb[0].mxu1 %v4122_v19 }
  0x67   : > { %3511 = vmatmul.mubr.bf16.gmra.mrb[16].mxu0 %v4429_v9  ;;  %3335 = vmatpush3.bf16.msra.mxu1 %v4309_v26  ;;  %v4452_v26 = vpack.c.bf16 %v215_v18, %v4351_v59  ;;  %v4468_v59 = vld [vmem:[%s4106_s14 + $0x110] sm:$0xff]  ;;  %v4005_v18 = vld [vmem:[%s4851_s1 + $0x1e8] sm:$0xff]  }
  0x68   : > { %3306 = vmatprep.mubr.bf16.mxu1 %v4124_v20  ;;  %3514 = vmatprep.mubr.bf16.mxu0 %v4432_v10  ;;  %v4478_v47 = vpack.c.bf16 %v4468_v59, %v4468_v59 }
  0x69   : > { %3336 = vmatprep.subr.bf16.mxu1 %v3988_v11  ;;  %v4465_v39 = vrot.slane %v4452_v26, 1 }
  0x6a   : > { %v1710_v0 = vrot.slane %v4478_v47, 1 }
  0x6b   : > { %3337 = vmatpush3.bf16.msra.mxu1 %v3988_v11  ;;  %v4482_v49 = vsel %vm868_vm1, %v898_v44, %v4465_v39  ;;  %v3998_v44 = vld [vmem:[%s4851_s1 + $0xb0] sm:$0xff]   ;;  %v4002_v11 = vld [vmem:[%s4851_s1 + $0xc0] sm:$0xff]  }
  0x6c   : > { %3338 = vmatprep.subr.bf16.mxu1 %v3990_v13  ;;  %v1711_v1 = vsel %vm868_vm1, %v4465_v39, %v1710_v0  ;;  %v4009_v0 = vld [vmem:[%s4851_s1 + $0x1f8] sm:$0xff]  }
  0x6e   : > { %3307 = vmatmul.mubr.bf16.gmra.mrb[4].mxu1 %v4136_v29 }
  0x6f   : > { %3515 = vmatmul.mubr.bf16.gmra.mrb[20].mxu0 %v4449_v22  ;;  %3310 = vmatprep.mubr.bf16.mxu1 %v4146_v38 }
  0x70   : > { %3518 = vmatprep.mubr.bf16.mxu0 %v4455_v23  ;;  %3339 = vmatpush3.bf16.msra.mxu1 %v3990_v13  ;;  %v3999_v13 = vld [vmem:[%s4851_s1 + $0x1d0] sm:$0xff]  }
  0x71   : > { %3340 = vmatprep.subr.bf16.mxu1 %v3992_v28 }
  0x74   : > { %3341 = vmatpush3.bf16.msra.mxu1 %v3992_v28  ;;  %v869_v28 = vrot.slane %v4118_v16, 1  ;;  %v4011_v16 = vld [vmem:[%s4851_s1 + $0x200] sm:$0xff]  }
  0x75   : > { %3342 = vmatprep.subr.bf16.mxu1 %v3994_v41 }
  0x76   : > { %3311 = vmatmul.mubr.bf16.gmra.mrb[8].mxu1 %v4160_v50 }
  0x77   : > { %3519 = vmatmul.mubr.bf16.gmra.mrb[24].mxu0 %v4474_v45  ;;  %3314 = vmatprep.mubr.bf16.mxu1 %v4169_v56 }
  0x78   : > { %3522 = vmatprep.mubr.bf16.mxu0 %v4482_v49  ;;  %3343 = vmatpush3.bf16.msra.mxu1 %v3994_v41  ;;  %v4007_v41 = vld [vmem:[%s4851_s1 + $0x1f0] sm:$0xff]  }
  0x79   : > { %3344 = vmatprep.subr.bf16.mxu1 %v3996_v54 }
  0x7c   : > { %3345 = vmatpush3.bf16.msra.mxu1 %v3996_v54  ;;  %v871_v54 = vsel %vm868_vm1, %v869_v28, %v870_v48  ;;  %v4004_v48 = vld [vmem:[%s4851_s1 + $0xc8] sm:$0xff]  }
  0x7d   : > { %3346 = vmatprep.subr.bf16.mxu1 %v3998_v44 }
  0x7e   : > { %3315 = vmatmul.mubr.bf16.gmra.mrb[12].mxu1 %v4192_v8 }
  0x7f   : > { %3523 = vmatmul.mubr.bf16.gmra.mrb[28].mxu0 %v1711_v1  ;;  %3318 = vmatprep.mubr.bf16.mxu1 %v4202_v14  ;;  %v4008_v1 = vld [vmem:[%s4851_s1 + $0xd8] sm:$0xff]  }
  0x80   : > { %3542 = vmatprep.mubr.bf16.mxu0 %v4124_v20  ;;  %3347 = vmatpush3.bf16.msra.mxu1 %v3998_v44  ;;  %v4006_v44 = vld [vmem:[%s4851_s1 + $0xd0] sm:$0xff]  }
  0x81   : > { %3348 = vmatprep.subr.bf16.mxu1 %v4000_v4 }
  0x84   : > { %3349 = vmatpush3.bf16.msra.mxu1 %v4000_v4  ;;  %v4012_v4 = vld [vmem:[%s4851_s1 + $0xe8] sm:$0xff]  }
  0x85   : > { %3382 = vmatprep.subr.bf16.mxu1 %v4002_v11 }
  0x86   : > { %3319 = vmatmul.mubr.bf16.gmra.mrb[16].mxu1 %v4226_v31 }
  0x87   : > { %3543 = vmatmul.mubr.bf16.vlgmr.msra.gmra.mrb[0].mxu0 %v4136_v29  ;;  %3322 = vmatprep.mubr.bf16.mxu1 %v4250_v46 }
  0x88   : > { %3575 = vmatpush3.bf16.msra.mxu0 %v3995_v6  ;;  %3546 = vmatprep.mubr.bf16.mxu0 %v4146_v38  ;;  %v4003_v6 = vld [vmem:[%s4851_s1 + $0x1e0] sm:$0xff]  }
  0x89   : > { %3576 = vmatprep.subr.bf16.mxu0 %v3997_v12 }
  0x8c   : > { %3577 = vmatpush3.bf16.msra.mxu0 %v3997_v12  ;;  %v4014_v12 = vld [vmem:[%s4851_s1 + $0xf0] sm:$0xff]  }
  0x8d   : > { %3578 = vmatprep.subr.bf16.mxu0 %v3999_v13 }
  0x8e   : > { %3323 = vmatmul.mubr.bf16.gmra.mrb[20].mxu1 %v4262_v53 }
  0x8f   : > { %3547 = vmatmul.mubr.bf16.gmra.mrb[4].mxu0 %v4160_v50  ;;  %3326 = vmatprep.mubr.bf16.mxu1 %v4288_v7 }
  0x90   : > { %3550 = vmatprep.mubr.bf16.mxu0 %v4169_v56  ;;  %3579 = vmatpush3.bf16.msra.mxu0 %v3999_v13 }
  0x91   : > { %3580 = vmatprep.subr.bf16.mxu0 %v4001_v15 }
  0x94   : > { %3581 = vmatpush3.bf16.msra.mxu0 %v4001_v15  ;;  %v4016_v15 = vld [vmem:[%s4851_s1 + $0xf8] sm:$0xff]  }
  0x95   : > { %3582 = vmatprep.subr.bf16.mxu0 %v4003_v6 }
  0x96   : > { %3327 = vmatmul.mubr.bf16.gmra.mrb[24].mxu1 %v4301_v21 }
  0x97   : > { %3551 = vmatmul.mubr.bf16.gmra.mrb[8].mxu0 %v4192_v8  ;;  %3330 = vmatprep.mubr.bf16.mxu1 %v4332_v42 }
  0x98   : > { %3554 = vmatprep.mubr.bf16.mxu0 %v4202_v14  ;;  %3583 = vmatpush3.bf16.msra.mxu0 %v4003_v6  ;;  %v4022_v6 = vld [vmem:[%s4851_s1 + $0x100] sm:$0xff]  }
  0x99   : > { %3584 = vmatprep.subr.bf16.mxu0 %v4005_v18 }
  0x9c   : > { %3585 = vmatpush3.bf16.msra.mxu0 %v4005_v18  ;;  %v4017_v18 = vld [vmem:[%s4851_s1 + $0x218] sm:$0xff]  }
  0x9d   : > { %3586 = vmatprep.subr.bf16.mxu0 %v4007_v41 }
  0x9e   : > { %3331 = vmatmul.mubr.bf16.gmra.mrb[28].mxu1 %v4339_v51 }
  0x9f   : > { %3555 = vmatmul.mubr.bf16.gmra.mrb[12].mxu0 %v4226_v31  ;;  %3350 = vmatprep.mubr.bf16.mxu1 %v871_v54 }
  0xa0   : > { %3558 = vmatprep.mubr.bf16.mxu0 %v4250_v46  ;;  %3587 = vmatpush3.bf16.msra.mxu0 %v4007_v41 }
  0xa1   : > { %3588 = vmatprep.subr.bf16.mxu0 %v4009_v0 }
  0xa4   : > { %3589 = vmatpush3.bf16.msra.mxu0 %v4009_v0 }
  0xa5   : > { %3622 = vmatprep.subr.bf16.mxu0 %v4011_v16 }
  0xa6   : > { %3351 = vmatmul.mubr.bf16.vlgmr.msra.gmra.mrb[0].mxu1 %v4283_v2  ;;  %v4010_v2 = vld [vmem:[%s4851_s1 + $0xe0] sm:$0xff]  }
  0xa7   : > { %3559 = vmatmul.mubr.bf16.gmra.mrb[16].mxu0 %v4262_v53  ;;  %3383 = vmatpush3.bf16.msra.mxu1 %v4002_v11  ;;  %v217_v11 = vld [vmem:[%s4106_s14 + $0x118] sm:$0xff] }
  0xa8   : > { %3354 = vmatprep.mubr.bf16.mxu1 %v4320_v33  ;;  %3562 = vmatprep.mubr.bf16.mxu0 %v4288_v7  ;;  %v4581_v13 = vpack.c.bf16 %v217_v11, %v4468_v59  ;;  %v4013_v59 = vld [vmem:[%s4851_s1 + $0x208] sm:$0xff]  }
  0xa9   : > { %3384 = vmatprep.subr.bf16.mxu1 %v4004_v48 }
  0xab   : > { %3385 = vmatpush3.bf16.msra.mxu1 %v4004_v48  ;;  %v2235_v48 = vshrl.u32 %v4581_v13, 16 }
  0xac   : > { %3386 = vmatprep.subr.bf16.mxu1 %v4006_v44 }
  0xae   : > { %3355 = vmatmul.mubr.bf16.gmra.mrb[4].mxu1 %v4328_v37 }
  0xaf   : > { %3563 = vmatmul.mubr.bf16.gmra.mrb[20].mxu0 %v4301_v21  ;;  %3358 = vmatprep.mubr.bf16.mxu1 %v4354_v60 }
  0xb0   : > { %3566 = vmatprep.mubr.bf16.mxu0 %v4332_v42  ;;  %3387 = vmatpush3.bf16.msra.mxu1 %v4006_v44 }
  0xb1   : > { %3388 = vmatprep.subr.bf16.mxu1 %v4008_v1 }
  0xb4   : > { %3389 = vmatpush3.bf16.msra.mxu1 %v4008_v1  ;;  %v4026_v1 = vld [vmem:[%s4851_s1 + $0x120] sm:$0xff]  }
  0xb5   : > { %3390 = vmatprep.subr.bf16.mxu1 %v4010_v2 }
  0xb6   : > { %3359 = vmatmul.mubr.bf16.gmra.mrb[8].mxu1 %v4362_v3 }
  0xb7   : > { %3567 = vmatmul.mubr.bf16.gmra.mrb[24].mxu0 %v4339_v51  ;;  %3362 = vmatprep.mubr.bf16.mxu1 %v4386_v30 }
  0xb8   : > { %3570 = vmatprep.mubr.bf16.mxu0 %v4452_v26  ;;  %3391 = vmatpush3.bf16.msra.mxu1 %v4010_v2 }
  0xb9   : > { %3392 = vmatprep.subr.bf16.mxu1 %v4012_v4 }
  0xbc   : > { %3393 = vmatpush3.bf16.msra.mxu1 %v4012_v4  ;;  %v4027_v4 = vld [vmem:[%s4851_s1 + $0x128] sm:$0xff]  }
  0xbd   : > { %3394 = vmatprep.subr.bf16.mxu1 %v4014_v12 }
  0xbe   : > { %3363 = vmatmul.mubr.bf16.gmra.mrb[12].mxu1 %v4392_v35 }
  0xbf   : > { %3571 = vmatmul.mubr.bf16.gmra.mrb[28].mxu0 %v4581_v13  ;;  %3366 = vmatprep.mubr.bf16.mxu1 %v4412_v55 }
  0xc0   : > { %3590 = vmatprep.mubr.bf16.mxu0 %v4176_v61  ;;  %3395 = vmatpush3.bf16.msra.mxu1 %v4014_v12  ;;  %v4015_v61 = vld [vmem:[%s4851_s1 + $0x210] sm:$0xff]  }
  0xc1   : > { %3396 = vmatprep.subr.bf16.mxu1 %v4016_v15  ;;  %v4028_v12 = vld [vmem:[%s4851_s1 + $0x130] sm:$0xff]  }
  0xc4   : > { %3397 = vmatpush3.bf16.msra.mxu1 %v4016_v15 }
  0xc5   : > { %3670 = vmatprep.subr.bf16.mxu1 %v4022_v6 }
  0xc6   : > { %3367 = vmatmul.mubr.bf16.gmra.mrb[16].mxu1 %v4415_v58 }
  0xc7   : > { %3591 = vmatmul.mubr.bf16.vlgmr.msra.gmra.mrb[0].mxu0 %v4188_v5  ;;  %3370 = vmatprep.mubr.bf16.mxu1 %v4429_v9  ;;  %v4018_v5 = vld [vmem:[%s4851_s1 + $0x220] sm:$0xff]  }
  0xc8   : > { %3623 = vmatpush3.bf16.msra.mxu0 %v4011_v16  ;;  %3594 = vmatprep.mubr.bf16.mxu0 %v4206_v17  ;;  %v4019_v17 = vld [vmem:[%s4851_s1 + $0x228] sm:$0xff]   ;;  %v4025_v16 = vld [vmem:[%s4851_s1 + $0x118] sm:$0xff]  }
  0xc9   : > { %3624 = vmatprep.subr.bf16.mxu0 %v4013_v59 }
  0xcc   : > { %3625 = vmatpush3.bf16.msra.mxu0 %v4013_v59 }
  0xcd   : > { %3626 = vmatprep.subr.bf16.mxu0 %v4015_v61 }
  0xce   : > { %3371 = vmatmul.mubr.bf16.gmra.mrb[20].mxu1 %v4432_v10 }
  0xcf   : > { %3595 = vmatmul.mubr.bf16.gmra.mrb[4].mxu0 %v4215_v24  ;;  %3374 = vmatprep.mubr.bf16.mxu1 %v4449_v22  ;;  %v4020_v24 = vld [vmem:[%s4851_s1 + $0x230] sm:$0xff]  }
  0xd0   : > { %3598 = vmatprep.mubr.bf16.mxu0 %v4240_v40  ;;  %3627 = vmatpush3.bf16.msra.mxu0 %v4015_v61  ;;  %v4021_v40 = vld [vmem:[%s4851_s1 + $0x238] sm:$0xff]  }
  0xd1   : > { %3628 = vmatprep.subr.bf16.mxu0 %v4017_v18 }
  0xd4   : > { %3629 = vmatpush3.bf16.msra.mxu0 %v4017_v18 }
  0xd5   : > { %3630 = vmatprep.subr.bf16.mxu0 %v4018_v5 }
  0xd6   : > { %3375 = vmatmul.mubr.bf16.gmra.mrb[24].mxu1 %v4455_v23 }
  0xd7   : > { %3599 = vmatmul.mubr.bf16.gmra.mrb[8].mxu0 %v4245_v43  ;;  %3378 = vmatprep.mubr.bf16.mxu1 %v4474_v45  ;;  %v4023_v43 = vld [vmem:[%s4851_s1 + $0x108] sm:$0xff]  }
  0xd8   : > { %3602 = vmatprep.mubr.bf16.mxu0 %v4276_v63  ;;  %3631 = vmatpush3.bf16.msra.mxu0 %v4018_v5  ;;  %v4024_v63 = vld [vmem:[%s4851_s1 + $0x110] sm:$0xff]  }
  0xd9   : > { %3632 = vmatprep.subr.bf16.mxu0 %v4019_v17 }
  0xdc   : > { %3633 = vmatpush3.bf16.msra.mxu0 %v4019_v17 }
  0xdd   : > { %3634 = vmatprep.subr.bf16.mxu0 %v4020_v24 }
  0xde   : > { %3379 = vmatmul.mubr.bf16.gmra.mrb[28].mxu1 %v4407_v52  ;;  %v2231_v52 = vshll.u32 %v4581_v13, 16 }
  0xdf   : > { %3603 = vmatmul.mubr.bf16.gmra.mrb[12].mxu0 %v4312_v27  ;;  %3398 = vmatprep.mubr.bf16.mxu1 %v4122_v19  ;;  %v1435_v19 = vshll.u32 %v4452_v26, 16 }
  0xe0   : > { %3606 = vmatprep.mubr.bf16.mxu0 %v4323_v34  ;;  %3635 = vmatpush3.bf16.msra.mxu0 %v4020_v24  ;;  %v2233_v0 = vrot.slane %v2231_v52, 1 }
  0xe1   : > { %3636 = vmatprep.subr.bf16.mxu0 %v4021_v40  ;;  %v1437_v28 = vrot.slane %v1435_v19, 1 }
  0xe4   : > { %3637 = vmatpush3.bf16.msra.mxu0 %v4021_v40 }
  0xe6   : > { %3399 = vmatmul.mubr.bf16.vlgmr.msra.gmra.mrb[0].mxu1 %v4124_v20  ;;  %v1439_v20 = vshrl.u32 %v4452_v26, 16 }
  0xe7   : > { %3607 = vmatmul.mubr.bf16.gmra.mrb[16].mxu0 %v4347_v57  ;;  %3678 = vmatpush3.bf16.msra.mxu1 %v4022_v6 }
  0xe8   : > { %3402 = vmatprep.mubr.bf16.mxu1 %v4136_v29  ;;  %3610 = vmatprep.mubr.bf16.mxu0 %v4357_v62  ;;  %v218_v29 = vld [vmem:[%s4106_s14 + $0x120] sm:$0xff]  ;;  %v4650_v54 = vor.u32 %v1439_v20, %v1437_v28 }
  0xe9   : > { %3671 = vmatprep.subr.bf16.mxu1 %v4023_v43  ;;  %v4648_v41 = vpack.c.bf16 %v218_v29, %v218_v29 }
  0xea   : > { %v2234_v44 = vsel %vm268_vm0, %v4650_v54, %v2233_v0 }
  0xeb   : > { %3679 = vmatpush3.bf16.msra.mxu1 %v4023_v43 }
  0xec   : > { %3672 = vmatprep.subr.bf16.mxu1 %v4024_v63 }
  0xee   : > { %3403 = vmatmul.mubr.bf16.gmra.mrb[4].mxu1 %v4146_v38  ;;  %v1438_v38 = vsel %vm268_vm0, %v4397_v36, %v1437_v28  ;;  %v2237_v36 = vor.u32 %v2235_v48, %v2233_v0 }
  0xef   : > { %3611 = vmatmul.mubr.bf16.gmra.mrb[20].mxu0 %v4380_v25  ;;  %3406 = vmatprep.mubr.bf16.mxu1 %v4160_v50  ;;  %v2239_v50 = vshll.u32 %v4648_v41, 16 }
  0xf0   : > { %3614 = vmatprep.mubr.bf16.mxu0 %v4389_v32  ;;  %3680 = vmatpush3.bf16.msra.mxu1 %v4024_v63 }
  0xf1   : > { %3673 = vmatprep.subr.bf16.mxu1 %v4025_v16  ;;  %v2241_v2 = vrot.slane %v2239_v50, 1 }
  0xf3   : > { %v2242_v11 = vsel %vm268_vm0, %v2237_v36, %v2241_v2 }
  0xf4   : > { %3681 = vmatpush3.bf16.msra.mxu1 %v4025_v16 }
  0xf5   : > { %3674 = vmatprep.subr.bf16.mxu1 %v4026_v1 }
  0xf6   : > { %3407 = vmatmul.mubr.bf16.gmra.mrb[8].mxu1 %v4169_v56  ;;  %v4029_v56 = vld [vmem:[%s4851_s1 + $0x138] sm:$0xff]  }
  0xf7   : > { %3615 = vmatmul.mubr.bf16.gmra.mrb[24].mxu0 %v1438_v38  ;;  %3410 = vmatprep.mubr.bf16.mxu1 %v4192_v8  ;;  %v2504_v8 = vrot.slane %v4581_v13, 1 }
  0xf8   : > { %3618 = vmatprep.mubr.bf16.mxu0 %v2234_v44  ;;  %3682 = vmatpush3.bf16.msra.mxu1 %v4026_v1 }
  0xf9   : > { %3675 = vmatprep.subr.bf16.mxu1 %v4027_v4 }
  0xfc   : > { %3683 = vmatpush3.bf16.msra.mxu1 %v4027_v4 }
  0xfd   : > { %3676 = vmatprep.subr.bf16.mxu1 %v4028_v12 }
  0xfe   : > { %3411 = vmatmul.mubr.bf16.gmra.mrb[12].mxu1 %v4202_v14  ;;  %v1443_v14 = vshll.u32 %v4478_v47, 16 }
  0xff   : > { %3619 = vmatmul.mubr.bf16.gmra.mrb[28].mxu0 %v2242_v11  ;;  %3414 = vmatprep.mubr.bf16.mxu1 %v4226_v31  ;;  %v2505_v31 = vsel %vm868_vm1, %v4465_v39, %v2504_v8 }
 0x100   : > { %3638 = vmatprep.mubr.bf16.mxu0 %v4320_v33  ;;  %3684 = vmatpush3.bf16.msra.mxu1 %v4028_v12 }
 0x101   : > { %3677 = vmatprep.subr.bf16.mxu1 %v4029_v56 }
 0x104   : > { %3685 = vmatpush3.bf16.msra.mxu1 %v4029_v56 }
 0x106   : > { %3415 = vmatmul.mubr.bf16.gmra.mrb[16].mxu1 %v4250_v46  ;;  %v1445_v46 = vrot.slane %v1443_v14, 1 }
 0x107   : > { %3639 = vmatmul.mubr.bf16.vlgmr.msra.gmra.mrb[0].mxu0 %v4328_v37  ;;  %3418 = vmatprep.mubr.bf16.mxu1 %v4262_v53  ;;  %v2506_v53 = vrot.slane %v4648_v41, 1 }
 0x108   : > { %3642 = vmatprep.mubr.bf16.mxu0 %v4354_v60 }
 0x10e   : > { %3419 = vmatmul.mubr.bf16.gmra.mrb[20].mxu1 %v4288_v7  ;;  %v1446_v7 = vsel %vm268_vm0, %v4650_v54, %v1445_v46 }
 0x10f   : > { %3643 = vmatmul.mubr.bf16.gmra.mrb[4].mxu0 %v4362_v3  ;;  %3422 = vmatprep.mubr.bf16.mxu1 %v4301_v21  ;;  %v2507_v21 = vsel %vm868_vm1, %v2504_v8, %v2506_v53 }
 0x110   : > { %3646 = vmatprep.mubr.bf16.mxu0 %v4386_v30 }
 0x116   : > { %3423 = vmatmul.mubr.bf16.gmra.mrb[24].mxu1 %v4332_v42 }
 0x117   : > { %3647 = vmatmul.mubr.bf16.gmra.mrb[8].mxu0 %v4392_v35  ;;  %3426 = vmatprep.mubr.bf16.mxu1 %v4339_v51 }
 0x118   : > { %3650 = vmatprep.mubr.bf16.mxu0 %v4412_v55 }
 0x11e   : > { %3427 = vmatmul.mubr.bf16.gmra.mrb[28].mxu1 %v4452_v26 }
 0x11f   : > { %3651 = vmatmul.mubr.bf16.gmra.mrb[12].mxu0 %v4415_v58  ;;  %3462 = vmatprep.mubr.bf16.mxu1 %v4312_v27 }
 0x120   : > { %3654 = vmatprep.mubr.bf16.mxu0 %v4429_v9 }
 0x126   : > { %3463 = vmatmul.mubr.bf16.vlgmr.msra.gmra.mrb[16].mxu1 %v4323_v34 }
 0x127   : > { %3655 = vmatmul.mubr.bf16.gmra.mrb[16].mxu0 %v4432_v10  ;;  %3466 = vmatprep.mubr.bf16.mxu1 %v4347_v57  ;;  %v4732_v10 = vld [vmem:[%s4852_s2] ss:$0 sm:$0xff] }
 0x128   : > { %3658 = vmatprep.mubr.bf16.mxu0 %v4449_v22 }
 0x12e   : > { %3467 = vmatmul.mubr.bf16.gmra.mrb[20].mxu1 %v4357_v62 }
 0x12f   : > { %3659 = vmatmul.mubr.bf16.gmra.mrb[20].mxu0 %v4455_v23  ;;  %3470 = vmatprep.mubr.bf16.mxu1 %v4380_v25  ;;  %v4737_v23 = vld [vmem:[%s4853_s3] ss:$0 sm:$0xff] }
 0x130   : > { %3662 = vmatprep.mubr.bf16.mxu0 %v4474_v45 }
 0x136   : > { %3471 = vmatmul.mubr.bf16.gmra.mrb[24].mxu1 %v4389_v32 }
 0x137   : > { %3663 = vmatmul.mubr.bf16.gmra.mrb[24].mxu0 %v4482_v49  ;;  %3474 = vmatprep.mubr.bf16.mxu1 %v1438_v38 }
 0x138   : > { %3666 = vmatprep.mubr.bf16.mxu0 %v2505_v31 }
 0x13e   : > { %3475 = vmatmul.mubr.bf16.gmra.mrb[28].mxu1 %v1446_v7 }
 0x13f   : > { %3667 = vmatmul.mubr.bf16.gmra.mrb[28].mxu0 %v2507_v21 }
 0x1b9   : > { %v3400_v27 = vpop.f32.mrb[0].mxu1 }
 0x1ba   : > { %v1258_v33 = vpop.f32.mrb[1].mxu1 }
 0x1bb   : > { %v3401_v34 = vpop.f32.mrb[2].mxu1 }
 0x1bc   : > { %v1261_v37 = vpop.f32.mrb[3].mxu1 }
 0x1c1   : > { %v3404_v42 = vpop.f32.mrb[4].mxu1 }
 0x1c2   : > { %v1274_v51 = vpop.f32.mrb[5].mxu1 }
 0x1c3   : > { %v3405_v57 = vpop.f32.mrb[6].mxu1 }
 0x1c4   : > { %v1277_v60 = vpop.f32.mrb[7].mxu1 }
 0x1c9   : > { %v3408_v62 = vpop.f32.mrb[8].mxu1 }
 0x1ca   : > { %v4713_v3 = vpop.f32.mrb[9].mxu1 }
 0x1cb   : > { %v4715_v25 = vpop.f32.mrb[10].mxu1 }
 0x1cc   : > { %v4717_v30 = vpop.f32.mrb[11].mxu1 }
 0x1d1   : > { %v4719_v32 = vpop.f32.mrb[12].mxu1 }
 0x1d2   : > { %v4721_v35 = vpop.f32.mrb[13].mxu1 }
 0x1d3   : > { %v4725_v55 = vpop.f32.mrb[14].mxu1 }
 0x1d4   : > { %v4727_v58 = vpop.f32.mrb[15].mxu1 }
 0x1da   : > { %v3640_v9 = vpop.f32.mrb[0].mxu0 }
 0x1db   : > { %v3686_v22 = vadd.f32 %v3640_v9, %v3400_v27  ;;  %v2592_v26 = vpop.f32.mrb[1].mxu0 }
 0x1dc   : > { %v3687_v39 = vadd.f32 %v2592_v26, %v1258_v33  ;;  %v3641_v45 = vpop.f32.mrb[2].mxu0 }
 0x1dd   : > { %v2760_v47 = vmul.f32 %v3686_v22, %v4732_v10  ;;  %v3688_v49 = vadd.f32 %v3641_v45, %v3401_v34  ;;  %v2595_v13 = vpop.f32.mrb[3].mxu0 }
 0x1de   : > { %v2758_v15 = vmul.f32 %v3687_v39, %v4732_v10  ;;  %v3689_v59 = vadd.f32 %v2595_v13, %v1261_v37 }
 0x1df   : > { %v2799_v6 = vadd.f32 %v4737_v23, %v2760_v47  ;;  %v2761_v61 = vmul.f32 %v3688_v49, %v4732_v10 }
 0x1e0   : > { %v2797_v18 = vadd.f32 %v4737_v23, %v2758_v15  ;;  %v2759_v5 = vmul.f32 %v3689_v59, %v4732_v10 }
 0x1e1   : > { %v2831_v17 = vmax.f32 %v2799_v6, 0.0  ;;  %v2800_v24 = vadd.f32 %v4737_v23, %v2761_v61 }
 0x1e2   : > { %v2829_v40 = vmax.f32 %v2797_v18, 0.0  ;;  %v2798_v43 = vadd.f32 %v4737_v23, %v2759_v5  ;;  %v3644_v19 = vpop.f32.mrb[4].mxu0 }
 0x1e3   : > { %2863 = vst [vmem:[%s4746_s25 + $0x10] sm:$0xff] %v2831_v17  ;;  %v2832_v63 = vmax.f32 %v2800_v24, 0.0  ;;  %v3690_v20 = vadd.f32 %v3644_v19, %v3404_v42  ;;  %v2608_v52 = vpop.f32.mrb[5].mxu0 }
 0x1e4   : > { %2861 = vst [vmem:[%s4746_s25] sm:$0xff] %v2829_v40  ;;  %v2830_v29 = vmax.f32 %v2798_v43, 0.0  ;;  %v3691_v28 = vadd.f32 %v2608_v52, %v1274_v51  ;;  %v3645_v41 = vpop.f32.mrb[6].mxu0 }
 0x1e5   : > { %2864 = vst [vmem:[%s4746_s25 + $0x18] sm:$0xff] %v2832_v63  ;;  %v2764_v54 = vmul.f32 %v3690_v20, %v4732_v10  ;;  %v3692_v0 = vadd.f32 %v3645_v41, %v3405_v57  ;;  %v2611_v16 = vpop.f32.mrb[7].mxu0 }
 0x1e6   : > { %2862 = vst [vmem:[%s4746_s25 + $0x8] sm:$0xff] %v2830_v29  ;;  %v2762_v38 = vmul.f32 %v3691_v28, %v4732_v10  ;;  %v3693_v48 = vadd.f32 %v2611_v16, %v1277_v60 }
 0x1e7   : > { %v2803_v50 = vadd.f32 %v4737_v23, %v2764_v54  ;;  %v2765_v44 = vmul.f32 %v3692_v0, %v4732_v10 }
 0x1e8   : > { %v2801_v1 = vadd.f32 %v4737_v23, %v2762_v38  ;;  %v2763_v36 = vmul.f32 %v3693_v48, %v4732_v10 }
 0x1e9   : > { %v2835_v2 = vmax.f32 %v2803_v50, 0.0  ;;  %v2804_v4 = vadd.f32 %v4737_v23, %v2765_v44 }
 0x1ea   : > { %v2833_v11 = vmax.f32 %v2801_v1, 0.0  ;;  %v2802_v12 = vadd.f32 %v4737_v23, %v2763_v36  ;;  %v3648_v56 = vpop.f32.mrb[8].mxu0 }
 0x1eb   : > { %2867 = vst [vmem:[%s4746_s25 + $0x30] sm:$0xff] %v2835_v2  ;;  %v2836_v8 = vmax.f32 %v2804_v4, 0.0  ;;  %v3694_v14 = vadd.f32 %v3648_v56, %v3408_v62  ;;  %v2624_v31 = vpop.f32.mrb[9].mxu0 }
 0x1ec   : > { %2865 = vst [vmem:[%s4746_s25 + $0x20] sm:$0xff] %v2833_v11  ;;  %v2834_v46 = vmax.f32 %v2802_v12, 0.0  ;;  %v3695_v53 = vadd.f32 %v2624_v31, %v4713_v3  ;;  %v3649_v7 = vpop.f32.mrb[10].mxu0 }
 0x1ed   : > { %2868 = vst [vmem:[%s4746_s25 + $0x38] sm:$0xff] %v2836_v8  ;;  %v2768_v21 = vmul.f32 %v3694_v14, %v4732_v10  ;;  %v3696_v27 = vadd.f32 %v3649_v7, %v4715_v25  ;;  %v2627_v33 = vpop.f32.mrb[11].mxu0 }
 0x1ee   : > { %2866 = vst [vmem:[%s4746_s25 + $0x28] sm:$0xff] %v2834_v46  ;;  %v2766_v34 = vmul.f32 %v3695_v53, %v4732_v10  ;;  %v3697_v37 = vadd.f32 %v2627_v33, %v4717_v30 }
 0x1ef   : > { %v2807_v42 = vadd.f32 %v4737_v23, %v2768_v21  ;;  %v2769_v51 = vmul.f32 %v3696_v27, %v4732_v10 }
 0x1f0   : > { %v2805_v57 = vadd.f32 %v4737_v23, %v2766_v34  ;;  %v2767_v60 = vmul.f32 %v3697_v37, %v4732_v10 }
 0x1f1   : > { %v2839_v62 = vmax.f32 %v2807_v42, 0.0  ;;  %v2808_v3 = vadd.f32 %v4737_v23, %v2769_v51 }
 0x1f2   : > { %v2837_v25 = vmax.f32 %v2805_v57, 0.0  ;;  %v2806_v9 = vadd.f32 %v4737_v23, %v2767_v60  ;;  %v3652_v22 = vpop.f32.mrb[12].mxu0 }
 0x1f3   : > { %2871 = vst [vmem:[%s4746_s25 + $0x50] sm:$0xff] %v2839_v62  ;;  %v2840_v26 = vmax.f32 %v2808_v3, 0.0  ;;  %v3698_v30 = vadd.f32 %v3652_v22, %v4719_v32  ;;  %v2640_v39 = vpop.f32.mrb[13].mxu0 }
 0x1f4   : > { %2869 = vst [vmem:[%s4746_s25 + $0x40] sm:$0xff] %v2837_v25  ;;  %v2838_v45 = vmax.f32 %v2806_v9, 0.0  ;;  %v3699_v47 = vadd.f32 %v2640_v39, %v4721_v35  ;;  %v3653_v49 = vpop.f32.mrb[14].mxu0 }
 0x1f5   : > { %2872 = vst [vmem:[%s4746_s25 + $0x58] sm:$0xff] %v2840_v26  ;;  %v2772_v13 = vmul.f32 %v3698_v30, %v4732_v10  ;;  %v3700_v15 = vadd.f32 %v3653_v49, %v4725_v55  ;;  %v2643_v59 = vpop.f32.mrb[15].mxu0 }
 0x1f6   : > { %2870 = vst [vmem:[%s4746_s25 + $0x48] sm:$0xff] %v2838_v45  ;;  %v2770_v6 = vmul.f32 %v3699_v47, %v4732_v10  ;;  %v3701_v61 = vadd.f32 %v2643_v59, %v4727_v58 }
 0x1f7   : > { %v2811_v32 = vadd.f32 %v4737_v23, %v2772_v13  ;;  %v2773_v18 = vmul.f32 %v3700_v15, %v4732_v10 }
 0x1f8   : > { %v2809_v35 = vadd.f32 %v4737_v23, %v2770_v6  ;;  %v2771_v5 = vmul.f32 %v3701_v61, %v4732_v10 }
 0x1f9   : > { %v2843_v17 = vmax.f32 %v2811_v32, 0.0  ;;  %v2812_v24 = vadd.f32 %v4737_v23, %v2773_v18  ;;  %v3464_v55 = vpop.f32.mrb[16].mxu1 }
 0x1fa   : > { %v2841_v40 = vmax.f32 %v2809_v35, 0.0  ;;  %v2810_v43 = vadd.f32 %v4737_v23, %v2771_v5  ;;  %v3656_v19 = vpop.f32.mrb[16].mxu0  ;;  %v1595_v58 = vpop.f32.mrb[17].mxu1 }
 0x1fb   : > { %2875 = vst [vmem:[%s4746_s25 + $0x70] sm:$0xff] %v2843_v17  ;;  %v2844_v63 = vmax.f32 %v2812_v24, 0.0  ;;  %v3702_v20 = vadd.f32 %v3656_v19, %v3464_v55  ;;  %v2656_v52 = vpop.f32.mrb[17].mxu0  ;;  %v3465_v29 = vpop.f32.mrb[18].mxu1 }
 0x1fc   : > { %2873 = vst [vmem:[%s4746_s25 + $0x60] sm:$0xff] %v2841_v40  ;;  %v2842_v28 = vmax.f32 %v2810_v43, 0.0  ;;  %v3703_v41 = vadd.f32 %v2656_v52, %v1595_v58  ;;  %v3657_v54 = vpop.f32.mrb[18].mxu0  ;;  %v1598_v0 = vpop.f32.mrb[19].mxu1 }
 0x1fd   : > { %2876 = vst [vmem:[%s4746_s25 + $0x78] sm:$0xff] %v2844_v63  ;;  %v2776_v16 = vmul.f32 %v3702_v20, %v4732_v10  ;;  %v3704_v38 = vadd.f32 %v3657_v54, %v3465_v29  ;;  %v2659_v48 = vpop.f32.mrb[19].mxu0 }
 0x1fe   : > { %2874 = vst [vmem:[%s4746_s25 + $0x68] sm:$0xff] %v2842_v28  ;;  %v2774_v50 = vmul.f32 %v3703_v41, %v4732_v10  ;;  %v3705_v44 = vadd.f32 %v2659_v48, %v1598_v0 }
 0x1ff   : > { %v2815_v1 = vadd.f32 %v4737_v23, %v2776_v16  ;;  %v2777_v36 = vmul.f32 %v3704_v38, %v4732_v10 }
 0x200   : > { %v2813_v2 = vadd.f32 %v4737_v23, %v2774_v50  ;;  %v2775_v4 = vmul.f32 %v3705_v44, %v4732_v10 }
 0x201   : > { %v2847_v11 = vmax.f32 %v2815_v1, 0.0  ;;  %v2816_v12 = vadd.f32 %v4737_v23, %v2777_v36  ;;  %v3468_v56 = vpop.f32.mrb[20].mxu1 }
 0x202   : > { %v2845_v8 = vmax.f32 %v2813_v2, 0.0  ;;  %v2814_v14 = vadd.f32 %v4737_v23, %v2775_v4  ;;  %v3660_v31 = vpop.f32.mrb[20].mxu0  ;;  %v1611_v46 = vpop.f32.mrb[21].mxu1 }
 0x203   : > { %2879 = vst [vmem:[%s4746_s25 + $0x90] sm:$0xff] %v2847_v11  ;;  %v2848_v53 = vmax.f32 %v2816_v12, 0.0  ;;  %v3706_v7 = vadd.f32 %v3660_v31, %v3468_v56  ;;  %v2672_v21 = vpop.f32.mrb[21].mxu0  ;;  %v3469_v27 = vpop.f32.mrb[22].mxu1 }
 0x204   : > { %2877 = vst [vmem:[%s4746_s25 + $0x80] sm:$0xff] %v2845_v8  ;;  %v2846_v33 = vmax.f32 %v2814_v14, 0.0  ;;  %v3707_v34 = vadd.f32 %v2672_v21, %v1611_v46  ;;  %v3661_v37 = vpop.f32.mrb[22].mxu0  ;;  %v1614_v42 = vpop.f32.mrb[23].mxu1 }
 0x205   : > { %2880 = vst [vmem:[%s4746_s25 + $0x98] sm:$0xff] %v2848_v53  ;;  %v2780_v51 = vmul.f32 %v3706_v7, %v4732_v10  ;;  %v3708_v57 = vadd.f32 %v3661_v37, %v3469_v27  ;;  %v2675_v60 = vpop.f32.mrb[23].mxu0 }
 0x206   : > { %2878 = vst [vmem:[%s4746_s25 + $0x88] sm:$0xff] %v2846_v33  ;;  %v2778_v62 = vmul.f32 %v3707_v34, %v4732_v10  ;;  %v3709_v3 = vadd.f32 %v2675_v60, %v1614_v42 }
 0x207   : > { %v2819_v25 = vadd.f32 %v4737_v23, %v2780_v51  ;;  %v2781_v9 = vmul.f32 %v3708_v57, %v4732_v10 }
 0x208   : > { %v2817_v22 = vadd.f32 %v4737_v23, %v2778_v62  ;;  %v2779_v26 = vmul.f32 %v3709_v3, %v4732_v10 }
 0x209   : > { %v2851_v30 = vmax.f32 %v2819_v25, 0.0  ;;  %v2820_v39 = vadd.f32 %v4737_v23, %v2781_v9  ;;  %v3472_v45 = vpop.f32.mrb[24].mxu1 }
 0x20a   : > { %v2849_v47 = vmax.f32 %v2817_v22, 0.0  ;;  %v2818_v49 = vadd.f32 %v4737_v23, %v2779_v26  ;;  %v3664_v13 = vpop.f32.mrb[24].mxu0  ;;  %v1627_v15 = vpop.f32.mrb[25].mxu1 }
 0x20b   : > { %2883 = vst [vmem:[%s4746_s25 + $0xb0] sm:$0xff] %v2851_v30  ;;  %v2852_v59 = vmax.f32 %v2820_v39, 0.0  ;;  %v3710_v6 = vadd.f32 %v3664_v13, %v3472_v45  ;;  %v2688_v61 = vpop.f32.mrb[25].mxu0  ;;  %v3473_v32 = vpop.f32.mrb[26].mxu1 }
 0x20c   : > { %2881 = vst [vmem:[%s4746_s25 + $0xa0] sm:$0xff] %v2849_v47  ;;  %v2850_v18 = vmax.f32 %v2818_v49, 0.0  ;;  %v3711_v35 = vadd.f32 %v2688_v61, %v1627_v15  ;;  %v3665_v5 = vpop.f32.mrb[26].mxu0  ;;  %v1630_v17 = vpop.f32.mrb[27].mxu1 }
 0x20d   : > { %2884 = vst [vmem:[%s4746_s25 + $0xb8] sm:$0xff] %v2852_v59  ;;  %v2784_v24 = vmul.f32 %v3710_v6, %v4732_v10  ;;  %v3712_v55 = vadd.f32 %v3665_v5, %v3473_v32  ;;  %v2691_v40 = vpop.f32.mrb[27].mxu0 }
 0x20e   : > { %2882 = vst [vmem:[%s4746_s25 + $0xa8] sm:$0xff] %v2850_v18  ;;  %v2782_v43 = vmul.f32 %v3711_v35, %v4732_v10  ;;  %v3713_v19 = vadd.f32 %v2691_v40, %v1630_v17 }
 0x20f   : > { %v2823_v58 = vadd.f32 %v4737_v23, %v2784_v24  ;;  %v2785_v63 = vmul.f32 %v3712_v55, %v4732_v10 }
 0x210   : > { %v2821_v20 = vadd.f32 %v4737_v23, %v2782_v43  ;;  %v2783_v52 = vmul.f32 %v3713_v19, %v4732_v10 }
 0x211   : > { %v2855_v29 = vmax.f32 %v2823_v58, 0.0  ;;  %v2824_v28 = vadd.f32 %v4737_v23, %v2785_v63  ;;  %v3476_v41 = vpop.f32.mrb[28].mxu1 }
 0x212   : > { %v2853_v54 = vmax.f32 %v2821_v20, 0.0  ;;  %v2822_v0 = vadd.f32 %v4737_v23, %v2783_v52  ;;  %v3668_v16 = vpop.f32.mrb[28].mxu0  ;;  %v1643_v38 = vpop.f32.mrb[29].mxu1 }
 0x213   : > { %2887 = vst [vmem:[%s4746_s25 + $0xd0] sm:$0xff] %v2855_v29  ;;  %v2856_v48 = vmax.f32 %v2824_v28, 0.0  ;;  %v3714_v50 = vadd.f32 %v3668_v16, %v3476_v41  ;;  %v2704_v44 = vpop.f32.mrb[29].mxu0  ;;  %v3477_v1 = vpop.f32.mrb[30].mxu1 }
 0x214   : > { %2885 = vst [vmem:[%s4746_s25 + $0xc0] sm:$0xff] %v2853_v54  ;;  %v2854_v36 = vmax.f32 %v2822_v0, 0.0  ;;  %v3715_v2 = vadd.f32 %v2704_v44, %v1643_v38  ;;  %v3669_v4 = vpop.f32.mrb[30].mxu0  ;;  %v1646_v11 = vpop.f32.mrb[31].mxu1 }
 0x215   : > { %2888 = vst [vmem:[%s4746_s25 + $0xd8] sm:$0xff] %v2856_v48  ;;  %v2788_v12 = vmul.f32 %v3714_v50, %v4732_v10  ;;  %v3716_v56 = vadd.f32 %v3669_v4, %v3477_v1  ;;  %v2707_v8 = vpop.f32.mrb[31].mxu0 }
 0x216   : > { %2886 = vst [vmem:[%s4746_s25 + $0xc8] sm:$0xff] %v2854_v36  ;;  %v2786_v14 = vmul.f32 %v3715_v2, %v4732_v10  ;;  %v3717_v31 = vadd.f32 %v2707_v8, %v1646_v11 }
 0x217   : > { %v2827_v46 = vadd.f32 %v4737_v23, %v2788_v12  ;;  %v2789_v53 = vmul.f32 %v3716_v56, %v4732_v10 }
 0x218   : > { %v2825_v7 = vadd.f32 %v4737_v23, %v2786_v14  ;;  %v2787_v21 = vmul.f32 %v3717_v31, %v4732_v10 }
 0x219   : > { %v2859_v27 = vmax.f32 %v2827_v46, 0.0  ;;  %v2828_v33 = vadd.f32 %v4737_v23, %v2789_v53 }
 0x21a   : > { %v2857_v34 = vmax.f32 %v2825_v7, 0.0  ;;  %v2826_v37 = vadd.f32 %v4737_v23, %v2787_v21 }
 0x21b   : > { %2891 = vst [vmem:[%s4746_s25 + $0xf0] sm:$0xff] %v2859_v27  ;;  %v2860_v42 = vmax.f32 %v2828_v33, 0.0 }
 0x21c   : > { %2889 = vst [vmem:[%s4746_s25 + $0xe0] sm:$0xff] %v2857_v34  ;;  %v2858_v51 = vmax.f32 %v2826_v37, 0.0 }
 0x21d   : > { %2892 = vst [vmem:[%s4746_s25 + $0xf8] sm:$0xff] %v2860_v42 }
 0x21e   : > { %2890 = vst [vmem:[%s4746_s25 + $0xe8] sm:$0xff] %v2858_v51 }
 0x21f PF: > { %s14_s15 = sadd.s32 1, %s4036_s15  }
 0x220   : > { %p11_p4 = scmp.ge.s32.totalorder %s14_s15, 4  }
 0x222   :  { %13 = sbr.rel (!%p11_p4) target bundleno = 1 (0x1), region = 64 }

// kernel: double_conv_forward.4
= control target key start
LH: loop header
LB: loop body
LE: loop exit
PB: predicated region body
PF: predicated region fallthrough
CT: control target
= control target key end

     0   :  { %s4294_s15 = smov 0   ;;  %s5141_s0 = inlined_call_operand.vmem [shape: f32[552,128], index: 0, kind: input, shape index: {}]   ;;  %s5142_s1 = inlined_call_operand.vmem [shape: bf16[1152,128], index: 1, kind: input, shape index: {}]   ;;  %s5143_s2 = inlined_call_operand.vmem [shape: f32[512,1], index: 2, kind: input, shape index: {}]   ;;  %s5144_s3 = inlined_call_operand.vmem [shape: f32[1,128], index: 3, kind: output, shape index: {0}]   ;;  %s5145_s4 = inlined_call_operand.vmem [shape: f32[1,128], index: 4, kind: output, shape index: {1}]  }
   0x1 LB: > { %s4300_s16 = sadd.s32 4294967295, %s4265_s15   ;;  %p3168_p0 = scmp.ge.s32.totalorder %s4265_s15, 1  ;;  %s4265_s15 = sphi %s4294_s15, %s15_s15  }
   0x2   : > { %p156_p1 = scmp.lt.s32.totalorder %s4265_s15, 3 }
   0x4   : > { %p157_p2 = pnand %p3168_p0, %p156_p1 }
   0x5   : > { %s3169_s17 = sshll.u32 (!%p157_p2), %s4300_s16, 5  ;;  %p3171_p4 = scmp.ne.s32.totalorder (!%p157_p2), %s4300_s16, 0 }
   0x6   : > { %160 = sbr.rel (%p157_p2) target bundleno = 575 (0x23f), region = 32  ;;  %p178_p3 = scmp.lt.s32.totalorder (!%p157_p2), %s3169_s17, 63 }
   0xd   : > { %s5147_s17 = smov (!%p178_p3, %s3169_s17), 63  ;;  %187 = sbr.rel (%p3171_p4) target bundleno = 20 (0x14), region = 36 }
   0xe   : > { %s3170_s18 = sshll.u32 %s5147_s17, 3  ;;  %v4267_v0 = vmov (!%p3171_p4), 0.0  }
   0xf   : > { %s4308_s21 = scalar_lea.vmem %s5143_s2, %s3170_s18  ;;  %188 = vst [vmem:[%s5144_s3] sm:$0x1] (!%p3171_p4), %v4267_v0  ;;  %189 = vst [vmem:[%s5145_s4] sm:$0x1] (!%p3171_p4), %v4267_v0 }
  0x14 PF: > { %v4179_v1 = vld [vmem:[%s5142_s1 + $0x40] sm:$0xff]   ;;  %v4181_v3 = vld [vmem:[%s5142_s1 + $0x48] sm:$0xff]   ;;  %v4183_v5 = vld [vmem:[%s5142_s1 + $0x50] sm:$0xff]   ;;  %s3172_s18 = sshll.u32 %s4300_s16, 8  ;;  %vm278_vm0 = vsmask.f32 7424 }
  0x15   : > { %v4180_v2 = vld [vmem:[%s5142_s1 + $0x100] sm:$0xff]   ;;  %3463 = vmatprep.subr.bf16.mxu1 %v4179_v1  ;;  %v4182_v4 = vld [vmem:[%s5142_s1 + $0x108] sm:$0xff]   ;;  %v4184_v6 = vld [vmem:[%s5142_s1 + $0x110] sm:$0xff]   ;;  %s4351_s26 = scalar_lea.vmem %s5141_s0, %s3172_s18  ;;  %vm878_vm1 = vcmask 1046528  }
  0x16   : > { %3655 = vmatprep.subr.bf16.mxu0 %v4180_v2  ;;  %3464 = vmatpush3.bf16.msra.mxu1 %v4179_v1  ;;  %v4185_v7 = vld [vmem:[%s5142_s1 + $0x58] sm:$0xff]   ;;  %v4187_v9 = vld [vmem:[%s5142_s1 + $0x60] sm:$0xff]   ;;  %v4189_v11 = vld [vmem:[%s5142_s1 + $0x68] sm:$0xff]  }
  0x17   : > { %3656 = vmatpush3.bf16.msra.mxu0 %v4180_v2  ;;  %3465 = vmatprep.subr.bf16.mxu1 %v4181_v3  ;;  %v4186_v8 = vld [vmem:[%s5142_s1 + $0x118] sm:$0xff]   ;;  %v4188_v10 = vld [vmem:[%s5142_s1 + $0x120] sm:$0xff]   ;;  %v4190_v12 = vld [vmem:[%s5142_s1 + $0x128] sm:$0xff]  }
  0x18   : > { %3657 = vmatprep.subr.bf16.mxu0 %v4182_v4  ;;  %v192_v13 = vld [vmem:[%s4351_s26] sm:$0xff]  ;;  %v193_v14 = vld [vmem:[%s4351_s26 + $0x8] sm:$0xff]  ;;  %v194_v15 = vld [vmem:[%s4351_s26 + $0x10] sm:$0xff] }
  0x19   : > { %v195_v16 = vld [vmem:[%s4351_s26 + $0x18] sm:$0xff]  ;;  %v4363_v17 = vpack.c.bf16 %v193_v14, %v192_v13  ;;  %v196_v18 = vld [vmem:[%s4351_s26 + $0x20] sm:$0xff]  ;;  %v197_v19 = vld [vmem:[%s4351_s26 + $0x28] sm:$0xff] }
  0x1a   : > { %3466 = vmatpush3.bf16.msra.mxu1 %v4181_v3  ;;  %v4367_v20 = vpack.c.bf16 %v195_v16, %v194_v15  ;;  %v4369_v21 = vpack.c.bf16 %v197_v19, %v196_v18  ;;  %v198_v24 = vld [vmem:[%s4351_s26 + $0x30] sm:$0xff]  ;;  %v199_v25 = vld [vmem:[%s4351_s26 + $0x38] sm:$0xff]  ;;  %v200_v35 = vld [vmem:[%s4351_s26 + $0x40] sm:$0xff] }
  0x1b   : > { %3658 = vmatpush3.bf16.msra.mxu0 %v4182_v4  ;;  %3467 = vmatprep.subr.bf16.mxu1 %v4183_v5  ;;  %v280_v22 = vshrl.u32 %v4363_v17, 16  ;;  %v282_v23 = vshll.u32 %v4363_v17, 16  ;;  %v4191_v26 = vld [vmem:[%s5142_s1 + $0x70] sm:$0xff]   ;;  %v4381_v30 = vpack.c.bf16 %v199_v25, %v198_v24  ;;  %v201_v36 = vld [vmem:[%s4351_s26 + $0x48] sm:$0xff]  ;;  %v4193_v37 = vld [vmem:[%s5142_s1 + $0x78] sm:$0xff]  }
  0x1c   : > { %3659 = vmatprep.subr.bf16.mxu0 %v4184_v6  ;;  %v287_v27 = vshll.u32 %v4367_v20, 16  ;;  %v291_v28 = vshrl.u32 %v4367_v20, 16  ;;  %v295_v29 = vshll.u32 %v4369_v21, 16  ;;  %v4192_v31 = vld [vmem:[%s5142_s1 + $0x130] sm:$0xff]   ;;  %v4391_v39 = vpack.c.bf16 %v201_v36, %v200_v35  ;;  %v203_v44 = vld [vmem:[%s4351_s26 + $0x58] sm:$0xff]  ;;  %v204_v50 = vld [vmem:[%s4351_s26 + $0x60] sm:$0xff] }
  0x1d   : > { %v284_v32 = vrot.slane %v282_v23, 1  ;;  %v299_v41 = vshrl.u32 %v4369_v21, 16  ;;  %v303_v42 = vshll.u32 %v4381_v30, 16  ;;  %v202_v43 = vld [vmem:[%s4351_s26 + $0x50] sm:$0xff]  ;;  %v4194_v45 = vld [vmem:[%s5142_s1 + $0x138] sm:$0xff]   ;;  %v307_v47 = vshrl.u32 %v4381_v30, 16 }
  0x1e   : > { %3468 = vmatpush3.bf16.msra.mxu1 %v4183_v5  ;;  %v289_v33 = vrot.slane %v287_v27, 1  ;;  %v297_v34 = vrot.slane %v295_v29, 1  ;;  %v311_v49 = vshll.u32 %v4391_v39, 16  ;;  %v4405_v51 = vpack.c.bf16 %v203_v44, %v202_v43  ;;  %v205_v52 = vld [vmem:[%s4351_s26 + $0x68] sm:$0xff]  ;;  %v4195_v53 = vld [vmem:[%s5142_s1] sm:$0xff]   ;;  %v206_v0 = vld [vmem:[%s4351_s26 + $0x70] sm:$0xff] }
  0x1f   : > { %3660 = vmatpush3.bf16.msra.mxu0 %v4184_v6  ;;  %3469 = vmatprep.subr.bf16.mxu1 %v4185_v7  ;;  %v285_v38 = vor.u32 %v284_v32, %v280_v22  ;;  %v305_v55 = vrot.slane %v303_v42, 1  ;;  %v4196_v56 = vld [vmem:[%s5142_s1 + $0x140] sm:$0xff]   ;;  %v4414_v57 = vpack.c.bf16 %v205_v52, %v204_v50  ;;  %v4197_v60 = vld [vmem:[%s5142_s1 + $0x148] sm:$0xff]   ;;  %v315_v63 = vshrl.u32 %v4391_v39, 16  ;;  %v207_v1 = vld [vmem:[%s4351_s26 + $0x78] sm:$0xff] }
  0x20   : > { %3661 = vmatprep.subr.bf16.mxu0 %v4186_v8  ;;  %v293_v40 = vor.u32 %v291_v28, %v289_v33  ;;  %v301_v54 = vor.u32 %v299_v41, %v297_v34  ;;  %v313_v59 = vrot.slane %v311_v49, 1  ;;  %v319_v61 = vshll.u32 %v4405_v51, 16  ;;  %v4198_v2 = vld [vmem:[%s5142_s1 + $0x8] sm:$0xff]   ;;  %v208_v5 = vld [vmem:[%s4351_s26 + $0x80] sm:$0xff]  ;;  %v4200_v19 = vld [vmem:[%s5142_s1 + $0x158] sm:$0xff]  }
  0x21   : > { %v290_v46 = vsel %vm278_vm0, %v285_v38, %v289_v33  ;;  %v309_v58 = vor.u32 %v307_v47, %v305_v55  ;;  %v323_v3 = vshrl.u32 %v4405_v51, 16  ;;  %v327_v4 = vshll.u32 %v4414_v57, 16  ;;  %v210_v24 = vld [vmem:[%s4351_s26 + $0x90] sm:$0xff]  ;;  %v211_v27 = vld [vmem:[%s4351_s26 + $0x98] sm:$0xff]  ;;  %v4202_v33 = vld [vmem:[%s5142_s1 + $0x160] sm:$0xff]  }
  0x22   : > { %3470 = vmatpush3.bf16.msra.mxu1 %v4185_v7  ;;  %3479 = vmatprep.mubr.bf16.mxu1 %v290_v46  ;;  %v298_v48 = vsel %vm278_vm0, %v293_v40, %v297_v34  ;;  %v4421_v62 = vsel %vm278_vm0, %v301_v54, %v305_v55  ;;  %v209_v7 = vld [vmem:[%s4351_s26 + $0x88] sm:$0xff]  ;;  %v331_v22 = vshrl.u32 %v4414_v57, 16  ;;  %v4204_v28 = vld [vmem:[%s5142_s1 + $0x18] sm:$0xff]   ;;  %v4471_v32 = vpack.c.bf16 %v211_v27, %v210_v24  ;;  %v4207_v36 = vld [vmem:[%s5142_s1 + $0x20] sm:$0xff]  }
  0x23   : > { %3662 = vmatpush3.bf16.msra.mxu0 %v4186_v8  ;;  %3471 = vmatprep.subr.bf16.mxu1 %v4187_v9  ;;  %v4433_v6 = vsel %vm278_vm0, %v309_v58, %v313_v59  ;;  %v321_v8 = vrot.slane %v319_v61, 1  ;;  %v329_v14 = vrot.slane %v327_v4, 1  ;;  %v4447_v15 = vpack.c.bf16 %v209_v7, %v208_v5  ;;  %v212_v38 = vld [vmem:[%s4351_s26 + $0xa0] sm:$0xff]  ;;  %v213_v40 = vld [vmem:[%s4351_s26 + $0xa8] sm:$0xff]  ;;  %v215_v46 = vld [vmem:[%s4351_s26 + $0xb8] sm:$0xff] }
  0x24   : > { %3663 = vmatprep.subr.bf16.mxu0 %v4188_v10  ;;  %3671 = vmatprep.mubr.bf16.mxu0 %v298_v48  ;;  %v351_v43 = vshll.u32 %v4471_v32, 16  ;;  %v4495_v47 = vpack.c.bf16 %v213_v40, %v212_v38  ;;  %v880_v49 = vrot.slane %v4367_v20, 1  ;;  %v882_v55 = vrot.slane %v4369_v21, 1  ;;  %v218_v4 = vld [vmem:[%s4351_s26 + $0xd0] sm:$0xff]  ;;  %v219_v5 = vld [vmem:[%s4351_s26 + $0xd8] sm:$0xff]  ;;  %v220_v24 = vld [vmem:[%s4351_s26 + $0xe0] sm:$0xff] }
  0x25   : > { %v325_v13 = vor.u32 %v323_v3, %v321_v8  ;;  %v347_v42 = vshrl.u32 %v4447_v15, 16  ;;  %v355_v61 = vshrl.u32 %v4471_v32, 16  ;;  %v4554_v27 = vld [vmem:[%s5142_s1 + $0x80] sm:$0xff]   ;;  %v223_v40 = vld [vmem:[%s4351_s26 + $0xf8] sm:$0xff] }
  0x26   : > { %3472 = vmatpush3.bf16.msra.mxu1 %v4187_v9  ;;  %v4437_v9 = vpack.c.bf16 %v207_v1, %v206_v0  ;;  %v353_v52 = vrot.slane %v351_v43, 1  ;;  %v359_v58 = vshll.u32 %v4495_v47, 16  ;;  %v363_v1 = vshrl.u32 %v4495_v47, 16 }
  0x27   : > { %3664 = vmatpush3.bf16.msra.mxu0 %v4188_v10  ;;  %3473 = vmatprep.subr.bf16.mxu1 %v4189_v11  ;;  %v317_v10 = vor.u32 %v315_v63, %v313_v59  ;;  %v4460_v25 = vsel %vm278_vm0, %v325_v13, %v329_v14  ;;  %v4211_v59 = vld [vmem:[%s5142_s1 + $0x30] sm:$0xff]   ;;  %v217_v63 = vld [vmem:[%s4351_s26 + $0xc8] sm:$0xff]  ;;  %v4528_v3 = vsel %vm878_vm1, %v880_v49, %v882_v55  ;;  %v886_v13 = vrot.slane %v4391_v39, 1 }
  0x28   : > { %3665 = vmatprep.subr.bf16.mxu0 %v4190_v12  ;;  %v335_v16 = vshll.u32 %v4437_v9, 16  ;;  %v339_v23 = vshrl.u32 %v4437_v9, 16  ;;  %v361_v7 = vrot.slane %v359_v58, 1 }
  0x29   : > { %v4451_v18 = vsel %vm278_vm0, %v317_v10, %v321_v8  ;;  %v4213_v10 = vld [vmem:[%s5142_s1 + $0x38] sm:$0xff]  }
  0x2a   : > { %3474 = vmatpush3.bf16.msra.mxu1 %v4189_v11  ;;  %v4201_v11 = vld [vmem:[%s5142_s1 + $0x10] sm:$0xff]   ;;  %v337_v29 = vrot.slane %v335_v16, 1  ;;  %v365_v16 = vor.u32 %v363_v1, %v361_v7 }
  0x2b   : > { %3666 = vmatpush3.bf16.msra.mxu0 %v4190_v12  ;;  %3475 = vmatprep.subr.bf16.mxu1 %v4191_v26  ;;  %v4199_v12 = vld [vmem:[%s5142_s1 + $0x150] sm:$0xff]  }
  0x2c   : > { %3667 = vmatprep.subr.bf16.mxu0 %v4192_v31  ;;  %v341_v34 = vor.u32 %v339_v23, %v337_v29 }
  0x2e   : > { %3476 = vmatpush3.bf16.msra.mxu1 %v4191_v26  ;;  %v343_v26 = vshll.u32 %v4447_v15, 16 }
  0x2f   : > { %3668 = vmatpush3.bf16.msra.mxu0 %v4192_v31  ;;  %3477 = vmatprep.subr.bf16.mxu1 %v4193_v37  ;;  %v333_v31 = vor.u32 %v331_v22, %v329_v14  ;;  %v4208_v14 = vld [vmem:[%s5142_s1 + $0x180] sm:$0xff]   ;;  %v4546_v22 = vpack.c.bf16 %v219_v5, %v218_v4  ;;  %v4214_v5 = vld [vmem:[%s5142_s1 + $0x198] sm:$0xff]  }
  0x30   : > { %3669 = vmatprep.subr.bf16.mxu0 %v4194_v45  ;;  %v345_v35 = vrot.slane %v343_v26, 1 }
  0x31   : > { %v4485_v41 = vsel %vm278_vm0, %v333_v31, %v337_v29  ;;  %v4210_v29 = vld [vmem:[%s5142_s1 + $0x188] sm:$0xff]  }
  0x32   : > { %3478 = vmatpush3.bf16.msra.mxu1 %v4193_v37  ;;  %v4203_v37 = vld [vmem:[%s5142_s1 + $0x168] sm:$0xff]   ;;  %v4490_v44 = vsel %vm278_vm0, %v341_v34, %v345_v35  ;;  %v349_v50 = vor.u32 %v347_v42, %v345_v35 }
  0x33   : > { %3670 = vmatpush3.bf16.msra.mxu0 %v4194_v45  ;;  %3511 = vmatprep.subr.bf16.mxu1 %v4195_v53  ;;  %v214_v45 = vld [vmem:[%s4351_s26 + $0xb0] sm:$0xff] }
  0x34   : > { %3703 = vmatprep.subr.bf16.mxu0 %v4196_v56  ;;  %v4507_v54 = vpack.c.bf16 %v215_v46, %v214_v45  ;;  %v4521_v0 = vsel %vm278_vm0, %v349_v50, %v353_v52  ;;  %v888_v46 = vrot.slane %v4405_v51, 1 }
  0x35   : > { %3480 = vmatmul.mubr.bf16.vlgmr.msra.gmra.mrb[0].mxu1 %v298_v48  ;;  %v4209_v48 = vld [vmem:[%s5142_s1 + $0x28] sm:$0xff]  }
  0x36   : > { %3672 = vmatmul.mubr.bf16.vlgmr.msra.gmra.mrb[0].mxu0 %v4421_v62  ;;  %3512 = vmatpush3.bf16.msra.mxu1 %v4195_v53  ;;  %v4205_v53 = vld [vmem:[%s5142_s1 + $0x170] sm:$0xff]   ;;  %v371_v23 = vshrl.u32 %v4507_v54, 16 }
  0x37   : > { %3704 = vmatpush3.bf16.msra.mxu0 %v4196_v56  ;;  %3483 = vmatprep.mubr.bf16.mxu1 %v4421_v62  ;;  %v216_v56 = vld [vmem:[%s4351_s26 + $0xc0] sm:$0xff] }
  0x38   : > { %3705 = vmatprep.subr.bf16.mxu0 %v4197_v60  ;;  %3675 = vmatprep.mubr.bf16.mxu0 %v4433_v6  ;;  %v4533_v8 = vpack.c.bf16 %v217_v63, %v216_v56 }
  0x39   : > { %3513 = vmatprep.subr.bf16.mxu1 %v4198_v2 }
  0x3a   : > { %3514 = vmatpush3.bf16.msra.mxu1 %v4198_v2  ;;  %v367_v2 = vshll.u32 %v4507_v54, 16  ;;  %v375_v26 = vshll.u32 %v4533_v8, 16  ;;  %v379_v31 = vshrl.u32 %v4533_v8, 16 }
  0x3b   : > { %3706 = vmatpush3.bf16.msra.mxu0 %v4197_v60  ;;  %3515 = vmatprep.subr.bf16.mxu1 %v4201_v11  ;;  %v4206_v60 = vld [vmem:[%s5142_s1 + $0x178] sm:$0xff]  }
  0x3c   : > { %3707 = vmatprep.subr.bf16.mxu0 %v4199_v12  ;;  %v377_v42 = vrot.slane %v375_v26, 1 }
  0x3d   : > { %3484 = vmatmul.mubr.bf16.gmra.mrb[4].mxu1 %v4433_v6 }
  0x3e   : > { %3676 = vmatmul.mubr.bf16.gmra.mrb[4].mxu0 %v4451_v18  ;;  %3487 = vmatprep.mubr.bf16.mxu1 %v4451_v18 }
  0x3f   : > { %3708 = vmatpush3.bf16.msra.mxu0 %v4199_v12  ;;  %3679 = vmatprep.mubr.bf16.mxu0 %v4460_v25  ;;  %v884_v12 = vrot.slane %v4381_v30, 1 }
  0x40   : > { %3709 = vmatprep.subr.bf16.mxu0 %v4200_v19  ;;  %3516 = vmatpush3.bf16.msra.mxu1 %v4201_v11  ;;  %v357_v11 = vor.u32 %v355_v61, %v353_v52  ;;  %v4599_v61 = vsel %vm878_vm1, %v886_v13, %v888_v46 }
  0x41   : > { %3517 = vmatprep.subr.bf16.mxu1 %v4204_v28  ;;  %v4565_v34 = vsel %vm878_vm1, %v882_v55, %v884_v12  ;;  %v4573_v38 = vsel %vm878_vm1, %v884_v12, %v886_v13  ;;  %v4212_v55 = vld [vmem:[%s5142_s1 + $0x190] sm:$0xff]   ;;  %v892_v12 = vrot.slane %v4437_v9, 1 }
  0x43   : > { %3710 = vmatpush3.bf16.msra.mxu0 %v4200_v19  ;;  %v369_v19 = vrot.slane %v367_v2, 1 }
  0x44   : > { %3711 = vmatprep.subr.bf16.mxu0 %v4202_v33  ;;  %3518 = vmatpush3.bf16.msra.mxu1 %v4204_v28  ;;  %v4557_v28 = vsel %vm278_vm0, %v357_v11, %v361_v7 }
  0x45   : > { %3488 = vmatmul.mubr.bf16.gmra.mrb[8].mxu1 %v4460_v25  ;;  %3519 = vmatprep.subr.bf16.mxu1 %v4207_v36  ;;  %v4568_v35 = vsel %vm278_vm0, %v365_v16, %v369_v19  ;;  %v373_v45 = vor.u32 %v371_v23, %v369_v19  ;;  %v894_v16 = vrot.slane %v4447_v15, 1  ;;  %v4216_v19 = vld [vmem:[%s5142_s1 + $0x1a0] sm:$0xff]  }
  0x46   : > { %3680 = vmatmul.mubr.bf16.gmra.mrb[8].mxu0 %v4485_v41  ;;  %3491 = vmatprep.mubr.bf16.mxu1 %v4485_v41 }
  0x47   : > { %3712 = vmatpush3.bf16.msra.mxu0 %v4202_v33  ;;  %3683 = vmatprep.mubr.bf16.mxu0 %v4490_v44  ;;  %v221_v33 = vld [vmem:[%s4351_s26 + $0xe8] sm:$0xff]  ;;  %v4592_v58 = vsel %vm278_vm0, %v373_v45, %v377_v42 }
  0x48   : > { %3713 = vmatprep.subr.bf16.mxu0 %v4203_v37  ;;  %3520 = vmatpush3.bf16.msra.mxu1 %v4207_v36  ;;  %v383_v36 = vshll.u32 %v4546_v22, 16  ;;  %v4577_v43 = vpack.c.bf16 %v221_v33, %v220_v24 }
  0x49   : > { %3521 = vmatprep.subr.bf16.mxu1 %v4209_v48 }
  0x4a   : > { %v385_v50 = vrot.slane %v383_v36, 1  ;;  %v391_v56 = vshll.u32 %v4577_v43, 16  ;;  %v395_v1 = vshrl.u32 %v4577_v43, 16  ;;  %v4637_v36 = vsel %vm878_vm1, %v892_v12, %v894_v16 }
  0x4b   : > { %3714 = vmatpush3.bf16.msra.mxu0 %v4203_v37  ;;  %v222_v37 = vld [vmem:[%s4351_s26 + $0xf0] sm:$0xff] }
  0x4c   : > { %3715 = vmatprep.subr.bf16.mxu0 %v4205_v53  ;;  %3522 = vmatpush3.bf16.msra.mxu1 %v4209_v48  ;;  %v381_v48 = vor.u32 %v379_v31, %v377_v42  ;;  %v4584_v52 = vpack.c.bf16 %v223_v40, %v222_v37  ;;  %v393_v7 = vrot.slane %v391_v56, 1  ;;  %v896_v42 = vrot.slane %v4471_v32, 1 }
  0x4d   : > { %3492 = vmatmul.mubr.bf16.gmra.mrb[12].mxu1 %v4490_v44  ;;  %3523 = vmatprep.subr.bf16.mxu1 %v4211_v59 }
  0x4e   : > { %3684 = vmatmul.mubr.bf16.gmra.mrb[12].mxu0 %v4521_v0  ;;  %3495 = vmatprep.mubr.bf16.mxu1 %v4521_v0  ;;  %v4602_v63 = vsel %vm278_vm0, %v381_v48, %v385_v50  ;;  %v399_v2 = vshll.u32 %v4584_v52, 16  ;;  %v397_v13 = vor.u32 %v395_v1, %v393_v7  ;;  %v403_v23 = vshrl.u32 %v4584_v52, 16  ;;  %v4222_v1 = vld [vmem:[%s5142_s1 + $0x1b8] sm:$0xff]  }
  0x4f   : > { %3716 = vmatpush3.bf16.msra.mxu0 %v4205_v53  ;;  %3719 = vmatprep.mubr.bf16.mxu0 %v4528_v3  ;;  %v890_v53 = vrot.slane %v4414_v57, 1  ;;  %v908_v45 = vrot.slane %v4584_v52, 1  ;;  %v898_v48 = vrot.slane %v4495_v47, 1  ;;  %v4657_v56 = vsel %vm878_vm1, %v894_v16, %v896_v42 }
  0x50   : > { %3717 = vmatprep.subr.bf16.mxu0 %v4206_v60  ;;  %3524 = vmatpush3.bf16.msra.mxu1 %v4211_v59  ;;  %v387_v59 = vshrl.u32 %v4546_v22, 16  ;;  %v906_v16 = vrot.slane %v4577_v43, 1 }
  0x51   : > { %3525 = vmatprep.subr.bf16.mxu1 %v4213_v10  ;;  %v4607_v4 = vsel %vm878_vm1, %v888_v46, %v890_v53  ;;  %v4631_v31 = vsel %vm878_vm1, %v890_v53, %v892_v12  ;;  %v4217_v12 = vld [vmem:[%s5142_s1 + $0x88] sm:$0xff]  }
  0x52   : > { %v389_v11 = vor.u32 %v387_v59, %v385_v50  ;;  %v4220_v50 = vld [vmem:[%s5142_s1 + $0x1b0] sm:$0xff]   ;;  %v4660_v59 = vsel %vm878_vm1, %v896_v42, %v898_v48  ;;  %v4223_v42 = vld [vmem:[%s5142_s1 + $0xa0] sm:$0xff]  }
  0x53   : > { %3718 = vmatpush3.bf16.msra.mxu0 %v4206_v60  ;;  %v4596_v60 = vld [vmem:[%s4351_s26 + $0x100] sm:$0xff] }
  0x54   : > { %3751 = vmatprep.subr.bf16.mxu0 %v4208_v14  ;;  %3526 = vmatpush3.bf16.msra.mxu1 %v4213_v10  ;;  %v261_v10 = vpack.c.bf16 %v4596_v60, %v4596_v60  ;;  %v4625_v26 = vsel %vm278_vm0, %v389_v11, %v393_v7  ;;  %v4224_v7 = vld [vmem:[%s5142_s1 + $0x1c0] sm:$0xff]  }
  0x55   : > { %3496 = vmatmul.mubr.bf16.gmra.mrb[16].mxu1 %v4557_v28  ;;  %3559 = vmatprep.subr.bf16.mxu1 %v4554_v27 }
  0x56   : > { %3720 = vmatmul.mubr.bf16.vlgmr.msra.gmra.mrb[0].mxu0 %v4565_v34  ;;  %3499 = vmatprep.mubr.bf16.mxu1 %v4568_v35  ;;  %v407_v24 = vshll.u32 %v261_v10, 16  ;;  %v910_v46 = vrot.slane %v261_v10, 1 }
  0x57   : > { %3752 = vmatpush3.bf16.msra.mxu0 %v4208_v14  ;;  %3723 = vmatprep.mubr.bf16.mxu0 %v4573_v38  ;;  %v401_v14 = vrot.slane %v399_v2, 1  ;;  %v900_v2 = vrot.slane %v4507_v54, 1 }
  0x58   : > { %3753 = vmatprep.subr.bf16.mxu0 %v4210_v29  ;;  %v409_v40 = vrot.slane %v407_v24, 1  ;;  %v4652_v53 = vsel %vm878_vm1, %v908_v45, %v910_v46  ;;  %v4719_v46 = vsel %vm878_vm1, %v906_v16, %v908_v45 }
  0x59   : > { %v4634_v33 = vsel %vm278_vm0, %v397_v13, %v401_v14  ;;  %v4642_v37 = vor.u32 %v403_v23, %v401_v14  ;;  %v4674_v10 = vsel %vm878_vm1, %v898_v48, %v900_v2  ;;  %v904_v13 = vrot.slane %v4546_v22, 1  ;;  %v4219_v14 = vld [vmem:[%s5142_s1 + $0x90] sm:$0xff]  }
  0x5b   : > { %3754 = vmatpush3.bf16.msra.mxu0 %v4210_v29  ;;  %v4218_v29 = vld [vmem:[%s5142_s1 + $0x1a8] sm:$0xff]   ;;  %v4700_v24 = vsel %vm878_vm1, %v904_v13, %v906_v16  ;;  %v4230_v16 = vld [vmem:[%s5142_s1 + $0x1d8] sm:$0xff]  }
  0x5c   : > { %3755 = vmatprep.subr.bf16.mxu0 %v4212_v55 }
  0x5d   : > { %3500 = vmatmul.mubr.bf16.gmra.mrb[20].mxu1 %v4592_v58 }
  0x5e   : > { %3724 = vmatmul.mubr.bf16.gmra.mrb[4].mxu0 %v4599_v61  ;;  %3503 = vmatprep.mubr.bf16.mxu1 %v4602_v63 }
  0x5f   : > { %3727 = vmatprep.mubr.bf16.mxu0 %v4607_v4  ;;  %3756 = vmatpush3.bf16.msra.mxu0 %v4212_v55  ;;  %v410_v55 = vsel %vm278_vm0, %v4642_v37, %v409_v40 }
  0x60   : > { %3757 = vmatprep.subr.bf16.mxu0 %v4214_v5 }
  0x63   : > { %3758 = vmatpush3.bf16.msra.mxu0 %v4214_v5  ;;  %v902_v5 = vrot.slane %v4533_v8, 1 }
  0x64   : > { %3759 = vmatprep.subr.bf16.mxu0 %v4216_v19 }
  0x65   : > { %3504 = vmatmul.mubr.bf16.gmra.mrb[24].mxu1 %v4625_v26  ;;  %v4677_v11 = vsel %vm878_vm1, %v900_v2, %v902_v5  ;;  %v4694_v23 = vsel %vm878_vm1, %v902_v5, %v904_v13  ;;  %v4229_v5 = vld [vmem:[%s5142_s1 + $0xb8] sm:$0xff]   ;;  %v4226_v13 = vld [vmem:[%s5142_s1 + $0x1c8] sm:$0xff]  }
  0x66   : > { %3728 = vmatmul.mubr.bf16.gmra.mrb[8].mxu0 %v4631_v31  ;;  %3507 = vmatprep.mubr.bf16.mxu1 %v4634_v33 }
  0x67   : > { %3731 = vmatprep.mubr.bf16.mxu0 %v4637_v36  ;;  %3760 = vmatpush3.bf16.msra.mxu0 %v4216_v19  ;;  %v225_v19 = vld [vmem:[%s4351_s26 + $0x108] sm:$0xff] }
  0x68   : > { %3761 = vmatprep.subr.bf16.mxu0 %v4218_v29 }
  0x6b   : > { %3762 = vmatpush3.bf16.msra.mxu0 %v4218_v29  ;;  %v4221_v29 = vld [vmem:[%s5142_s1 + $0x98] sm:$0xff]  }
  0x6c   : > { %3763 = vmatprep.subr.bf16.mxu0 %v4220_v50 }
  0x6d   : > { %3508 = vmatmul.mubr.bf16.gmra.mrb[28].mxu1 %v410_v55  ;;  %v4225_v55 = vld [vmem:[%s5142_s1 + $0xa8] sm:$0xff]  }
  0x6e   : > { %3732 = vmatmul.mubr.bf16.gmra.mrb[12].mxu0 %v4657_v56  ;;  %3527 = vmatprep.mubr.bf16.mxu1 %v4363_v17 }
  0x6f   : > { %3735 = vmatprep.mubr.bf16.mxu0 %v4660_v59  ;;  %3764 = vmatpush3.bf16.msra.mxu0 %v4220_v50 }
  0x70   : > { %3765 = vmatprep.subr.bf16.mxu0 %v4222_v1 }
  0x73   : > { %3766 = vmatpush3.bf16.msra.mxu0 %v4222_v1 }
  0x74   : > { %3799 = vmatprep.subr.bf16.mxu0 %v4224_v7 }
  0x75   : > { %3528 = vmatmul.mubr.bf16.vlgmr.msra.gmra.mrb[0].mxu1 %v4367_v20 }
  0x76   : > { %3736 = vmatmul.mubr.bf16.gmra.mrb[16].mxu0 %v4674_v10  ;;  %3560 = vmatpush3.bf16.msra.mxu1 %v4554_v27  ;;  %v4697_v27 = vpack.c.bf16 %v225_v19, %v4596_v60  ;;  %v4713_v60 = vld [vmem:[%s4351_s26 + $0x110] sm:$0xff]  ;;  %v4234_v19 = vld [vmem:[%s5142_s1 + $0x1e8] sm:$0xff]  }
  0x77   : > { %3531 = vmatprep.mubr.bf16.mxu1 %v4369_v21  ;;  %3739 = vmatprep.mubr.bf16.mxu0 %v4677_v11  ;;  %v4723_v48 = vpack.c.bf16 %v4713_v60, %v4713_v60 }
  0x78   : > { %3561 = vmatprep.subr.bf16.mxu1 %v4217_v12  ;;  %v4710_v40 = vrot.slane %v4697_v27, 1 }
  0x79   : > { %v1720_v1 = vrot.slane %v4723_v48, 1 }
  0x7a   : > { %3562 = vmatpush3.bf16.msra.mxu1 %v4217_v12  ;;  %v4727_v50 = vsel %vm878_vm1, %v908_v45, %v4710_v40  ;;  %v4227_v45 = vld [vmem:[%s5142_s1 + $0xb0] sm:$0xff]   ;;  %v4751_v12 = vld [vmem:[%s5142_s1 + $0xc0] sm:$0xff]  }
  0x7b   : > { %3563 = vmatprep.subr.bf16.mxu1 %v4219_v14  ;;  %v1721_v2 = vsel %vm878_vm1, %v4710_v40, %v1720_v1 }
  0x7d   : > { %3532 = vmatmul.mubr.bf16.gmra.mrb[4].mxu1 %v4381_v30 }
  0x7e   : > { %3740 = vmatmul.mubr.bf16.gmra.mrb[20].mxu0 %v4694_v23  ;;  %3535 = vmatprep.mubr.bf16.mxu1 %v4391_v39 }
  0x7f   : > { %3743 = vmatprep.mubr.bf16.mxu0 %v4700_v24  ;;  %3564 = vmatpush3.bf16.msra.mxu1 %v4219_v14  ;;  %v4228_v14 = vld [vmem:[%s5142_s1 + $0x1d0] sm:$0xff]  }
  0x80   : > { %3565 = vmatprep.subr.bf16.mxu1 %v4221_v29 }
  0x83   : > { %3566 = vmatpush3.bf16.msra.mxu1 %v4221_v29  ;;  %v879_v29 = vrot.slane %v4363_v17, 1  ;;  %v4238_v17 = vld [vmem:[%s5142_s1 + $0x1f8] sm:$0xff]  }
  0x84   : > { %3567 = vmatprep.subr.bf16.mxu1 %v4223_v42 }
  0x85   : > { %3536 = vmatmul.mubr.bf16.gmra.mrb[8].mxu1 %v4405_v51  ;;  %v881_v1 = vsel %vm878_vm1, %v879_v29, %v880_v49  ;;  %v4803_v49 = vld [vmem:[%s5142_s1 + $0x200] sm:$0xff]   ;;  %v4233_v29 = vld [vmem:[%s5142_s1 + $0xc8] sm:$0xff]  }
  0x86   : > { %3744 = vmatmul.mubr.bf16.gmra.mrb[24].mxu0 %v4719_v46  ;;  %3539 = vmatprep.mubr.bf16.mxu1 %v4414_v57 }
  0x87   : > { %3747 = vmatprep.mubr.bf16.mxu0 %v4727_v50  ;;  %3568 = vmatpush3.bf16.msra.mxu1 %v4223_v42  ;;  %v4236_v42 = vld [vmem:[%s5142_s1 + $0x1f0] sm:$0xff]  }
  0x88   : > { %3569 = vmatprep.subr.bf16.mxu1 %v4225_v55 }
  0x8b   : > { %3570 = vmatpush3.bf16.msra.mxu1 %v4225_v55  ;;  %v4268_v55 = vmov 0  }
  0x8c   : > { %3571 = vmatprep.subr.bf16.mxu1 %v4227_v45  ;;  %4177 = vset.pattern.permute.xlu0 %v4268_v55 }
  0x8d   : > { %3540 = vmatmul.mubr.bf16.gmra.mrb[12].mxu1 %v4437_v9  ;;  %4178 = vset.pattern.permute.xlu1 %v4268_v55 }
  0x8e   : > { %3748 = vmatmul.mubr.bf16.gmra.mrb[28].mxu0 %v1721_v2  ;;  %3543 = vmatprep.mubr.bf16.mxu1 %v4447_v15 }
  0x8f   : > { %3767 = vmatprep.mubr.bf16.mxu0 %v4369_v21  ;;  %3572 = vmatpush3.bf16.msra.mxu1 %v4227_v45  ;;  %v2761_v45 = vld [vmem:[%s4308_s21] sm:$0xff] }
  0x90   : > { %3573 = vmatprep.subr.bf16.mxu1 %v4229_v5  ;;  %vm2793_vm2 = vcmp.ne.f32.partialorder %v2761_v45, 0.0  ;;  %v2766_v45 = vld [vmem:[%s4308_s21 + $0x28] sm:$0xff] }
  0x91   : > { %v2825_v2 = vsel %vm2793_vm2, 1, %v4268_v55  ;;  %vm2798_vm7 = vcmp.ne.f32.partialorder %v2766_v45, 0.0 }
  0x92   : > { %2858 = vperm.xlu0 %4177, %v2825_v2  }
  0x93   : > { %3574 = vmatpush3.bf16.msra.mxu1 %v4229_v5  ;;  %v2763_v5 = vld [vmem:[%s4308_s21 + $0x10] sm:$0xff] }
  0x94   : > { %3607 = vmatprep.subr.bf16.mxu1 %v4751_v12  ;;  %vm2795_vm3 = vcmp.ne.f32.partialorder %v2763_v5, 0.0  ;;  %v2768_v5 = vld [vmem:[%s4308_s21 + $0x38] sm:$0xff] }
  0x95   : > { %3544 = vmatmul.mubr.bf16.gmra.mrb[16].mxu1 %v4471_v32  ;;  %vm2800_vm9 = vcmp.ne.f32.partialorder %v2768_v5, 0.0 }
  0x96   : > { %3768 = vmatmul.mubr.bf16.vlgmr.msra.gmra.mrb[0].mxu0 %v4381_v30  ;;  %3547 = vmatprep.mubr.bf16.mxu1 %v4495_v47 }
  0x97   : > { %3800 = vmatpush3.bf16.msra.mxu0 %v4224_v7  ;;  %3771 = vmatprep.mubr.bf16.mxu0 %v4391_v39  ;;  %v4232_v7 = vld [vmem:[%s5142_s1 + $0x1e0] sm:$0xff]  }
  0x98   : > { %3801 = vmatprep.subr.bf16.mxu0 %v4226_v13 }
  0x9b   : > { %3802 = vmatpush3.bf16.msra.mxu0 %v4226_v13  ;;  %v2762_v13 = vld [vmem:[%s4308_s21 + $0x8] sm:$0xff] }
  0x9c   : > { %3803 = vmatprep.subr.bf16.mxu0 %v4228_v14  ;;  %vm2794_vm4 = vcmp.ne.f32.partialorder %v2762_v13, 0.0  ;;  %v2769_v13 = vld [vmem:[%s4308_s21 + $0x40] sm:$0xff] }
  0x9d   : > { %3548 = vmatmul.mubr.bf16.gmra.mrb[20].mxu1 %v4507_v54  ;;  %vm2801_vm10 = vcmp.ne.f32.partialorder %v2769_v13, 0.0  ;;  %v2774_v13 = vld [vmem:[%s4308_s21 + $0x68] sm:$0xff] }
  0x9e   : > { %3772 = vmatmul.mubr.bf16.gmra.mrb[4].mxu0 %v4405_v51  ;;  %3551 = vmatprep.mubr.bf16.mxu1 %v4533_v8  ;;  %vm2806_vm15 = vcmp.ne.f32.partialorder %v2774_v13, 0.0  ;;  %v2781_v13 = vld [vmem:[%s4308_s21 + $0xa0] sm:$0xff] }
  0x9f   : > { %3775 = vmatprep.mubr.bf16.mxu0 %v4414_v57  ;;  %3804 = vmatpush3.bf16.msra.mxu0 %v4228_v14  ;;  %v2827_v14 = vsel %vm2795_vm3, 1, %v4268_v55 }
  0xa0   : > { %3805 = vmatprep.subr.bf16.mxu0 %v4230_v16  ;;  %2864 = vperm.xlu1 %4178, %v2827_v14   ;;  %v4237_v14 = vld [vmem:[%s5142_s1 + $0xd8] sm:$0xff]  }
  0xa3   : > { %3806 = vmatpush3.bf16.msra.mxu0 %v4230_v16  ;;  %v2826_v16 = vsel %vm2794_vm4, 1, %v4268_v55 }
  0xa4   : > { %3807 = vmatprep.subr.bf16.mxu0 %v4232_v7  ;;  %2861 = vperm.xlu0 %4177, %v2826_v16   ;;  %v2832_v16 = vsel %vm2800_vm9, 1, %v4268_v55 }
  0xa5   : > { %3552 = vmatmul.mubr.bf16.gmra.mrb[24].mxu1 %v4546_v22 }
  0xa6   : > { %3776 = vmatmul.mubr.bf16.gmra.mrb[8].mxu0 %v4437_v9  ;;  %3555 = vmatprep.mubr.bf16.mxu1 %v4577_v43 }
  0xa7   : > { %3779 = vmatprep.mubr.bf16.mxu0 %v4447_v15  ;;  %3808 = vmatpush3.bf16.msra.mxu0 %v4232_v7  ;;  %v2764_v7 = vld [vmem:[%s4308_s21 + $0x18] sm:$0xff] }
  0xa8   : > { %3809 = vmatprep.subr.bf16.mxu0 %v4234_v19  ;;  %vm2796_vm5 = vcmp.ne.f32.partialorder %v2764_v7, 0.0  ;;  %v2833_v7 = vsel %vm2801_vm10, 1, %v4268_v55 }
  0xab   : > { %3810 = vmatpush3.bf16.msra.mxu0 %v4234_v19  ;;  %v2765_v19 = vld [vmem:[%s4308_s21 + $0x20] sm:$0xff] }
  0xac   : > { %3811 = vmatprep.subr.bf16.mxu0 %v4236_v42  ;;  %vm2797_vm6 = vcmp.ne.f32.partialorder %v2765_v19, 0.0  ;;  %v2770_v19 = vld [vmem:[%s4308_s21 + $0x48] sm:$0xff] }
  0xad   : > { %3556 = vmatmul.mubr.bf16.gmra.mrb[28].mxu1 %v4584_v52  ;;  %vm2802_vm11 = vcmp.ne.f32.partialorder %v2770_v19, 0.0  ;;  %v2838_v19 = vsel %vm2806_vm15, 1, %v4268_v55 }
  0xae   : > { %3780 = vmatmul.mubr.bf16.gmra.mrb[12].mxu0 %v4471_v32  ;;  %3575 = vmatprep.mubr.bf16.mxu1 %v881_v1  ;;  %v2829_v1 = vsel %vm2797_vm6, 1, %v4268_v55 }
  0xaf   : > { %3783 = vmatprep.mubr.bf16.mxu0 %v4495_v47  ;;  %3812 = vmatpush3.bf16.msra.mxu0 %v4236_v42  ;;  %v2828_v42 = vsel %vm2796_vm5, 1, %v4268_v55 }
  0xb0   : > { %3813 = vmatprep.subr.bf16.mxu0 %v4238_v17  ;;  %2867 = vperm.xlu1 %4178, %v2828_v42   ;;  %v4239_v42 = vld [vmem:[%s5142_s1 + $0xe0] sm:$0xff]  }
  0xb1   : > { %2870 = vperm.xlu0 %4177, %v2829_v1   ;;  %v2834_v1 = vsel %vm2802_vm11, 1, %v4268_v55 }
  0xb3   : > { %3814 = vmatpush3.bf16.msra.mxu0 %v4238_v17  ;;  %v2767_v17 = vld [vmem:[%s4308_s21 + $0x30] sm:$0xff] }
  0xb4   : > { %3847 = vmatprep.subr.bf16.mxu0 %v4803_v49  ;;  %vm2799_vm8 = vcmp.ne.f32.partialorder %v2767_v17, 0.0  ;;  %v2772_v17 = vld [vmem:[%s4308_s21 + $0x58] sm:$0xff] }
  0xb5   : > { %3576 = vmatmul.mubr.bf16.vlgmr.msra.gmra.mrb[0].mxu1 %v4528_v3  ;;  %v4235_v3 = vld [vmem:[%s5142_s1 + $0xd0] sm:$0xff]   ;;  %v2831_v2 = vsel %vm2799_vm8, 1, %v4268_v55  ;;  %vm2804_vm13 = vcmp.ne.f32.partialorder %v2772_v17, 0.0  ;;  %v4245_v17 = vld [vmem:[%s5142_s1 + $0xf8] sm:$0xff]   ;;  %vm2813_vm8 = vcmp.ne.f32.partialorder %v2781_v13, 0.0 }
  0xb6   : > { %3784 = vmatmul.mubr.bf16.gmra.mrb[16].mxu0 %v4507_v54  ;;  %3608 = vmatpush3.bf16.msra.mxu1 %v4751_v12  ;;  %v2830_v12 = vsel %vm2798_vm7, 1, %v4268_v55 }
  0xb7   : > { %3579 = vmatprep.mubr.bf16.mxu1 %v4565_v34  ;;  %3787 = vmatprep.mubr.bf16.mxu0 %v4533_v8 }
  0xb8   : > { %3609 = vmatprep.subr.bf16.mxu1 %v4233_v29  ;;  %2873 = vperm.xlu1 %4178, %v2830_v12   ;;  %v2773_v12 = vld [vmem:[%s4308_s21 + $0x60] sm:$0xff] }
  0xb9   : > { %2876 = vperm.xlu0 %4177, %v2831_v2   ;;  %vm2805_vm14 = vcmp.ne.f32.partialorder %v2773_v12, 0.0  ;;  %v2836_v2 = vsel %vm2804_vm13, 1, %v4268_v55 }
  0xba   : > { %3610 = vmatpush3.bf16.msra.mxu1 %v4233_v29  ;;  %v2771_v29 = vld [vmem:[%s4308_s21 + $0x50] sm:$0xff]  ;;  %v2837_v5 = vsel %vm2805_vm14, 1, %v4268_v55 }
  0xbb   : > { %3611 = vmatprep.subr.bf16.mxu1 %v4235_v3  ;;  %vm2803_vm12 = vcmp.ne.f32.partialorder %v2771_v29, 0.0 }
  0xbc   : > { %2879 = vperm.xlu1 %4178, %v2832_v16   ;;  %v2835_v45 = vsel %vm2803_vm12, 1, %v4268_v55  ;;  %v227_v16 = vld [vmem:[%s4351_s26 + $0x118] sm:$0xff] }
  0xbd   : > { %3580 = vmatmul.mubr.bf16.gmra.mrb[4].mxu1 %v4573_v38  ;;  %2882 = vperm.xlu0 %4177, %v2833_v7   ;;  %v4243_v7 = vld [vmem:[%s5142_s1 + $0xf0] sm:$0xff]   ;;  %v4864_v29 = vpack.c.bf16 %v227_v16, %v4713_v60 }
  0xbe   : > { %3788 = vmatmul.mubr.bf16.gmra.mrb[20].mxu0 %v4546_v22  ;;  %3583 = vmatprep.mubr.bf16.mxu1 %v4599_v61 }
  0xbf   : > { %3791 = vmatprep.mubr.bf16.mxu0 %v4577_v43  ;;  %3612 = vmatpush3.bf16.msra.mxu1 %v4235_v3  ;;  %v4241_v3 = vld [vmem:[%s5142_s1 + $0xe8] sm:$0xff]  }
  0xc0   : > { %3613 = vmatprep.subr.bf16.mxu1 %v4237_v14  ;;  %2885 = vperm.xlu1 %4178, %v2834_v1  }
  0xc1   : > { %2888 = vperm.xlu0 %4177, %v2835_v45   ;;  %v2777_v45 = vld [vmem:[%s4308_s21 + $0x80] sm:$0xff] }
  0xc2   : > { %vm2809_vm4 = vcmp.ne.f32.partialorder %v2777_v45, 0.0  ;;  %v2845_v45 = vsel %vm2813_vm8, 1, %v4268_v55 }
  0xc3   : > { %3614 = vmatpush3.bf16.msra.mxu1 %v4237_v14  ;;  %v2775_v14 = vld [vmem:[%s4308_s21 + $0x70] sm:$0xff]  ;;  %v2841_v12 = vsel %vm2809_vm4, 1, %v4268_v55 }
  0xc4   : > { %3615 = vmatprep.subr.bf16.mxu1 %v4239_v42  ;;  %vm2807_vm2 = vcmp.ne.f32.partialorder %v2775_v14, 0.0  ;;  %2891 = vperm.xlu1 %4178, %v2836_v2   ;;  %v2779_v2 = vld [vmem:[%s4308_s21 + $0x90] sm:$0xff] }
  0xc5   : > { %3584 = vmatmul.mubr.bf16.gmra.mrb[8].mxu1 %v4607_v4  ;;  %2894 = vperm.xlu0 %4177, %v2837_v5   ;;  %v2839_v1 = vsel %vm2807_vm2, 1, %v4268_v55  ;;  %vm2811_vm6 = vcmp.ne.f32.partialorder %v2779_v2, 0.0  ;;  %v2780_v5 = vld [vmem:[%s4308_s21 + $0x98] sm:$0xff]  ;;  %v2787_v2 = vld [vmem:[%s4308_s21 + $0xd0] sm:$0xff] }
  0xc6   : > { %3792 = vmatmul.mubr.bf16.gmra.mrb[24].mxu0 %v4584_v52  ;;  %3587 = vmatprep.mubr.bf16.mxu1 %v4631_v31  ;;  %v2843_v16 = vsel %vm2811_vm6, 1, %v4268_v55  ;;  %vm2812_vm7 = vcmp.ne.f32.partialorder %v2780_v5, 0.0  ;;  %vm2819_vm14 = vcmp.ne.f32.partialorder %v2787_v2, 0.0 }
  0xc7   : > { %3795 = vmatprep.mubr.bf16.mxu0 %v4697_v27  ;;  %3616 = vmatpush3.bf16.msra.mxu1 %v4239_v42  ;;  %v2776_v42 = vld [vmem:[%s4308_s21 + $0x78] sm:$0xff] }
  0xc8   : > { %3617 = vmatprep.subr.bf16.mxu1 %v4241_v3  ;;  %2897 = vperm.xlu1 %4178, %v2838_v19   ;;  %vm2808_vm3 = vcmp.ne.f32.partialorder %v2776_v42, 0.0  ;;  %v2782_v19 = vld [vmem:[%s4308_s21 + $0xa8] sm:$0xff]  ;;  %v2844_v42 = vsel %vm2812_vm7, 1, %v4268_v55 }
  0xc9   : > { %2900 = vperm.xlu0 %4177, %v2839_v1   ;;  %v2840_v60 = vsel %vm2808_vm3, 1, %v4268_v55  ;;  %v2783_v1 = vld [vmem:[%s4308_s21 + $0xb0] sm:$0xff]  ;;  %vm2814_vm9 = vcmp.ne.f32.partialorder %v2782_v19, 0.0  ;;  %v2789_v19 = vld [vmem:[%s4308_s21 + $0xe0] sm:$0xff] }
  0xca   : > { %vm2815_vm10 = vcmp.ne.f32.partialorder %v2783_v1, 0.0  ;;  %vm2821_vm2 = vcmp.ne.f32.partialorder %v2789_v19, 0.0  ;;  %v4248_v1 = vld [vmem:[%s5142_s1 + $0x228] sm:$0xff]   ;;  %v4255_v19 = vld [vmem:[%s5142_s1 + $0x120] sm:$0xff]  }
  0xcb   : > { %3618 = vmatpush3.bf16.msra.mxu1 %v4241_v3  ;;  %v2778_v3 = vld [vmem:[%s4308_s21 + $0x88] sm:$0xff] }
  0xcc   : > { %3619 = vmatprep.subr.bf16.mxu1 %v4243_v7  ;;  %vm2810_vm5 = vcmp.ne.f32.partialorder %v2778_v3, 0.0  ;;  %2903 = vperm.xlu1 %4178, %v2840_v60   ;;  %v4244_v60 = vld [vmem:[%s5142_s1 + $0x210] sm:$0xff]   ;;  %v2847_v3 = vsel %vm2815_vm10, 1, %v4268_v55 }
  0xcd   : > { %3588 = vmatmul.mubr.bf16.gmra.mrb[12].mxu1 %v4637_v36  ;;  %2906 = vperm.xlu0 %4177, %v2841_v12   ;;  %v2842_v14 = vsel %vm2810_vm5, 1, %v4268_v55  ;;  %v2846_v12 = vsel %vm2814_vm9, 1, %v4268_v55 }
  0xce   : > { %3796 = vmatmul.mubr.bf16.gmra.mrb[28].mxu0 %v4864_v29  ;;  %3591 = vmatprep.mubr.bf16.mxu1 %v4657_v56 }
  0xcf   : > { %3815 = vmatprep.mubr.bf16.mxu0 %v4421_v62  ;;  %3620 = vmatpush3.bf16.msra.mxu1 %v4243_v7  ;;  %v4242_v62 = vld [vmem:[%s5142_s1 + $0x208] sm:$0xff]   ;;  %v4891_v7 = vld [vmem:[%s5142_s1 + $0x100] sm:$0xff]  }
  0xd0   : > { %3621 = vmatprep.subr.bf16.mxu1 %v4245_v17  ;;  %2909 = vperm.xlu1 %4178, %v2842_v14   ;;  %v2788_v14 = vld [vmem:[%s4308_s21 + $0xd8] sm:$0xff] }
  0xd1   : > { %2912 = vperm.xlu0 %4177, %v2843_v16   ;;  %v4247_v16 = vld [vmem:[%s5142_s1 + $0x220] sm:$0xff]   ;;  %vm2820_vm15 = vcmp.ne.f32.partialorder %v2788_v14, 0.0  ;;  %v2245_v14 = vshrl.u32 %v4864_v29, 16 }
  0xd3   : > { %3622 = vmatpush3.bf16.msra.mxu1 %v4245_v17  ;;  %v2784_v17 = vld [vmem:[%s4308_s21 + $0xb8] sm:$0xff] }
  0xd4   : > { %3895 = vmatprep.subr.bf16.mxu1 %v4891_v7  ;;  %2915 = vperm.xlu1 %4178, %v2844_v42   ;;  %vm2816_vm11 = vcmp.ne.f32.partialorder %v2784_v17, 0.0  ;;  %v2791_v42 = vld [vmem:[%s4308_s21 + $0xf0] sm:$0xff]  ;;  %v2853_v17 = vsel %vm2821_vm2, 1, %v4268_v55 }
  0xd5   : > { %3592 = vmatmul.mubr.bf16.gmra.mrb[16].mxu1 %v4660_v59  ;;  %2918 = vperm.xlu0 %4177, %v2845_v45   ;;  %v2848_v5 = vsel %vm2816_vm11, 1, %v4268_v55  ;;  %v2852_v45 = vsel %vm2820_vm15, 1, %v4268_v55  ;;  %vm2823_vm4 = vcmp.ne.f32.partialorder %v2791_v42, 0.0 }
  0xd6   : > { %3816 = vmatmul.mubr.bf16.vlgmr.msra.gmra.mrb[0].mxu0 %v4433_v6  ;;  %3595 = vmatprep.mubr.bf16.mxu1 %v4674_v10  ;;  %v2785_v6 = vld [vmem:[%s4308_s21 + $0xc0] sm:$0xff] }
  0xd7   : > { %3848 = vmatpush3.bf16.msra.mxu0 %v4803_v49  ;;  %3819 = vmatprep.mubr.bf16.mxu0 %v4451_v18  ;;  %vm2817_vm12 = vcmp.ne.f32.partialorder %v2785_v6, 0.0  ;;  %v2786_v18 = vld [vmem:[%s4308_s21 + $0xc8] sm:$0xff]  ;;  %v4246_v49 = vld [vmem:[%s5142_s1 + $0x218] sm:$0xff]   ;;  %v4249_v6 = vld [vmem:[%s5142_s1 + $0x230] sm:$0xff]  }
  0xd8   : > { %3849 = vmatprep.subr.bf16.mxu0 %v4242_v62  ;;  %2921 = vperm.xlu1 %4178, %v2846_v12   ;;  %v2849_v13 = vsel %vm2817_vm12, 1, %v4268_v55  ;;  %vm2818_vm13 = vcmp.ne.f32.partialorder %v2786_v18, 0.0 }
  0xd9   : > { %2924 = vperm.xlu0 %4177, %v2847_v3  }
  0xdb   : > { %3850 = vmatpush3.bf16.msra.mxu0 %v4242_v62  ;;  %v2851_v62 = vsel %vm2819_vm14, 1, %v4268_v55 }
  0xdc   : > { %3851 = vmatprep.subr.bf16.mxu0 %v4244_v60  ;;  %2927 = vperm.xlu1 %4178, %v2848_v5  }
  0xdd   : > { %3596 = vmatmul.mubr.bf16.gmra.mrb[20].mxu1 %v4677_v11  ;;  %2930 = vperm.xlu0 %4177, %v2849_v13   ;;  %v4254_v13 = vld [vmem:[%s5142_s1 + $0x118] sm:$0xff]  }
  0xde   : > { %3820 = vmatmul.mubr.bf16.gmra.mrb[4].mxu0 %v4460_v25  ;;  %3599 = vmatprep.mubr.bf16.mxu1 %v4694_v23  ;;  %v2850_v25 = vsel %vm2818_vm13, 1, %v4268_v55 }
  0xdf   : > { %3823 = vmatprep.mubr.bf16.mxu0 %v4485_v41  ;;  %3852 = vmatpush3.bf16.msra.mxu0 %v4244_v60  ;;  %v2790_v41 = vld [vmem:[%s4308_s21 + $0xe8] sm:$0xff]  ;;  %v2792_v60 = vld [vmem:[%s4308_s21 + $0xf8] sm:$0xff] }
  0xe0   : > { %3853 = vmatprep.subr.bf16.mxu0 %v4246_v49  ;;  %2933 = vperm.xlu1 %4178, %v2850_v25   ;;  %vm2822_vm3 = vcmp.ne.f32.partialorder %v2790_v41, 0.0  ;;  %vm2824_vm5 = vcmp.ne.f32.partialorder %v2792_v60, 0.0 }
  0xe1   : > { %2936 = vperm.xlu0 %4177, %v2851_v62   ;;  %v2854_v12 = vsel %vm2822_vm3, 1, %v4268_v55  ;;  %v2856_v3 = vsel %vm2824_vm5, 1, %v4268_v55  ;;  %v4256_v62 = vld [vmem:[%s5142_s1 + $0x128] sm:$0xff]  }
  0xe3   : > { %3854 = vmatpush3.bf16.msra.mxu0 %v4246_v49 }
  0xe4   : > { %3855 = vmatprep.subr.bf16.mxu0 %v4247_v16  ;;  %2939 = vperm.xlu1 %4178, %v2852_v45  }
  0xe5   : > { %3600 = vmatmul.mubr.bf16.gmra.mrb[24].mxu1 %v4700_v24  ;;  %2942 = vperm.xlu0 %4177, %v2853_v17  }
  0xe6   : > { %3824 = vmatmul.mubr.bf16.gmra.mrb[8].mxu0 %v4490_v44  ;;  %3603 = vmatprep.mubr.bf16.mxu1 %v4719_v46  ;;  %v2855_v44 = vsel %vm2823_vm4, 1, %v4268_v55  ;;  %v1449_v55 = vshrl.u32 %v4697_v27, 16 }
  0xe7   : > { %3827 = vmatprep.mubr.bf16.mxu0 %v4521_v0  ;;  %3856 = vmatpush3.bf16.msra.mxu0 %v4247_v16  ;;  %v4250_v0 = vld [vmem:[%s5142_s1 + $0x238] sm:$0xff]  }
  0xe8   : > { %3857 = vmatprep.subr.bf16.mxu0 %v4248_v1  ;;  %2945 = vperm.xlu1 %4178, %v2854_v12  }
  0xe9   : > { %2948 = vperm.xlu0 %4177, %v2855_v44  }
  0xeb   : > { %3858 = vmatpush3.bf16.msra.mxu0 %v4248_v1  ;;  %v4257_v1 = vld [vmem:[%s5142_s1 + $0x130] sm:$0xff]  }
  0xec   : > { %3859 = vmatprep.subr.bf16.mxu0 %v4249_v6  ;;  %2951 = vperm.xlu1 %4178, %v2856_v3  }
  0xed   : > { %3604 = vmatmul.mubr.bf16.gmra.mrb[28].mxu1 %v4652_v53  ;;  %v1445_v53 = vshll.u32 %v4697_v27, 16 }
  0xee   : > { %3828 = vmatmul.mubr.bf16.gmra.mrb[12].mxu0 %v4557_v28  ;;  %3623 = vmatprep.mubr.bf16.mxu1 %v4367_v20  ;;  %v4252_v20 = vld [vmem:[%s5142_s1 + $0x108] sm:$0xff]  }
  0xef   : > { %3831 = vmatprep.mubr.bf16.mxu0 %v4568_v35  ;;  %3860 = vmatpush3.bf16.msra.mxu0 %v4249_v6  ;;  %v1447_v18 = vrot.slane %v1445_v53, 1 }
  0xf0   : > { %3861 = vmatprep.subr.bf16.mxu0 %v4250_v0 }
  0xf1   : > { %v4973_v2 = vor.u32 %v1449_v55, %v1447_v18 }
  0xf3   : > { %3862 = vmatpush3.bf16.msra.mxu0 %v4250_v0 }
  0xf5   : > { %3624 = vmatmul.mubr.bf16.vlgmr.msra.gmra.mrb[0].mxu1 %v4369_v21  ;;  %v4253_v21 = vld [vmem:[%s5142_s1 + $0x110] sm:$0xff]  }
  0xf6   : > { %3832 = vmatmul.mubr.bf16.gmra.mrb[16].mxu0 %v4592_v58  ;;  %3903 = vmatpush3.bf16.msra.mxu1 %v4891_v7  ;;  %v2241_v7 = vshll.u32 %v4864_v29, 16 }
  0xf7   : > { %3627 = vmatprep.mubr.bf16.mxu1 %v4381_v30  ;;  %3835 = vmatprep.mubr.bf16.mxu0 %v4602_v63  ;;  %v228_v30 = vld [vmem:[%s4351_s26 + $0x120] sm:$0xff] }
  0xf8   : > { %3896 = vmatprep.subr.bf16.mxu1 %v4252_v20  ;;  %v4971_v49 = vpack.c.bf16 %v228_v30, %v228_v30  ;;  %v2243_v5 = vrot.slane %v2241_v7, 1 }
  0xfa   : > { %3904 = vmatpush3.bf16.msra.mxu1 %v4252_v20  ;;  %v2244_v16 = vsel %vm278_vm0, %v4973_v2, %v2243_v5 }
  0xfb   : > { %3897 = vmatprep.subr.bf16.mxu1 %v4253_v21 }
  0xfd   : > { %3628 = vmatmul.mubr.bf16.gmra.mrb[4].mxu1 %v4391_v39  ;;  %v1448_v39 = vsel %vm278_vm0, %v4642_v37, %v1447_v18  ;;  %v2247_v37 = vor.u32 %v2245_v14, %v2243_v5 }
  0xfe   : > { %3836 = vmatmul.mubr.bf16.gmra.mrb[20].mxu0 %v4625_v26  ;;  %3631 = vmatprep.mubr.bf16.mxu1 %v4405_v51  ;;  %v2249_v51 = vshll.u32 %v4971_v49, 16 }
  0xff   : > { %3839 = vmatprep.mubr.bf16.mxu0 %v4634_v33  ;;  %3905 = vmatpush3.bf16.msra.mxu1 %v4253_v21 }
 0x100   : > { %3898 = vmatprep.subr.bf16.mxu1 %v4254_v13  ;;  %v2251_v25 = vrot.slane %v2249_v51, 1 }
 0x102   : > { %v2252_v41 = vsel %vm278_vm0, %v2247_v37, %v2251_v25 }
 0x103   : > { %3906 = vmatpush3.bf16.msra.mxu1 %v4254_v13 }
 0x104   : > { %3899 = vmatprep.subr.bf16.mxu1 %v4255_v19 }
 0x105   : > { %3632 = vmatmul.mubr.bf16.gmra.mrb[8].mxu1 %v4414_v57  ;;  %v4258_v57 = vld [vmem:[%s5142_s1 + $0x138] sm:$0xff]  }
 0x106   : > { %3840 = vmatmul.mubr.bf16.gmra.mrb[24].mxu0 %v1448_v39  ;;  %3635 = vmatprep.mubr.bf16.mxu1 %v4437_v9  ;;  %v2514_v9 = vrot.slane %v4864_v29, 1 }
 0x107   : > { %3843 = vmatprep.mubr.bf16.mxu0 %v2244_v16  ;;  %3907 = vmatpush3.bf16.msra.mxu1 %v4255_v19 }
 0x108   : > { %3900 = vmatprep.subr.bf16.mxu1 %v4256_v62 }
 0x10b   : > { %3908 = vmatpush3.bf16.msra.mxu1 %v4256_v62 }
 0x10c   : > { %3901 = vmatprep.subr.bf16.mxu1 %v4257_v1 }
 0x10d   : > { %3636 = vmatmul.mubr.bf16.gmra.mrb[12].mxu1 %v4447_v15  ;;  %v1453_v15 = vshll.u32 %v4723_v48, 16 }
 0x10e   : > { %3844 = vmatmul.mubr.bf16.gmra.mrb[28].mxu0 %v2252_v41  ;;  %3639 = vmatprep.mubr.bf16.mxu1 %v4471_v32  ;;  %v2515_v32 = vsel %vm878_vm1, %v4710_v40, %v2514_v9 }
 0x10f   : > { %3863 = vmatprep.mubr.bf16.mxu0 %v4565_v34  ;;  %3909 = vmatpush3.bf16.msra.mxu1 %v4257_v1 }
 0x110   : > { %3902 = vmatprep.subr.bf16.mxu1 %v4258_v57 }
 0x113   : > { %3910 = vmatpush3.bf16.msra.mxu1 %v4258_v57 }
 0x115   : > { %3640 = vmatmul.mubr.bf16.gmra.mrb[16].mxu1 %v4495_v47  ;;  %v1455_v47 = vrot.slane %v1453_v15, 1 }
 0x116   : > { %3864 = vmatmul.mubr.bf16.vlgmr.msra.gmra.mrb[0].mxu0 %v4573_v38  ;;  %3643 = vmatprep.mubr.bf16.mxu1 %v4507_v54  ;;  %v2516_v54 = vrot.slane %v4971_v49, 1 }
 0x117   : > { %3867 = vmatprep.mubr.bf16.mxu0 %v4599_v61 }
 0x11d   : > { %3644 = vmatmul.mubr.bf16.gmra.mrb[20].mxu1 %v4533_v8  ;;  %v1456_v8 = vsel %vm278_vm0, %v4973_v2, %v1455_v47 }
 0x11e   : > { %3868 = vmatmul.mubr.bf16.gmra.mrb[4].mxu0 %v4607_v4  ;;  %3647 = vmatprep.mubr.bf16.mxu1 %v4546_v22  ;;  %v2517_v22 = vsel %vm878_vm1, %v2514_v9, %v2516_v54 }
 0x11f   : > { %3871 = vmatprep.mubr.bf16.mxu0 %v4631_v31  ;;  %v2865_v34 = vpop.permute.xlu1 %2864 }
 0x120   : > { %vm2955_vm1 = vcmp.eq.s32.totalorder %v2865_v34, 1 }
 0x125   : > { %3648 = vmatmul.mubr.bf16.gmra.mrb[24].mxu1 %v4577_v43 }
 0x126   : > { %3872 = vmatmul.mubr.bf16.gmra.mrb[8].mxu0 %v4637_v36  ;;  %3651 = vmatprep.mubr.bf16.mxu1 %v4584_v52 }
 0x127   : > { %3875 = vmatprep.mubr.bf16.mxu0 %v4657_v56 }
 0x12d   : > { %3652 = vmatmul.mubr.bf16.gmra.mrb[28].mxu1 %v4697_v27 }
 0x12e   : > { %3876 = vmatmul.mubr.bf16.gmra.mrb[12].mxu0 %v4660_v59  ;;  %3687 = vmatprep.mubr.bf16.mxu1 %v4557_v28  ;;  %v2859_v28 = vpop.permute.xlu0 %2858 }
 0x12f   : > { %3879 = vmatprep.mubr.bf16.mxu0 %v4674_v10  ;;  %vm2953_vm0 = vcmp.eq.s32.totalorder %v2859_v28, 1 }
 0x135   : > { %3688 = vmatmul.mubr.bf16.vlgmr.msra.gmra.mrb[16].mxu1 %v4568_v35  ;;  %v2862_v35 = vpop.permute.xlu0 %2861 }
 0x136   : > { %3880 = vmatmul.mubr.bf16.gmra.mrb[16].mxu0 %v4677_v11  ;;  %3691 = vmatprep.mubr.bf16.mxu1 %v4592_v58  ;;  %v2868_v58 = vpop.permute.xlu1 %2867  ;;  %vm2954_vm6 = vcmp.eq.s32.totalorder %v2862_v35, 1 }
 0x137   : > { %3883 = vmatprep.mubr.bf16.mxu0 %v4694_v23  ;;  %vm2956_vm7 = vcmp.eq.s32.totalorder %v2868_v58, 1 }
 0x13d   : > { %3692 = vmatmul.mubr.bf16.gmra.mrb[20].mxu1 %v4602_v63  ;;  %v2871_v63 = vpop.permute.xlu0 %2870 }
 0x13e   : > { %3884 = vmatmul.mubr.bf16.gmra.mrb[20].mxu0 %v4700_v24  ;;  %3695 = vmatprep.mubr.bf16.mxu1 %v4625_v26  ;;  %v5036_v26 = vpop.permute.xlu1 %2873  ;;  %vm2957_vm8 = vcmp.eq.s32.totalorder %v2871_v63, 1 }
 0x13f   : > { %3887 = vmatprep.mubr.bf16.mxu0 %v4719_v46  ;;  %vm2958_vm9 = vcmp.eq.s32.totalorder %v5036_v26, 1 }
 0x142   : > { %v5040_v59 = vpop.permute.xlu1 %2879 }
 0x143   : > { %vm2960_vm11 = vcmp.eq.s32.totalorder %v5040_v59, 1 }
 0x145   : > { %3696 = vmatmul.mubr.bf16.gmra.mrb[24].mxu1 %v4634_v33  ;;  %v5038_v33 = vpop.permute.xlu0 %2876 }
 0x146   : > { %3888 = vmatmul.mubr.bf16.gmra.mrb[24].mxu0 %v4727_v50  ;;  %3699 = vmatprep.mubr.bf16.mxu1 %v1448_v39  ;;  %v5052_v40 = vpop.permute.xlu1 %2885  ;;  %vm2959_vm10 = vcmp.eq.s32.totalorder %v5038_v33, 1 }
 0x147   : > { %3891 = vmatprep.mubr.bf16.mxu0 %v2515_v32  ;;  %vm2962_vm13 = vcmp.eq.s32.totalorder %v5052_v40, 1 }
 0x149   : > { %v5042_v10 = vpop.permute.xlu0 %2882 }
 0x14a   : > { %v5062_v42 = vpop.permute.xlu1 %2891  ;;  %vm2961_vm12 = vcmp.eq.s32.totalorder %v5042_v10, 1 }
 0x14b   : > { %vm2964_vm15 = vcmp.eq.s32.totalorder %v5062_v42, 1 }
 0x14d   : > { %3700 = vmatmul.mubr.bf16.gmra.mrb[28].mxu1 %v1456_v8  ;;  %v5054_v46 = vpop.permute.xlu0 %2888 }
 0x14e   : > { %3892 = vmatmul.mubr.bf16.gmra.mrb[28].mxu0 %v2517_v22  ;;  %v5068_v60 = vpop.permute.xlu1 %2897  ;;  %vm2963_vm14 = vcmp.eq.s32.totalorder %v5054_v46, 1 }
 0x14f   : > { %vm2966_vm3 = vcmp.eq.s32.totalorder %v5068_v60, 1 }
 0x151   : > { %v5066_v17 = vpop.permute.xlu0 %2894 }
 0x152   : > { %v5072_v30 = vpop.permute.xlu1 %2903  ;;  %vm2965_vm2 = vcmp.eq.s32.totalorder %v5066_v17, 1 }
 0x153   : > { %vm2968_vm5 = vcmp.eq.s32.totalorder %v5072_v30, 1 }
 0x155   : > { %v5070_v12 = vpop.permute.xlu0 %2900 }
 0x156   : > { %v5077_v54 = vpop.permute.xlu1 %2909  ;;  %vm2967_vm4 = vcmp.eq.s32.totalorder %v5070_v12, 1 }
 0x159   : > { %v5074_v2 = vpop.permute.xlu0 %2906 }
 0x15d   : > { %v5080_v28 = vpop.permute.xlu0 %2912 }
 0x1c8   : > { %v3625_v38 = vpop.f32.mrb[0].mxu1 }
 0x1c9   : > { %v1268_v43 = vpop.f32.mrb[1].mxu1 }
 0x1ca   : > { %v3626_v52 = vpop.f32.mrb[2].mxu1 }
 0x1cb   : > { %v1271_v61 = vpop.f32.mrb[3].mxu1 }
 0x1d0   : > { %v3629_v4 = vpop.f32.mrb[4].mxu1 }
 0x1d1   : > { %v1284_v31 = vpop.f32.mrb[5].mxu1 }
 0x1d2   : > { %v3630_v36 = vpop.f32.mrb[6].mxu1 }
 0x1d3   : > { %v1287_v56 = vpop.f32.mrb[7].mxu1 }
 0x1d8   : > { %v5044_v11 = vpop.f32.mrb[8].mxu1 }
 0x1d9   : > { %v5046_v23 = vpop.f32.mrb[9].mxu1 }
 0x1da   : > { %v5048_v27 = vpop.f32.mrb[10].mxu1 }
 0x1db   : > { %v5050_v24 = vpop.f32.mrb[11].mxu1 }
 0x1e0   : > { %v5056_v48 = vpop.f32.mrb[12].mxu1 }
 0x1e1   : > { %v5058_v50 = vpop.f32.mrb[13].mxu1 }
 0x1e2   : > { %v5060_v29 = vpop.f32.mrb[14].mxu1 }
 0x1e3   : > { %v5064_v45 = vpop.f32.mrb[15].mxu1 }
 0x1e9   : > { %v3865_v6 = vpop.f32.mrb[0].mxu0 }
 0x1ea   : > { %v3911_v44 = vadd.f32 %v3865_v6, %v3625_v38  ;;  %v2602_v0 = vpop.f32.mrb[1].mxu0 }
 0x1eb   : > { %v3912_v3 = vadd.f32 %v2602_v0, %v1268_v43  ;;  %v3866_v20 = vpop.f32.mrb[2].mxu0 }
 0x1ec   : > { %v3913_v53 = vadd.f32 %v3866_v20, %v3626_v52  ;;  %v2605_v21 = vpop.f32.mrb[3].mxu0  ;;  %v2987_v18 = vsel %vm2955_vm1, %v3911_v44, 0.0  ;;  %v5085_v44 = vpop.permute.xlu1 %2915  ;;  %vm2970_vm1 = vcmp.eq.s32.totalorder %v5077_v54, 1 }
 0x1ed   : > { %v2985_v55 = vsel %vm2953_vm0, %v3912_v3, 0.0  ;;  %v3914_v7 = vadd.f32 %v2605_v21, %v1271_v61  ;;  %v3060_v16 = vmul.f32 %v2987_v18, %v2987_v18  ;;  %v5088_v20 = vpop.permute.xlu0 %2918  ;;  %vm2969_vm0 = vcmp.eq.s32.totalorder %v5074_v2, 1 }
 0x1ee   : > { %v3058_v5 = vmul.f32 %v2985_v55, %v2985_v55  ;;  %v2988_v14 = vsel %vm2956_vm7, %v3913_v53, 0.0  ;;  %vm2972_vm7 = vcmp.eq.s32.totalorder %v5085_v44, 1 }
 0x1ef   : > { %v2986_v49 = vsel %vm2954_vm6, %v3914_v7, 0.0  ;;  %v3061_v57 = vmul.f32 %v2988_v14, %v2988_v14  ;;  %vm2971_vm6 = vcmp.eq.s32.totalorder %v5080_v28, 1 }
 0x1f0   : > { %v3018_v13 = vadd.f32 %v2986_v49, %v2985_v55  ;;  %v3059_v39 = vmul.f32 %v2986_v49, %v2986_v49 }
 0x1f1   : > { %v3869_v51 = vpop.f32.mrb[4].mxu0  ;;  %v5097_v40 = vpop.permute.xlu0 %2924 }
 0x1f2   : > { %v3019_v19 = vadd.f32 %v3018_v13, %v2987_v18  ;;  %v3090_v37 = vadd.f32 %v3059_v39, %v3058_v5  ;;  %v3915_v25 = vadd.f32 %v3869_v51, %v3629_v4  ;;  %v2618_v62 = vpop.f32.mrb[5].mxu0 }
 0x1f3   : > { %v3916_v41 = vadd.f32 %v2618_v62, %v1284_v31  ;;  %v3870_v1 = vpop.f32.mrb[6].mxu0 }
 0x1f4   : > { %v3091_v9 = vadd.f32 %v3090_v37, %v3060_v16  ;;  %v3020_v15 = vadd.f32 %v3019_v19, %v2988_v14  ;;  %v3917_v32 = vadd.f32 %v3870_v1, %v3630_v36  ;;  %v2621_v47 = vpop.f32.mrb[7].mxu0  ;;  %v2991_v43 = vsel %vm2959_vm10, %v3915_v25, 0.0  ;;  %v5095_v16 = vpop.permute.xlu1 %2921 }
 0x1f5   : > { %v2989_v8 = vsel %vm2957_vm8, %v3916_v41, 0.0  ;;  %v3918_v22 = vadd.f32 %v2621_v47, %v1287_v56  ;;  %v3064_v31 = vmul.f32 %v2991_v43, %v2991_v43  ;;  %vm2973_vm8 = vcmp.eq.s32.totalorder %v5088_v20, 1 }
 0x1f6   : > { %v3021_v34 = vadd.f32 %v3020_v15, %v2989_v8  ;;  %v3062_v35 = vmul.f32 %v2989_v8, %v2989_v8  ;;  %v3092_v38 = vadd.f32 %v3091_v9, %v3061_v57  ;;  %v2992_v4 = vsel %vm2960_vm11, %v3917_v32, 0.0 }
 0x1f7   : > { %v2990_v52 = vsel %vm2958_vm9, %v3918_v22, 0.0  ;;  %v3065_v59 = vmul.f32 %v2992_v4, %v2992_v4  ;;  %vm2974_vm9 = vcmp.eq.s32.totalorder %v5095_v16, 1  ;;  %vm2975_vm10 = vcmp.eq.s32.totalorder %v5097_v40, 1 }
 0x1f8   : > { %v3093_v58 = vadd.f32 %v3092_v38, %v3062_v35  ;;  %v3022_v61 = vadd.f32 %v3021_v34, %v2990_v52  ;;  %v3063_v63 = vmul.f32 %v2990_v52, %v2990_v52  ;;  %v5106_v17 = vpop.permute.xlu1 %2927  ;;  %v5109_v38 = vpop.permute.xlu0 %2930 }
 0x1f9   : > { %v3873_v26 = vpop.f32.mrb[8].mxu0  ;;  %vm2976_vm11 = vcmp.eq.s32.totalorder %v5106_v17, 1 }
 0x1fa   : > { %v3023_v36 = vadd.f32 %v3022_v61, %v2991_v43  ;;  %v3094_v6 = vadd.f32 %v3093_v58, %v3063_v63  ;;  %v3919_v56 = vadd.f32 %v3873_v26, %v5044_v11  ;;  %v2634_v33 = vpop.f32.mrb[9].mxu0 }
 0x1fb   : > { %v3920_v0 = vadd.f32 %v2634_v33, %v5046_v23  ;;  %v3874_v3 = vpop.f32.mrb[10].mxu0 }
 0x1fc   : > { %v3095_v53 = vadd.f32 %v3094_v6, %v3064_v31  ;;  %v3024_v21 = vadd.f32 %v3023_v36, %v2992_v4  ;;  %v3921_v55 = vadd.f32 %v3874_v3, %v5048_v27  ;;  %v2637_v7 = vpop.f32.mrb[11].mxu0  ;;  %v2995_v23 = vsel %vm2963_vm14, %v3919_v56, 0.0 }
 0x1fd   : > { %v2993_v18 = vsel %vm2961_vm12, %v3920_v0, 0.0  ;;  %v3922_v11 = vadd.f32 %v2637_v7, %v5050_v24  ;;  %v3068_v37 = vmul.f32 %v2995_v23, %v2995_v23  ;;  %vm2977_vm12 = vcmp.eq.s32.totalorder %v5109_v38, 1 }
 0x1fe   : > { %v3025_v10 = vadd.f32 %v3024_v21, %v2993_v18  ;;  %v3066_v49 = vmul.f32 %v2993_v18, %v2993_v18  ;;  %v3096_v5 = vadd.f32 %v3095_v53, %v3065_v59  ;;  %v2996_v27 = vsel %vm2964_vm15, %v3921_v55, 0.0 }
 0x1ff   : > { %v2994_v13 = vsel %vm2962_vm13, %v3922_v11, 0.0  ;;  %v3069_v1 = vmul.f32 %v2996_v27, %v2996_v27 }
 0x200   : > { %v3097_v39 = vadd.f32 %v3096_v5, %v3066_v49  ;;  %v3026_v14 = vadd.f32 %v3025_v10, %v2994_v13  ;;  %v3067_v51 = vmul.f32 %v2994_v13, %v2994_v13  ;;  %v5114_v10 = vpop.permute.xlu1 %2933  ;;  %v5117_v5 = vpop.permute.xlu0 %2936 }
 0x201   : > { %v3877_v19 = vpop.f32.mrb[12].mxu0  ;;  %vm2978_vm13 = vcmp.eq.s32.totalorder %v5114_v10, 1  ;;  %vm2979_vm14 = vcmp.eq.s32.totalorder %v5117_v5, 1 }
 0x202   : > { %v3027_v24 = vadd.f32 %v3026_v14, %v2995_v23  ;;  %v3098_v25 = vadd.f32 %v3097_v39, %v3067_v51  ;;  %v3923_v46 = vadd.f32 %v3877_v19, %v5056_v48  ;;  %v2650_v62 = vpop.f32.mrb[13].mxu0 }
 0x203   : > { %v3924_v41 = vadd.f32 %v2650_v62, %v5058_v50  ;;  %v3878_v42 = vpop.f32.mrb[14].mxu0 }
 0x204   : > { %v3099_v57 = vadd.f32 %v3098_v25, %v3068_v37  ;;  %v3028_v9 = vadd.f32 %v3027_v24, %v2996_v27  ;;  %v3925_v15 = vadd.f32 %v3878_v42, %v5060_v29  ;;  %v2653_v32 = vpop.f32.mrb[15].mxu0  ;;  %v2999_v50 = vsel %vm2967_vm4, %v3923_v46, 0.0 }
 0x205   : > { %v2997_v47 = vsel %vm2965_vm2, %v3924_v41, 0.0  ;;  %v3926_v8 = vadd.f32 %v2653_v32, %v5064_v45  ;;  %v3072_v63 = vmul.f32 %v2999_v50, %v2999_v50 }
 0x206   : > { %v3029_v48 = vadd.f32 %v3028_v9, %v2997_v47  ;;  %v3070_v22 = vmul.f32 %v2997_v47, %v2997_v47  ;;  %v3100_v34 = vadd.f32 %v3099_v57, %v3069_v1  ;;  %v3000_v58 = vsel %vm2968_vm5, %v3925_v15, 0.0 }
 0x207   : > { %v2998_v35 = vsel %vm2966_vm3, %v3926_v8, 0.0  ;;  %v3073_v33 = vmul.f32 %v3000_v58, %v3000_v58 }
 0x208   : > { %v3101_v29 = vadd.f32 %v3100_v34, %v3070_v22  ;;  %v3030_v43 = vadd.f32 %v3029_v48, %v2998_v35  ;;  %v3071_v52 = vmul.f32 %v2998_v35, %v2998_v35  ;;  %v3689_v60 = vpop.f32.mrb[16].mxu1  ;;  %v2940_v34 = vpop.permute.xlu1 %2939 }
 0x209   : > { %v3881_v61 = vpop.f32.mrb[16].mxu0  ;;  %v1605_v45 = vpop.f32.mrb[17].mxu1  ;;  %vm2980_vm15 = vcmp.eq.s32.totalorder %v2940_v34, 1 }
 0x20a   : > { %v3031_v12 = vadd.f32 %v3030_v43, %v2999_v50  ;;  %v3102_v4 = vadd.f32 %v3101_v29, %v3071_v52  ;;  %v3927_v26 = vadd.f32 %v3881_v61, %v3689_v60  ;;  %v2666_v31 = vpop.f32.mrb[17].mxu0  ;;  %v3690_v36 = vpop.f32.mrb[18].mxu1 }
 0x20b   : > { %v3928_v6 = vadd.f32 %v2666_v31, %v1605_v45  ;;  %v3882_v56 = vpop.f32.mrb[18].mxu0  ;;  %v1608_v30 = vpop.f32.mrb[19].mxu1 }
 0x20c   : > { %v3103_v0 = vadd.f32 %v3102_v4, %v3072_v63  ;;  %v3032_v3 = vadd.f32 %v3031_v12, %v3000_v58  ;;  %v3929_v59 = vadd.f32 %v3882_v56, %v3690_v36  ;;  %v2669_v53 = vpop.f32.mrb[19].mxu0  ;;  %v3003_v2 = vsel %vm2971_vm6, %v3927_v26, 0.0  ;;  %v2943_v35 = vpop.permute.xlu0 %2942 }
 0x20d   : > { %v3001_v21 = vsel %vm2969_vm0, %v3928_v6, 0.0  ;;  %v3930_v55 = vadd.f32 %v2669_v53, %v1608_v30  ;;  %v3076_v19 = vmul.f32 %v3003_v2, %v3003_v2  ;;  %vm2981_vm2 = vcmp.eq.s32.totalorder %v2943_v35, 1 }
 0x20e   : > { %v3033_v7 = vadd.f32 %v3032_v3, %v3001_v21  ;;  %v3074_v18 = vmul.f32 %v3001_v21, %v3001_v21  ;;  %v3104_v11 = vadd.f32 %v3103_v0, %v3073_v33  ;;  %v3004_v54 = vsel %vm2972_vm7, %v3929_v59, 0.0 }
 0x20f   : > { %v3002_v49 = vsel %vm2970_vm1, %v3930_v55, 0.0  ;;  %v3077_v42 = vmul.f32 %v3004_v54, %v3004_v54 }
 0x210   : > { %v3105_v23 = vadd.f32 %v3104_v11, %v3074_v18  ;;  %v3034_v13 = vadd.f32 %v3033_v7, %v3002_v49  ;;  %v3075_v39 = vmul.f32 %v3002_v49, %v3002_v49  ;;  %v3693_v14 = vpop.f32.mrb[20].mxu1  ;;  %v2946_v7 = vpop.permute.xlu1 %2945 }
 0x211   : > { %v3885_v51 = vpop.f32.mrb[20].mxu0  ;;  %v1621_v27 = vpop.f32.mrb[21].mxu1  ;;  %vm2982_vm3 = vcmp.eq.s32.totalorder %v2946_v7, 1 }
 0x212   : > { %v3035_v28 = vadd.f32 %v3034_v13, %v3003_v2  ;;  %v3106_v37 = vadd.f32 %v3105_v23, %v3075_v39  ;;  %v3931_v24 = vadd.f32 %v3885_v51, %v3693_v14  ;;  %v2682_v25 = vpop.f32.mrb[21].mxu0  ;;  %v3694_v46 = vpop.f32.mrb[22].mxu1 }
 0x213   : > { %v3932_v62 = vadd.f32 %v2682_v25, %v1621_v27  ;;  %v3886_v41 = vpop.f32.mrb[22].mxu0  ;;  %v1624_v44 = vpop.f32.mrb[23].mxu1 }
 0x214   : > { %v3107_v1 = vadd.f32 %v3106_v37, %v3076_v19  ;;  %v3036_v57 = vadd.f32 %v3035_v28, %v3004_v54  ;;  %v3933_v9 = vadd.f32 %v3886_v41, %v3694_v46  ;;  %v2685_v15 = vpop.f32.mrb[23].mxu0  ;;  %v3007_v50 = vsel %vm2975_vm10, %v3931_v24, 0.0  ;;  %v2949_v11 = vpop.permute.xlu0 %2948 }
 0x215   : > { %v3005_v32 = vsel %vm2973_vm8, %v3932_v62, 0.0  ;;  %v3934_v47 = vadd.f32 %v2685_v15, %v1624_v44  ;;  %v3080_v45 = vmul.f32 %v3007_v50, %v3007_v50  ;;  %vm2983_vm4 = vcmp.eq.s32.totalorder %v2949_v11, 1 }
 0x216   : > { %v3037_v8 = vadd.f32 %v3036_v57, %v3005_v32  ;;  %v3078_v48 = vmul.f32 %v3005_v32, %v3005_v32  ;;  %v3108_v22 = vadd.f32 %v3107_v1, %v3077_v42  ;;  %v3008_v58 = vsel %vm2976_vm11, %v3933_v9, 0.0  ;;  %v2952_v1 = vpop.permute.xlu1 %2951 }
 0x217   : > { %v3006_v20 = vsel %vm2974_vm9, %v3934_v47, 0.0  ;;  %v3081_v17 = vmul.f32 %v3008_v58, %v3008_v58  ;;  %vm2984_vm5 = vcmp.eq.s32.totalorder %v2952_v1, 1 }
 0x218   : > { %v3109_v29 = vadd.f32 %v3108_v22, %v3078_v48  ;;  %v3038_v43 = vadd.f32 %v3037_v8, %v3006_v20  ;;  %v3079_v52 = vmul.f32 %v3006_v20, %v3006_v20  ;;  %v3697_v60 = vpop.f32.mrb[24].mxu1 }
 0x219   : > { %v3889_v61 = vpop.f32.mrb[24].mxu0  ;;  %v1637_v16 = vpop.f32.mrb[25].mxu1 }
 0x21a   : > { %v3039_v63 = vadd.f32 %v3038_v43, %v3007_v50  ;;  %v3110_v12 = vadd.f32 %v3109_v29, %v3079_v52  ;;  %v3935_v40 = vadd.f32 %v3889_v61, %v3697_v60  ;;  %v2698_v4 = vpop.f32.mrb[25].mxu0  ;;  %v3698_v26 = vpop.f32.mrb[26].mxu1 }
 0x21b   : > { %v3936_v31 = vadd.f32 %v2698_v4, %v1637_v16  ;;  %v3890_v36 = vpop.f32.mrb[26].mxu0  ;;  %v1640_v6 = vpop.f32.mrb[27].mxu1 }
 0x21c   : > { %v3111_v56 = vadd.f32 %v3110_v12, %v3080_v45  ;;  %v3040_v30 = vadd.f32 %v3039_v63, %v3008_v58  ;;  %v3937_v33 = vadd.f32 %v3890_v36, %v3698_v26  ;;  %v2701_v0 = vpop.f32.mrb[27].mxu0  ;;  %v3011_v18 = vsel %vm2979_vm14, %v3935_v40, 0.0 }
 0x21d   : > { %v3009_v3 = vsel %vm2977_vm12, %v3936_v31, 0.0  ;;  %v3938_v59 = vadd.f32 %v2701_v0, %v1640_v6  ;;  %v3084_v10 = vmul.f32 %v3011_v18, %v3011_v18  ;;  %v3017_v6 = vld [vmem:[%s5144_s3] sm:$0x1] }
 0x21e   : > { %v3041_v53 = vadd.f32 %v3040_v30, %v3009_v3  ;;  %v3082_v21 = vmul.f32 %v3009_v3, %v3009_v3  ;;  %v3112_v55 = vadd.f32 %v3111_v56, %v3081_v17  ;;  %v3012_v39 = vsel %vm2980_vm15, %v3937_v33, 0.0  ;;  %v3057_v30 = vld [vmem:[%s5145_s4] sm:$0x1] }
 0x21f   : > { %v3010_v38 = vsel %vm2978_vm13, %v3938_v59, 0.0  ;;  %v3085_v46 = vmul.f32 %v3012_v39, %v3012_v39 }
 0x220   : > { %v3113_v2 = vadd.f32 %v3112_v55, %v3082_v21  ;;  %v3042_v49 = vadd.f32 %v3041_v53, %v3010_v38  ;;  %v3083_v23 = vmul.f32 %v3010_v38, %v3010_v38  ;;  %v3701_v13 = vpop.f32.mrb[28].mxu1 }
 0x221   : > { %v3893_v14 = vpop.f32.mrb[28].mxu0  ;;  %v1653_v54 = vpop.f32.mrb[29].mxu1 }
 0x222   : > { %v3043_v51 = vadd.f32 %v3042_v49, %v3011_v18  ;;  %v3114_v27 = vadd.f32 %v3113_v2, %v3083_v23  ;;  %v3939_v19 = vadd.f32 %v3893_v14, %v3701_v13  ;;  %v2714_v5 = vpop.f32.mrb[29].mxu0  ;;  %v3702_v28 = vpop.f32.mrb[30].mxu1 }
 0x223   : > { %v3940_v37 = vadd.f32 %v2714_v5, %v1653_v54  ;;  %v3894_v24 = vpop.f32.mrb[30].mxu0  ;;  %v1656_v25 = vpop.f32.mrb[31].mxu1 }
 0x224   : > { %v3115_v62 = vadd.f32 %v3114_v27, %v3084_v10  ;;  %v3044_v41 = vadd.f32 %v3043_v51, %v3012_v39  ;;  %v3941_v44 = vadd.f32 %v3894_v24, %v3702_v28  ;;  %v2717_v42 = vpop.f32.mrb[31].mxu0  ;;  %v3015_v8 = vsel %vm2983_vm4, %v3939_v19, 0.0 }
 0x225   : > { %v3013_v57 = vsel %vm2981_vm2, %v3940_v37, 0.0  ;;  %v3942_v9 = vadd.f32 %v2717_v42, %v1656_v25  ;;  %v3088_v35 = vmul.f32 %v3015_v8, %v3015_v8 }
 0x226   : > { %v3045_v15 = vadd.f32 %v3044_v41, %v3013_v57  ;;  %v3086_v32 = vmul.f32 %v3013_v57, %v3013_v57  ;;  %v3116_v47 = vadd.f32 %v3115_v62, %v3085_v46  ;;  %v3016_v20 = vsel %vm2984_vm5, %v3941_v44, 0.0 }
 0x227   : > { %v3014_v48 = vsel %vm2982_vm3, %v3942_v9, 0.0  ;;  %v3089_v52 = vmul.f32 %v3016_v20, %v3016_v20 }
 0x228   : > { %v3117_v22 = vadd.f32 %v3116_v47, %v3086_v32  ;;  %v3046_v34 = vadd.f32 %v3045_v15, %v3014_v48  ;;  %v3087_v50 = vmul.f32 %v3014_v48, %v3014_v48 }
 0x22a   : > { %v3047_v29 = vadd.f32 %v3046_v34, %v3015_v8  ;;  %v3118_v43 = vadd.f32 %v3117_v22, %v3087_v50 }
 0x22c   : > { %v3048_v60 = vadd.f32 %v3047_v29, %v3016_v20  ;;  %v3119_v58 = vadd.f32 %v3118_v43, %v3088_v35 }
 0x22e   : > { %v3049_v61 = vrot.slane %v3048_v60, 4  ;;  %v3120_v16 = vadd.f32 %v3119_v58, %v3089_v52 }
 0x230   : > { %v3050_v45 = vadd.f32 %v3049_v61, %v3048_v60  ;;  %v3121_v63 = vrot.slane %v3120_v16, 4 }
 0x232   : > { %v3051_v12 = vrot.slane %v3050_v45, 2  ;;  %v3122_v40 = vadd.f32 %v3121_v63, %v3120_v16 }
 0x234   : > { %v3052_v4 = vadd.f32 %v3051_v12, %v3050_v45  ;;  %v3123_v26 = vrot.slane %v3122_v40, 2 }
 0x236   : > { %v3053_v31 = vrot.slane %v3052_v4, 1  ;;  %v3124_v36 = vadd.f32 %v3123_v26, %v3122_v40 }
 0x238   : > { %v3054_v17 = vadd.f32 %v3053_v31, %v3052_v4  ;;  %v3125_v56 = vrot.slane %v3124_v36, 1 }
 0x23a   : > { %v3055_v33 = vadd.f32 %v3054_v17, %v3017_v6  ;;  %v3126_v0 = vadd.f32 %v3125_v56, %v3124_v36 }
 0x23c   : > { %3056 = vst [vmem:[%s5144_s3] sm:$0x1] %v3055_v33  ;;  %v3127_v3 = vadd.f32 %v3126_v0, %v3057_v30 }
 0x23e   : > { %3128 = vst [vmem:[%s5145_s4] sm:$0x1] %v3127_v3 }
 0x23f PF: > { %s15_s15 = sadd.s32 1, %s4265_s15  }
 0x240   : > { %p12_p5 = scmp.ge.s32.totalorder %s15_s15, 4  }
 0x242   :  { %14 = sbr.rel (!%p12_p5) target bundleno = 1 (0x1), region = 71 }

</bundles_post_ra>
